<compile_context>
chip_gen: v7x
topology: tpu7x:2x2x1
jax: 0.10.0
libtpu: 0.0.40
codegen_flags: <defaults>
</compile_context>

<pallas_src>
import functools

import jax
import jax.numpy as jnp
from jax import lax
from jax.experimental import pallas as pl
from jax.experimental.pallas import tpu as pltpu


def _round_up(x, m):
    return ((x + m - 1) // m) * m


def _norm_relu(acc, b_ref, mask, s_valid, norm):
    """(IN | eval-BN | none) + ReLU on a frame-layout (Cout, L) conv result.

    `mask` is 1.0 at valid output positions, 0.0 elsewhere; the result is
    guaranteed to be zero at invalid positions so the next stage can treat
    this slab as a zero-padded frame.
    """
    if norm == "IN":
        # InstanceNorm3d(affine=False, eps=1e-5).  The conv bias is cancelled
        # exactly by the mean subtraction, so it is skipped.  Masked two-pass
        # statistics (mean, then E[(x-mean)^2]) for numerical robustness.
        inv_s = jnp.float32(1.0 / s_valid)
        mean = jnp.sum(acc * mask, axis=1, keepdims=True) * inv_s
        diff = (acc - mean) * mask
        var = jnp.sum(diff * diff, axis=1, keepdims=True) * inv_s
        return jnp.maximum(diff * lax.rsqrt(var + 1e-5), 0.0)
    y = acc + b_ref[...]
    if norm == "BN":
        # TODO(synk): eval-mode BatchNorm with default running stats (mean=0,
        # var=1, identity affine); training-mode batch statistics would need
        # a cross-batch reduction.
        y = y * lax.rsqrt(jnp.float32(1.0 + 1e-5))
    return jnp.maximum(y, 0.0) * mask


def _unet_block_kernel(x_ref, w1_ref, b1_ref, w2_ref, b2_ref, m1_ref, m2_ref,
                       o_ref, col1_scr, frame2_scr, col2_scr, *,
                       taps1, taps2, L, pad_base, tail, S1, S2, cin, cout,
                       norm):
    cdt = col1_scr.dtype

    # ---- stage 1: Conv3d(Cin -> Cout, k=3) as one big-K MXU matmul -------
    # im2col on sublanes: every tap window is a contiguous lane-slice of the
    # flat zero-padded frame (a cheap 1-D lane shift, no gather/relayout).
    for t, off in enumerate(taps1):
        col1_scr[t * cin:(t + 1) * cin, :] = x_ref[0, :, off:off + L]
    acc1 = jnp.dot(w1_ref[...], col1_scr[...],
                   preferred_element_type=jnp.float32)        # (Cout, L) f32
    y1 = _norm_relu(acc1, b1_ref, m1_ref[...], S1, norm)

    # ---- stage-2 frame: place the masked stage-1 slab at a 128-aligned
    # lane offset (this *is* the halo shift); only the small halo strips
    # around it are re-zeroed each step (megacore-safe, interior is fully
    # rewritten).  The intermediate activation never leaves VMEM.
    if pad_base:
        frame2_scr[:, :pad_base] = jnp.zeros((cout, pad_base), cdt)
    if tail:
        frame2_scr[:, pad_base + L:] = jnp.zeros((cout, tail), cdt)
    frame2_scr[:, pad_base:pad_base + L] = y1.astype(cdt)

    # ---- stage 2: Conv3d(Cout -> Cout, k=3) -------------------------------
    for t, off in enumerate(taps2):
        col2_scr[t * cout:(t + 1) * cout, :] = frame2_scr[:, off:off + L]
    acc2 = jnp.dot(w2_ref[...], col2_scr[...],
                   preferred_element_type=jnp.float32)
    o_ref[0] = _norm_relu(acc2, b2_ref, m2_ref[...], S2, norm)


def unet_conv_block(x, w1, b1, w2, b2, *, padding, norm,
                    compute_dtype=jnp.bfloat16):
    """UNetConvBlock forward.  x: (N, Cin, D, H, W) NCDHW; weights in PyTorch
    (Cout, Cin, 3, 3, 3) layout; returns (N, Cout, Do, Ho, Wo) NCDHW."""
    N, Cin, D, H, W = x.shape
    Cout = w1.shape[0]
    p = 1 if padding else 0

    # Frame-1 geometry (input padded by `p`).  Both conv stages run in this
    # single flat coordinate system (strides Hp*Wp, Wp, 1), so the
    # intermediate never needs a compact -> re-pad relayout.
    Dp, Hp, Wp = D + 2 * p, H + 2 * p, W + 2 * p
    Do1, Ho1, Wo1 = Dp - 2, Hp - 2, Wp - 2                 # stage-1 extent
    Do2, Ho2, Wo2 = Do1 + 2 * p - 2, Ho1 + 2 * p - 2, Wo1 + 2 * p - 2
    if min(Do2, Ho2, Wo2) <= 0:
        raise ValueError("volume too small for two 3x3x3 convolutions")

    P1 = Dp * Hp * Wp
    off_max = 2 * Hp * Wp + 2 * Wp + 2                     # largest tap offset
    L = _round_up(P1, 128)                                 # lane-dense width
    Pbuf1 = _round_up(L + off_max, 128)                    # stage-1 frame len
    delta = p * (Hp * Wp + Wp + 1)                         # halo shift (p=1)
    pad_base = _round_up(delta, 128) if delta else 0       # aligned placement
    Pbuf2 = _round_up(pad_base - delta + off_max + L, 128)
    tail = Pbuf2 - pad_base - L
    S1 = Do1 * Ho1 * Wo1
    S2 = Do2 * Ho2 * Wo2

    taps1 = tuple((kd * Hp + kh) * Wp + kw
                  for kd in range(3) for kh in range(3) for kw in range(3))
    taps2 = tuple(pad_base - delta + off for off in taps1)

    # Host-side layout plumbing (cheap XLA ops):
    #  * input padded straight into the flat frame layout (no in-kernel
    #    scatter / zero-fill),
    #  * weights lane-dense tap-major (Cout, 27*Cin) in bf16,
    #  * per-stage validity masks for masked stats / frame zeroing.
    xf = jnp.pad(x, ((0, 0), (0, 0), (p, p), (p, p), (p, p)))
    xf = xf.reshape(N, Cin, P1)
    xf = jnp.pad(xf, ((0, 0), (0, 0), (0, Pbuf1 - P1))).astype(compute_dtype)

    w1_t = jnp.transpose(w1, (0, 2, 3, 4, 1)).reshape(Cout, 27 * Cin)
    w2_t = jnp.transpose(w2, (0, 2, 3, 4, 1)).reshape(Cout, 27 * Cout)
    w1_t = w1_t.astype(compute_dtype)
    w2_t = w2_t.astype(compute_dtype)
    b1_c = b1.reshape(Cout, 1).astype(jnp.float32)
    b2_c = b2.reshape(Cout, 1).astype(jnp.float32)

    q = jnp.arange(L, dtype=jnp.int32)
    d_i = q // (Hp * Wp)
    h_i = (q % (Hp * Wp)) // Wp
    w_i = q % Wp

    def _valid(do, ho, wo):
        m = (d_i < do) & (h_i < ho) & (w_i < wo)
        return m.astype(jnp.float32).reshape(1, L)

    mask1 = _valid(Do1, Ho1, Wo1)
    mask2 = _valid(Do2, Ho2, Wo2)

    kernel = functools.partial(
        _unet_block_kernel, taps1=taps1, taps2=taps2, L=L, pad_base=pad_base,
        tail=tail, S1=float(S1), S2=float(S2), cin=Cin, cout=Cout, norm=norm)

    # vmem limit: actual scratch + double-buffered block footprint, with
    # headroom, capped well under v7x's 64 MiB physical VMEM.
    esize = jnp.dtype(compute_dtype).itemsize
    scratch_bytes = (27 * Cin * L + Cout * Pbuf2 + 27 * Cout * L) * esize
    io_bytes = 2 * (Cin * Pbuf1 * esize + Cout * L * 4)
    const_bytes = (27 * Cin + 27 * Cout + 2) * Cout * esize + 2 * L * 4
    vmem_limit = int(min(48 * 2**20,
                         max(16 * 2**20,
                             2 * (scratch_bytes + io_bytes + const_bytes))))

    out_frames = pl.pallas_call(
        kernel,
        out_shape=jax.ShapeDtypeStruct((N, Cout, L), jnp.float32),
        grid_spec=pltpu.PrefetchScalarGridSpec(
            num_scalar_prefetch=0,
            grid=(N,),
            in_specs=[
                pl.BlockSpec((1, Cin, Pbuf1), lambda n: (n, 0, 0)),
                pl.BlockSpec((Cout, 27 * Cin), lambda n: (0, 0)),
                pl.BlockSpec((Cout, 1), lambda n: (0, 0)),
                pl.BlockSpec((Cout, 27 * Cout), lambda n: (0, 0)),
                pl.BlockSpec((Cout, 1), lambda n: (0, 0)),
                pl.BlockSpec((1, L), lambda n: (0, 0)),
                pl.BlockSpec((1, L), lambda n: (0, 0)),
            ],
            out_specs=pl.BlockSpec((1, Cout, L), lambda n: (n, 0, 0)),
            scratch_shapes=[
                pltpu.VMEM((27 * Cin, L), compute_dtype),   # stage-1 im2col
                pltpu.VMEM((Cout, Pbuf2), compute_dtype),   # stage-2 frame
                pltpu.VMEM((27 * Cout, L), compute_dtype),  # stage-2 im2col
            ],
        ),
        compiler_params=pltpu.CompilerParams(
            dimension_semantics=("parallel",),
            vmem_limit_bytes=vmem_limit),
    )(xf, w1_t, b1_c, w2_t, b2_c, mask1, mask2)

    # Wrapper-side compaction of the lane-dense frame-layout output.
    out = out_frames[:, :, :P1].reshape(N, Cout, Dp, Hp, Wp)
    return out[:, :, :Do2, :Ho2, :Wo2]


def _reference(x, w1, b1, w2, b2, *, padding, norm):
    def conv(h, w, b):
        pads = [(1, 1)] * 3 if padding else [(0, 0)] * 3
        y = lax.conv_general_dilated(
            h, w, (1, 1, 1), pads,
            dimension_numbers=("NCDHW", "OIDHW", "NCDHW"),
            precision=lax.Precision.HIGHEST)
        return y + b.reshape(1, -1, 1, 1, 1)

    def norm_relu(y):
        if norm == "IN":
            m = jnp.mean(y, axis=(2, 3, 4), keepdims=True)
            v = jnp.mean((y - m) ** 2, axis=(2, 3, 4), keepdims=True)
            y = (y - m) * lax.rsqrt(v + 1e-5)
        elif norm == "BN":
            y = y * lax.rsqrt(jnp.float32(1.0 + 1e-5))
        return jnp.maximum(y, 0.0)

    y = norm_relu(conv(x, w1, b1))
    y = norm_relu(conv(y, w2, b2))
    return y


if __name__ == "__main__":
    # UNetConvBlock(in_size=4, out_size=8, padding=True, norm='IN') applied to
    # a (N=2, C=4, D=8, H=8, W=8) volume.
    N, Cin, Cout = 2, 4, 8
    D = H = W = 8
    padding, norm = True, "IN"

    key = jax.random.PRNGKey(0)
    k1, k2, k3, k4, k5 = jax.random.split(key, 5)
    x = jax.random.normal(k1, (N, Cin, D, H, W), jnp.float32)            # NCDHW
    # Parameters in PyTorch layout: weight (O, I, kD, kH, kW), bias (O,).
    w1 = jax.random.normal(k2, (Cout, Cin, 3, 3, 3), jnp.float32) / jnp.sqrt(27.0 * Cin)
    b1 = 0.1 * jax.random.normal(k3, (Cout,), jnp.float32)
    w2 = jax.random.normal(k4, (Cout, Cout, 3, 3, 3), jnp.float32) / jnp.sqrt(27.0 * Cout)
    b2 = 0.1 * jax.random.normal(k5, (Cout,), jnp.float32)

    fwd = jax.jit(functools.partial(unet_conv_block, padding=padding, norm=norm))
    out = jax.block_until_ready(fwd(x, w1, b1, w2, b2))

    ref = _reference(x, w1, b1, w2, b2, padding=padding, norm=norm)
    assert out.shape == ref.shape == (N, Cout, D, H, W), (out.shape, ref.shape)
    max_err = float(jnp.max(jnp.abs(out - ref)))
    # Tolerance sized for bf16 MXU operands with f32 accumulation
    # (estimated max error ~1e-2 at these shapes).
    assert jnp.allclose(out, ref, atol=3e-2, rtol=3e-2), max_err
    print("KERNEL_OK")
</pallas_src>

<mosaic_0001>
module attributes {stable_mosaic.version = 11 : i64} {
  func.func @_unet_block_kernel(%arg0: i32, %arg1: memref<1x4x1280xbf16, #tpu.memory_space<vmem>>, %arg2: memref<8x108xbf16, #tpu.memory_space<vmem>>, %arg3: memref<8x1xf32, #tpu.memory_space<vmem>>, %arg4: memref<8x216xbf16, #tpu.memory_space<vmem>>, %arg5: memref<8x1xf32, #tpu.memory_space<vmem>>, %arg6: memref<1x1024xf32, #tpu.memory_space<vmem>>, %arg7: memref<1x1024xf32, #tpu.memory_space<vmem>>, %arg8: memref<1x8x1024xf32, #tpu.memory_space<vmem>>, %arg9: memref<108x1024xbf16, #tpu.memory_space<vmem>>, %arg10: memref<8x1280xbf16, #tpu.memory_space<vmem>>, %arg11: memref<216x1024xbf16, #tpu.memory_space<vmem>>) attributes {dimension_semantics = [#tpu.dimension_semantics<parallel>], iteration_bounds = array<i64: 2>, scalar_prefetch = 0 : i64, scratch_operands = 3 : i64, tpu.core_type = #tpu.core_type<tc>, window_params = [{transform_indices = @transform_0, window_bounds = array<i64: 1, 4, 1280>}, {pipeline_mode = #tpu.pipeline_mode<synchronous>, transform_indices = @transform_1, window_bounds = array<i64: 8, 108>}, {pipeline_mode = #tpu.pipeline_mode<synchronous>, transform_indices = @transform_2, window_bounds = array<i64: 8, 1>}, {pipeline_mode = #tpu.pipeline_mode<synchronous>, transform_indices = @transform_3, window_bounds = array<i64: 8, 216>}, {pipeline_mode = #tpu.pipeline_mode<synchronous>, transform_indices = @transform_4, window_bounds = array<i64: 8, 1>}, {pipeline_mode = #tpu.pipeline_mode<synchronous>, transform_indices = @transform_5, window_bounds = array<i64: 1, 1024>}, {pipeline_mode = #tpu.pipeline_mode<synchronous>, transform_indices = @transform_6, window_bounds = array<i64: 1, 1024>}, {transform_indices = @transform_7, window_bounds = array<i64: 1, 8, 1024>}]} {
    %c0 = arith.constant 0 : index
    %c0_0 = arith.constant 0 : index
    %c0_1 = arith.constant 0 : index
    %0 = vector.load %arg1[%c0, %c0_0, %c0_1] : memref<1x4x1280xbf16, #tpu.memory_space<vmem>>, vector<1x4x1024xbf16>
    %1 = vector.shape_cast %0 : vector<1x4x1024xbf16> to vector<4x1024xbf16>
    %c0_2 = arith.constant 0 : index
    %c0_3 = arith.constant 0 : index
    %2 = vector.load %arg9[%c0_2, %c0_3] : memref<108x1024xbf16, #tpu.memory_space<vmem>>, vector<4x1024xbf16>
    tpu.vector_store %arg9[%c0_2, %c0_3], %1 {strides = array<i32>} : memref<108x1024xbf16, #tpu.memory_space<vmem>>, vector<4x1024xbf16>,
    %c0_4 = arith.constant 0 : index
    %c0_5 = arith.constant 0 : index
    %c1 = arith.constant 1 : index
    %3 = vector.load %arg1[%c0_4, %c0_5, %c1] : memref<1x4x1280xbf16, #tpu.memory_space<vmem>>, vector<1x4x1024xbf16>
    %4 = vector.shape_cast %3 : vector<1x4x1024xbf16> to vector<4x1024xbf16>
    %c4 = arith.constant 4 : index
    %c0_6 = arith.constant 0 : index
    %5 = vector.load %arg9[%c4, %c0_6] : memref<108x1024xbf16, #tpu.memory_space<vmem>>, vector<4x1024xbf16>
    tpu.vector_store %arg9[%c4, %c0_6], %4 {strides = array<i32>} : memref<108x1024xbf16, #tpu.memory_space<vmem>>, vector<4x1024xbf16>,
    %c0_7 = arith.constant 0 : index
    %c0_8 = arith.constant 0 : index
    %c2 = arith.constant 2 : index
    %6 = vector.load %arg1[%c0_7, %c0_8, %c2] : memref<1x4x1280xbf16, #tpu.memory_space<vmem>>, vector<1x4x1024xbf16>
    %7 = vector.shape_cast %6 : vector<1x4x1024xbf16> to vector<4x1024xbf16>
    %c8 = arith.constant 8 : index
    %c0_9 = arith.constant 0 : index
    %8 = vector.load %arg9[%c8, %c0_9] : memref<108x1024xbf16, #tpu.memory_space<vmem>>, vector<4x1024xbf16>
    tpu.vector_store %arg9[%c8, %c0_9], %7 {strides = array<i32>} : memref<108x1024xbf16, #tpu.memory_space<vmem>>, vector<4x1024xbf16>,
    %c0_10 = arith.constant 0 : index
    %c0_11 = arith.constant 0 : index
    %c10 = arith.constant 10 : index
    %9 = vector.load %arg1[%c0_10, %c0_11, %c10] : memref<1x4x1280xbf16, #tpu.memory_space<vmem>>, vector<1x4x1024xbf16>
    %10 = vector.shape_cast %9 : vector<1x4x1024xbf16> to vector<4x1024xbf16>
    %c12 = arith.constant 12 : index
    %c0_12 = arith.constant 0 : index
    %11 = vector.load %arg9[%c12, %c0_12] : memref<108x1024xbf16, #tpu.memory_space<vmem>>, vector<4x1024xbf16>
    tpu.vector_store %arg9[%c12, %c0_12], %10 {strides = array<i32>} : memref<108x1024xbf16, #tpu.memory_space<vmem>>, vector<4x1024xbf16>,
    %c0_13 = arith.constant 0 : index
    %c0_14 = arith.constant 0 : index
    %c11 = arith.constant 11 : index
    %12 = vector.load %arg1[%c0_13, %c0_14, %c11] : memref<1x4x1280xbf16, #tpu.memory_space<vmem>>, vector<1x4x1024xbf16>
    %13 = vector.shape_cast %12 : vector<1x4x1024xbf16> to vector<4x1024xbf16>
    %c16 = arith.constant 16 : index
    %c0_15 = arith.constant 0 : index
    %14 = vector.load %arg9[%c16, %c0_15] : memref<108x1024xbf16, #tpu.memory_space<vmem>>, vector<4x1024xbf16>
    tpu.vector_store %arg9[%c16, %c0_15], %13 {strides = array<i32>} : memref<108x1024xbf16, #tpu.memory_space<vmem>>, vector<4x1024xbf16>,
    %c0_16 = arith.constant 0 : index
    %c0_17 = arith.constant 0 : index
    %c12_18 = arith.constant 12 : index
    %15 = vector.load %arg1[%c0_16, %c0_17, %c12_18] : memref<1x4x1280xbf16, #tpu.memory_space<vmem>>, vector<1x4x1024xbf16>
    %16 = vector.shape_cast %15 : vector<1x4x1024xbf16> to vector<4x1024xbf16>
    %c20 = arith.constant 20 : index
    %c0_19 = arith.constant 0 : index
    %17 = vector.load %arg9[%c20, %c0_19] : memref<108x1024xbf16, #tpu.memory_space<vmem>>, vector<4x1024xbf16>
    tpu.vector_store %arg9[%c20, %c0_19], %16 {strides = array<i32>} : memref<108x1024xbf16, #tpu.memory_space<vmem>>, vector<4x1024xbf16>,
    %c0_20 = arith.constant 0 : index
    %c0_21 = arith.constant 0 : index
    %c20_22 = arith.constant 20 : index
    %18 = vector.load %arg1[%c0_20, %c0_21, %c20_22] : memref<1x4x1280xbf16, #tpu.memory_space<vmem>>, vector<1x4x1024xbf16>
    %19 = vector.shape_cast %18 : vector<1x4x1024xbf16> to vector<4x1024xbf16>
    %c24 = arith.constant 24 : index
    %c0_23 = arith.constant 0 : index
    %20 = vector.load %arg9[%c24, %c0_23] : memref<108x1024xbf16, #tpu.memory_space<vmem>>, vector<4x1024xbf16>
    tpu.vector_store %arg9[%c24, %c0_23], %19 {strides = array<i32>} : memref<108x1024xbf16, #tpu.memory_space<vmem>>, vector<4x1024xbf16>,
    %c0_24 = arith.constant 0 : index
    %c0_25 = arith.constant 0 : index
    %c21 = arith.constant 21 : index
    %21 = vector.load %arg1[%c0_24, %c0_25, %c21] : memref<1x4x1280xbf16, #tpu.memory_space<vmem>>, vector<1x4x1024xbf16>
    %22 = vector.shape_cast %21 : vector<1x4x1024xbf16> to vector<4x1024xbf16>
    %c28 = arith.constant 28 : index
    %c0_26 = arith.constant 0 : index
    %23 = vector.load %arg9[%c28, %c0_26] : memref<108x1024xbf16, #tpu.memory_space<vmem>>, vector<4x1024xbf16>
    tpu.vector_store %arg9[%c28, %c0_26], %22 {strides = array<i32>} : memref<108x1024xbf16, #tpu.memory_space<vmem>>, vector<4x1024xbf16>,
    %c0_27 = arith.constant 0 : index
    %c0_28 = arith.constant 0 : index
    %c22 = arith.constant 22 : index
    %24 = vector.load %arg1[%c0_27, %c0_28, %c22] : memref<1x4x1280xbf16, #tpu.memory_space<vmem>>, vector<1x4x1024xbf16>
    %25 = vector.shape_cast %24 : vector<1x4x1024xbf16> to vector<4x1024xbf16>
    %c32 = arith.constant 32 : index
    %c0_29 = arith.constant 0 : index
    %26 = vector.load %arg9[%c32, %c0_29] : memref<108x1024xbf16, #tpu.memory_space<vmem>>, vector<4x1024xbf16>
    tpu.vector_store %arg9[%c32, %c0_29], %25 {strides = array<i32>} : memref<108x1024xbf16, #tpu.memory_space<vmem>>, vector<4x1024xbf16>,
    %c0_30 = arith.constant 0 : index
    %c0_31 = arith.constant 0 : index
    %c100 = arith.constant 100 : index
    %27 = vector.load %arg1[%c0_30, %c0_31, %c100] : memref<1x4x1280xbf16, #tpu.memory_space<vmem>>, vector<1x4x1024xbf16>
    %28 = vector.shape_cast %27 : vector<1x4x1024xbf16> to vector<4x1024xbf16>
    %c36 = arith.constant 36 : index
    %c0_32 = arith.constant 0 : index
    %29 = vector.load %arg9[%c36, %c0_32] : memref<108x1024xbf16, #tpu.memory_space<vmem>>, vector<4x1024xbf16>
    tpu.vector_store %arg9[%c36, %c0_32], %28 {strides = array<i32>} : memref<108x1024xbf16, #tpu.memory_space<vmem>>, vector<4x1024xbf16>,
    %c0_33 = arith.constant 0 : index
    %c0_34 = arith.constant 0 : index
    %c101 = arith.constant 101 : index
    %30 = vector.load %arg1[%c0_33, %c0_34, %c101] : memref<1x4x1280xbf16, #tpu.memory_space<vmem>>, vector<1x4x1024xbf16>
    %31 = vector.shape_cast %30 : vector<1x4x1024xbf16> to vector<4x1024xbf16>
    %c40 = arith.constant 40 : index
    %c0_35 = arith.constant 0 : index
    %32 = vector.load %arg9[%c40, %c0_35] : memref<108x1024xbf16, #tpu.memory_space<vmem>>, vector<4x1024xbf16>
    tpu.vector_store %arg9[%c40, %c0_35], %31 {strides = array<i32>} : memref<108x1024xbf16, #tpu.memory_space<vmem>>, vector<4x1024xbf16>,
    %c0_36 = arith.constant 0 : index
    %c0_37 = arith.constant 0 : index
    %c102 = arith.constant 102 : index
    %33 = vector.load %arg1[%c0_36, %c0_37, %c102] : memref<1x4x1280xbf16, #tpu.memory_space<vmem>>, vector<1x4x1024xbf16>
    %34 = vector.shape_cast %33 : vector<1x4x1024xbf16> to vector<4x1024xbf16>
    %c44 = arith.constant 44 : index
    %c0_38 = arith.constant 0 : index
    %35 = vector.load %arg9[%c44, %c0_38] : memref<108x1024xbf16, #tpu.memory_space<vmem>>, vector<4x1024xbf16>
    tpu.vector_store %arg9[%c44, %c0_38], %34 {strides = array<i32>} : memref<108x1024xbf16, #tpu.memory_space<vmem>>, vector<4x1024xbf16>,
    %c0_39 = arith.constant 0 : index
    %c0_40 = arith.constant 0 : index
    %c110 = arith.constant 110 : index
    %36 = vector.load %arg1[%c0_39, %c0_40, %c110] : memref<1x4x1280xbf16, #tpu.memory_space<vmem>>, vector<1x4x1024xbf16>
    %37 = vector.shape_cast %36 : vector<1x4x1024xbf16> to vector<4x1024xbf16>
    %c48 = arith.constant 48 : index
    %c0_41 = arith.constant 0 : index
    %38 = vector.load %arg9[%c48, %c0_41] : memref<108x1024xbf16, #tpu.memory_space<vmem>>, vector<4x1024xbf16>
    tpu.vector_store %arg9[%c48, %c0_41], %37 {strides = array<i32>} : memref<108x1024xbf16, #tpu.memory_space<vmem>>, vector<4x1024xbf16>,
    %c0_42 = arith.constant 0 : index
    %c0_43 = arith.constant 0 : index
    %c111 = arith.constant 111 : index
    %39 = vector.load %arg1[%c0_42, %c0_43, %c111] : memref<1x4x1280xbf16, #tpu.memory_space<vmem>>, vector<1x4x1024xbf16>
    %40 = vector.shape_cast %39 : vector<1x4x1024xbf16> to vector<4x1024xbf16>
    %c52 = arith.constant 52 : index
    %c0_44 = arith.constant 0 : index
    %41 = vector.load %arg9[%c52, %c0_44] : memref<108x1024xbf16, #tpu.memory_space<vmem>>, vector<4x1024xbf16>
    tpu.vector_store %arg9[%c52, %c0_44], %40 {strides = array<i32>} : memref<108x1024xbf16, #tpu.memory_space<vmem>>, vector<4x1024xbf16>,
    %c0_45 = arith.constant 0 : index
    %c0_46 = arith.constant 0 : index
    %c112 = arith.constant 112 : index
    %42 = vector.load %arg1[%c0_45, %c0_46, %c112] : memref<1x4x1280xbf16, #tpu.memory_space<vmem>>, vector<1x4x1024xbf16>
    %43 = vector.shape_cast %42 : vector<1x4x1024xbf16> to vector<4x1024xbf16>
    %c56 = arith.constant 56 : index
    %c0_47 = arith.constant 0 : index
    %44 = vector.load %arg9[%c56, %c0_47] : memref<108x1024xbf16, #tpu.memory_space<vmem>>, vector<4x1024xbf16>
    tpu.vector_store %arg9[%c56, %c0_47], %43 {strides = array<i32>} : memref<108x1024xbf16, #tpu.memory_space<vmem>>, vector<4x1024xbf16>,
    %c0_48 = arith.constant 0 : index
    %c0_49 = arith.constant 0 : index
    %c120 = arith.constant 120 : index
    %45 = vector.load %arg1[%c0_48, %c0_49, %c120] : memref<1x4x1280xbf16, #tpu.memory_space<vmem>>, vector<1x4x1024xbf16>
    %46 = vector.shape_cast %45 : vector<1x4x1024xbf16> to vector<4x1024xbf16>
    %c60 = arith.constant 60 : index
    %c0_50 = arith.constant 0 : index
    %47 = vector.load %arg9[%c60, %c0_50] : memref<108x1024xbf16, #tpu.memory_space<vmem>>, vector<4x1024xbf16>
    tpu.vector_store %arg9[%c60, %c0_50], %46 {strides = array<i32>} : memref<108x1024xbf16, #tpu.memory_space<vmem>>, vector<4x1024xbf16>,
    %c0_51 = arith.constant 0 : index
    %c0_52 = arith.constant 0 : index
    %c121 = arith.constant 121 : index
    %48 = vector.load %arg1[%c0_51, %c0_52, %c121] : memref<1x4x1280xbf16, #tpu.memory_space<vmem>>, vector<1x4x1024xbf16>
    %49 = vector.shape_cast %48 : vector<1x4x1024xbf16> to vector<4x1024xbf16>
    %c64 = arith.constant 64 : index
    %c0_53 = arith.constant 0 : index
    %50 = vector.load %arg9[%c64, %c0_53] : memref<108x1024xbf16, #tpu.memory_space<vmem>>, vector<4x1024xbf16>
    tpu.vector_store %arg9[%c64, %c0_53], %49 {strides = array<i32>} : memref<108x1024xbf16, #tpu.memory_space<vmem>>, vector<4x1024xbf16>,
    %c0_54 = arith.constant 0 : index
    %c0_55 = arith.constant 0 : index
    %c122 = arith.constant 122 : index
    %51 = vector.load %arg1[%c0_54, %c0_55, %c122] : memref<1x4x1280xbf16, #tpu.memory_space<vmem>>, vector<1x4x1024xbf16>
    %52 = vector.shape_cast %51 : vector<1x4x1024xbf16> to vector<4x1024xbf16>
    %c68 = arith.constant 68 : index
    %c0_56 = arith.constant 0 : index
    %53 = vector.load %arg9[%c68, %c0_56] : memref<108x1024xbf16, #tpu.memory_space<vmem>>, vector<4x1024xbf16>
    tpu.vector_store %arg9[%c68, %c0_56], %52 {strides = array<i32>} : memref<108x1024xbf16, #tpu.memory_space<vmem>>, vector<4x1024xbf16>,
    %c0_57 = arith.constant 0 : index
    %c0_58 = arith.constant 0 : index
    %c200 = arith.constant 200 : index
    %54 = vector.load %arg1[%c0_57, %c0_58, %c200] : memref<1x4x1280xbf16, #tpu.memory_space<vmem>>, vector<1x4x1024xbf16>
    %55 = vector.shape_cast %54 : vector<1x4x1024xbf16> to vector<4x1024xbf16>
    %c72 = arith.constant 72 : index
    %c0_59 = arith.constant 0 : index
    %56 = vector.load %arg9[%c72, %c0_59] : memref<108x1024xbf16, #tpu.memory_space<vmem>>, vector<4x1024xbf16>
    tpu.vector_store %arg9[%c72, %c0_59], %55 {strides = array<i32>} : memref<108x1024xbf16, #tpu.memory_space<vmem>>, vector<4x1024xbf16>,
    %c0_60 = arith.constant 0 : index
    %c0_61 = arith.constant 0 : index
    %c201 = arith.constant 201 : index
    %57 = vector.load %arg1[%c0_60, %c0_61, %c201] : memref<1x4x1280xbf16, #tpu.memory_space<vmem>>, vector<1x4x1024xbf16>
    %58 = vector.shape_cast %57 : vector<1x4x1024xbf16> to vector<4x1024xbf16>
    %c76 = arith.constant 76 : index
    %c0_62 = arith.constant 0 : index
    %59 = vector.load %arg9[%c76, %c0_62] : memref<108x1024xbf16, #tpu.memory_space<vmem>>, vector<4x1024xbf16>
    tpu.vector_store %arg9[%c76, %c0_62], %58 {strides = array<i32>} : memref<108x1024xbf16, #tpu.memory_space<vmem>>, vector<4x1024xbf16>,
    %c0_63 = arith.constant 0 : index
    %c0_64 = arith.constant 0 : index
    %c202 = arith.constant 202 : index
    %60 = vector.load %arg1[%c0_63, %c0_64, %c202] : memref<1x4x1280xbf16, #tpu.memory_space<vmem>>, vector<1x4x1024xbf16>
    %61 = vector.shape_cast %60 : vector<1x4x1024xbf16> to vector<4x1024xbf16>
    %c80 = arith.constant 80 : index
    %c0_65 = arith.constant 0 : index
    %62 = vector.load %arg9[%c80, %c0_65] : memref<108x1024xbf16, #tpu.memory_space<vmem>>, vector<4x1024xbf16>
    tpu.vector_store %arg9[%c80, %c0_65], %61 {strides = array<i32>} : memref<108x1024xbf16, #tpu.memory_space<vmem>>, vector<4x1024xbf16>,
    %c0_66 = arith.constant 0 : index
    %c0_67 = arith.constant 0 : index
    %c210 = arith.constant 210 : index
    %63 = vector.load %arg1[%c0_66, %c0_67, %c210] : memref<1x4x1280xbf16, #tpu.memory_space<vmem>>, vector<1x4x1024xbf16>
    %64 = vector.shape_cast %63 : vector<1x4x1024xbf16> to vector<4x1024xbf16>
    %c84 = arith.constant 84 : index
    %c0_68 = arith.constant 0 : index
    %65 = vector.load %arg9[%c84, %c0_68] : memref<108x1024xbf16, #tpu.memory_space<vmem>>, vector<4x1024xbf16>
    tpu.vector_store %arg9[%c84, %c0_68], %64 {strides = array<i32>} : memref<108x1024xbf16, #tpu.memory_space<vmem>>, vector<4x1024xbf16>,
    %c0_69 = arith.constant 0 : index
    %c0_70 = arith.constant 0 : index
    %c211 = arith.constant 211 : index
    %66 = vector.load %arg1[%c0_69, %c0_70, %c211] : memref<1x4x1280xbf16, #tpu.memory_space<vmem>>, vector<1x4x1024xbf16>
    %67 = vector.shape_cast %66 : vector<1x4x1024xbf16> to vector<4x1024xbf16>
    %c88 = arith.constant 88 : index
    %c0_71 = arith.constant 0 : index
    %68 = vector.load %arg9[%c88, %c0_71] : memref<108x1024xbf16, #tpu.memory_space<vmem>>, vector<4x1024xbf16>
    tpu.vector_store %arg9[%c88, %c0_71], %67 {strides = array<i32>} : memref<108x1024xbf16, #tpu.memory_space<vmem>>, vector<4x1024xbf16>,
    %c0_72 = arith.constant 0 : index
    %c0_73 = arith.constant 0 : index
    %c212 = arith.constant 212 : index
    %69 = vector.load %arg1[%c0_72, %c0_73, %c212] : memref<1x4x1280xbf16, #tpu.memory_space<vmem>>, vector<1x4x1024xbf16>
    %70 = vector.shape_cast %69 : vector<1x4x1024xbf16> to vector<4x1024xbf16>
    %c92 = arith.constant 92 : index
    %c0_74 = arith.constant 0 : index
    %71 = vector.load %arg9[%c92, %c0_74] : memref<108x1024xbf16, #tpu.memory_space<vmem>>, vector<4x1024xbf16>
    tpu.vector_store %arg9[%c92, %c0_74], %70 {strides = array<i32>} : memref<108x1024xbf16, #tpu.memory_space<vmem>>, vector<4x1024xbf16>,
    %c0_75 = arith.constant 0 : index
    %c0_76 = arith.constant 0 : index
    %c220 = arith.constant 220 : index
    %72 = vector.load %arg1[%c0_75, %c0_76, %c220] : memref<1x4x1280xbf16, #tpu.memory_space<vmem>>, vector<1x4x1024xbf16>
    %73 = vector.shape_cast %72 : vector<1x4x1024xbf16> to vector<4x1024xbf16>
    %c96 = arith.constant 96 : index
    %c0_77 = arith.constant 0 : index
    %74 = vector.load %arg9[%c96, %c0_77] : memref<108x1024xbf16, #tpu.memory_space<vmem>>, vector<4x1024xbf16>
    tpu.vector_store %arg9[%c96, %c0_77], %73 {strides = array<i32>} : memref<108x1024xbf16, #tpu.memory_space<vmem>>, vector<4x1024xbf16>,
    %c0_78 = arith.constant 0 : index
    %c0_79 = arith.constant 0 : index
    %c221 = arith.constant 221 : index
    %75 = vector.load %arg1[%c0_78, %c0_79, %c221] : memref<1x4x1280xbf16, #tpu.memory_space<vmem>>, vector<1x4x1024xbf16>
    %76 = vector.shape_cast %75 : vector<1x4x1024xbf16> to vector<4x1024xbf16>
    %c100_80 = arith.constant 100 : index
    %c0_81 = arith.constant 0 : index
    %77 = vector.load %arg9[%c100_80, %c0_81] : memref<108x1024xbf16, #tpu.memory_space<vmem>>, vector<4x1024xbf16>
    tpu.vector_store %arg9[%c100_80, %c0_81], %76 {strides = array<i32>} : memref<108x1024xbf16, #tpu.memory_space<vmem>>, vector<4x1024xbf16>,
    %c0_82 = arith.constant 0 : index
    %c0_83 = arith.constant 0 : index
    %c222 = arith.constant 222 : index
    %78 = vector.load %arg1[%c0_82, %c0_83, %c222] : memref<1x4x1280xbf16, #tpu.memory_space<vmem>>, vector<1x4x1024xbf16>
    %79 = vector.shape_cast %78 : vector<1x4x1024xbf16> to vector<4x1024xbf16>
    %c104 = arith.constant 104 : index
    %c0_84 = arith.constant 0 : index
    %80 = vector.load %arg9[%c104, %c0_84] : memref<108x1024xbf16, #tpu.memory_space<vmem>>, vector<4x1024xbf16>
    tpu.vector_store %arg9[%c104, %c0_84], %79 {strides = array<i32>} : memref<108x1024xbf16, #tpu.memory_space<vmem>>, vector<4x1024xbf16>,
    %c0_85 = arith.constant 0 : index
    %c0_86 = arith.constant 0 : index
    %81 = vector.load %arg2[%c0_85, %c0_86] : memref<8x108xbf16, #tpu.memory_space<vmem>>, vector<8x108xbf16>
    %c0_87 = arith.constant 0 : index
    %c0_88 = arith.constant 0 : index
    %82 = vector.load %arg9[%c0_87, %c0_88] : memref<108x1024xbf16, #tpu.memory_space<vmem>>, vector<108x1024xbf16>
    %cst = arith.constant dense<0.000000e+00> : vector<8x1024xf32>
    %83 = tpu.matmul %81, %82, %cst {dimension_numbers = #tpu.dot_dimension_numbers<[1], [0], [0], [1], [0, 0, 1, 1], [], []>} : vector<8x108xbf16>, vector<108x1024xbf16>, vector<8x1024xf32> -> vector<8x1024xf32>
    %c0_89 = arith.constant 0 : index
    %c0_90 = arith.constant 0 : index
    %84 = vector.load %arg6[%c0_89, %c0_90] : memref<1x1024xf32, #tpu.memory_space<vmem>>, vector<1x1024xf32>
    %85 = vector.broadcast %84 : vector<1x1024xf32> to vector<8x1024xf32>
    %86 = arith.mulf %83, %85 : vector<8x1024xf32>
    %cst_91 = arith.constant dense<0.000000e+00> : vector<8xf32>
    %87 = vector.multi_reduction <add>, %86, %cst_91 [1] : vector<8x1024xf32> to vector<8xf32>
    %88 = vector.shape_cast %87 : vector<8xf32> to vector<8x1xf32>
    %cst_92 = arith.constant 0.001953125 : f32
    %89 = vector.broadcast %cst_92 : f32 to vector<8x1xf32>
    %90 = arith.mulf %88, %89 : vector<8x1xf32>
    %91 = vector.broadcast %90 : vector<8x1xf32> to vector<8x1024xf32>
    %92 = arith.subf %83, %91 : vector<8x1024xf32>
    %93 = vector.broadcast %84 : vector<1x1024xf32> to vector<8x1024xf32>
    %94 = arith.mulf %92, %93 : vector<8x1024xf32>
    %95 = arith.mulf %94, %94 : vector<8x1024xf32>
    %cst_93 = arith.constant dense<0.000000e+00> : vector<8xf32>
    %96 = vector.multi_reduction <add>, %95, %cst_93 [1] : vector<8x1024xf32> to vector<8xf32>
    %97 = vector.shape_cast %96 : vector<8xf32> to vector<8x1xf32>
    %cst_94 = arith.constant 0.001953125 : f32
    %98 = vector.broadcast %cst_94 : f32 to vector<8x1xf32>
    %99 = arith.mulf %97, %98 : vector<8x1xf32>
    %cst_95 = arith.constant 9.99999974E-6 : f32
    %100 = vector.broadcast %cst_95 : f32 to vector<8x1xf32>
    %101 = arith.addf %99, %100 : vector<8x1xf32>
    %102 = math.rsqrt %101 : vector<8x1xf32>
    %103 = vector.broadcast %102 : vector<8x1xf32> to vector<8x1024xf32>
    %104 = arith.mulf %94, %103 : vector<8x1024xf32>
    %cst_96 = arith.constant 0.000000e+00 : f32
    %105 = vector.broadcast %cst_96 : f32 to vector<8x1024xf32>
    %106 = arith.maximumf %104, %105 : vector<8x1024xf32>
    %cst_97 = arith.constant 0.000000e+00 : bf16
    %107 = vector.broadcast %cst_97 : bf16 to vector<8x128xbf16>
    %c0_98 = arith.constant 0 : index
    %c0_99 = arith.constant 0 : index
    %108 = vector.load %arg10[%c0_98, %c0_99] : memref<8x1280xbf16, #tpu.memory_space<vmem>>, vector<8x128xbf16>
    tpu.vector_store %arg10[%c0_98, %c0_99], %107 {strides = array<i32>} : memref<8x1280xbf16, #tpu.memory_space<vmem>>, vector<8x128xbf16>,
    %cst_100 = arith.constant 0.000000e+00 : bf16
    %109 = vector.broadcast %cst_100 : bf16 to vector<8x128xbf16>
    %c0_101 = arith.constant 0 : index
    %c1152 = arith.constant 1152 : index
    %110 = vector.load %arg10[%c0_101, %c1152] : memref<8x1280xbf16, #tpu.memory_space<vmem>>, vector<8x128xbf16>
    tpu.vector_store %arg10[%c0_101, %c1152], %109 {strides = array<i32>} : memref<8x1280xbf16, #tpu.memory_space<vmem>>, vector<8x128xbf16>,
    %111 = arith.truncf %106 : vector<8x1024xf32> to vector<8x1024xbf16>
    %c0_102 = arith.constant 0 : index
    %c128 = arith.constant 128 : index
    %112 = vector.load %arg10[%c0_102, %c128] : memref<8x1280xbf16, #tpu.memory_space<vmem>>, vector<8x1024xbf16>
    tpu.vector_store %arg10[%c0_102, %c128], %111 {strides = array<i32>} : memref<8x1280xbf16, #tpu.memory_space<vmem>>, vector<8x1024xbf16>,
    %c0_103 = arith.constant 0 : index
    %c17 = arith.constant 17 : index
    %113 = vector.load %arg10[%c0_103, %c17] : memref<8x1280xbf16, #tpu.memory_space<vmem>>, vector<8x1024xbf16>
    %c0_104 = arith.constant 0 : index
    %c0_105 = arith.constant 0 : index
    %114 = vector.load %arg11[%c0_104, %c0_105] : memref<216x1024xbf16, #tpu.memory_space<vmem>>, vector<8x1024xbf16>
    tpu.vector_store %arg11[%c0_104, %c0_105], %113 {strides = array<i32>} : memref<216x1024xbf16, #tpu.memory_space<vmem>>, vector<8x1024xbf16>,
    %c0_106 = arith.constant 0 : index
    %c18 = arith.constant 18 : index
    %115 = vector.load %arg10[%c0_106, %c18] : memref<8x1280xbf16, #tpu.memory_space<vmem>>, vector<8x1024xbf16>
    %c8_107 = arith.constant 8 : index
    %c0_108 = arith.constant 0 : index
    %116 = vector.load %arg11[%c8_107, %c0_108] : memref<216x1024xbf16, #tpu.memory_space<vmem>>, vector<8x1024xbf16>
    tpu.vector_store %arg11[%c8_107, %c0_108], %115 {strides = array<i32>} : memref<216x1024xbf16, #tpu.memory_space<vmem>>, vector<8x1024xbf16>,
    %c0_109 = arith.constant 0 : index
    %c19 = arith.constant 19 : index
    %117 = vector.load %arg10[%c0_109, %c19] : memref<8x1280xbf16, #tpu.memory_space<vmem>>, vector<8x1024xbf16>
    %c16_110 = arith.constant 16 : index
    %c0_111 = arith.constant 0 : index
    %118 = vector.load %arg11[%c16_110, %c0_111] : memref<216x1024xbf16, #tpu.memory_space<vmem>>, vector<8x1024xbf16>
    tpu.vector_store %arg11[%c16_110, %c0_111], %117 {strides = array<i32>} : memref<216x1024xbf16, #tpu.memory_space<vmem>>, vector<8x1024xbf16>,
    %c0_112 = arith.constant 0 : index
    %c27 = arith.constant 27 : index
    %119 = vector.load %arg10[%c0_112, %c27] : memref<8x1280xbf16, #tpu.memory_space<vmem>>, vector<8x1024xbf16>
    %c24_113 = arith.constant 24 : index
    %c0_114 = arith.constant 0 : index
    %120 = vector.load %arg11[%c24_113, %c0_114] : memref<216x1024xbf16, #tpu.memory_space<vmem>>, vector<8x1024xbf16>
    tpu.vector_store %arg11[%c24_113, %c0_114], %119 {strides = array<i32>} : memref<216x1024xbf16, #tpu.memory_space<vmem>>, vector<8x1024xbf16>,
    %c0_115 = arith.constant 0 : index
    %c28_116 = arith.constant 28 : index
    %121 = vector.load %arg10[%c0_115, %c28_116] : memref<8x1280xbf16, #tpu.memory_space<vmem>>, vector<8x1024xbf16>
    %c32_117 = arith.constant 32 : index
    %c0_118 = arith.constant 0 : index
    %122 = vector.load %arg11[%c32_117, %c0_118] : memref<216x1024xbf16, #tpu.memory_space<vmem>>, vector<8x1024xbf16>
    tpu.vector_store %arg11[%c32_117, %c0_118], %121 {strides = array<i32>} : memref<216x1024xbf16, #tpu.memory_space<vmem>>, vector<8x1024xbf16>,
    %c0_119 = arith.constant 0 : index
    %c29 = arith.constant 29 : index
    %123 = vector.load %arg10[%c0_119, %c29] : memref<8x1280xbf16, #tpu.memory_space<vmem>>, vector<8x1024xbf16>
    %c40_120 = arith.constant 40 : index
    %c0_121 = arith.constant 0 : index
    %124 = vector.load %arg11[%c40_120, %c0_121] : memref<216x1024xbf16, #tpu.memory_space<vmem>>, vector<8x1024xbf16>
    tpu.vector_store %arg11[%c40_120, %c0_121], %123 {strides = array<i32>} : memref<216x1024xbf16, #tpu.memory_space<vmem>>, vector<8x1024xbf16>,
    %c0_122 = arith.constant 0 : index
    %c37 = arith.constant 37 : index
    %125 = vector.load %arg10[%c0_122, %c37] : memref<8x1280xbf16, #tpu.memory_space<vmem>>, vector<8x1024xbf16>
    %c48_123 = arith.constant 48 : index
    %c0_124 = arith.constant 0 : index
    %126 = vector.load %arg11[%c48_123, %c0_124] : memref<216x1024xbf16, #tpu.memory_space<vmem>>, vector<8x1024xbf16>
    tpu.vector_store %arg11[%c48_123, %c0_124], %125 {strides = array<i32>} : memref<216x1024xbf16, #tpu.memory_space<vmem>>, vector<8x1024xbf16>,
    %c0_125 = arith.constant 0 : index
    %c38 = arith.constant 38 : index
    %127 = vector.load %arg10[%c0_125, %c38] : memref<8x1280xbf16, #tpu.memory_space<vmem>>, vector<8x1024xbf16>
    %c56_126 = arith.constant 56 : index
    %c0_127 = arith.constant 0 : index
    %128 = vector.load %arg11[%c56_126, %c0_127] : memref<216x1024xbf16, #tpu.memory_space<vmem>>, vector<8x1024xbf16>
    tpu.vector_store %arg11[%c56_126, %c0_127], %127 {strides = array<i32>} : memref<216x1024xbf16, #tpu.memory_space<vmem>>, vector<8x1024xbf16>,
    %c0_128 = arith.constant 0 : index
    %c39 = arith.constant 39 : index
    %129 = vector.load %arg10[%c0_128, %c39] : memref<8x1280xbf16, #tpu.memory_space<vmem>>, vector<8x1024xbf16>
    %c64_129 = arith.constant 64 : index
    %c0_130 = arith.constant 0 : index
    %130 = vector.load %arg11[%c64_129, %c0_130] : memref<216x1024xbf16, #tpu.memory_space<vmem>>, vector<8x1024xbf16>
    tpu.vector_store %arg11[%c64_129, %c0_130], %129 {strides = array<i32>} : memref<216x1024xbf16, #tpu.memory_space<vmem>>, vector<8x1024xbf16>,
    %c0_131 = arith.constant 0 : index
    %c117 = arith.constant 117 : index
    %131 = vector.load %arg10[%c0_131, %c117] : memref<8x1280xbf16, #tpu.memory_space<vmem>>, vector<8x1024xbf16>
    %c72_132 = arith.constant 72 : index
    %c0_133 = arith.constant 0 : index
    %132 = vector.load %arg11[%c72_132, %c0_133] : memref<216x1024xbf16, #tpu.memory_space<vmem>>, vector<8x1024xbf16>
    tpu.vector_store %arg11[%c72_132, %c0_133], %131 {strides = array<i32>} : memref<216x1024xbf16, #tpu.memory_space<vmem>>, vector<8x1024xbf16>,
    %c0_134 = arith.constant 0 : index
    %c118 = arith.constant 118 : index
    %133 = vector.load %arg10[%c0_134, %c118] : memref<8x1280xbf16, #tpu.memory_space<vmem>>, vector<8x1024xbf16>
    %c80_135 = arith.constant 80 : index
    %c0_136 = arith.constant 0 : index
    %134 = vector.load %arg11[%c80_135, %c0_136] : memref<216x1024xbf16, #tpu.memory_space<vmem>>, vector<8x1024xbf16>
    tpu.vector_store %arg11[%c80_135, %c0_136], %133 {strides = array<i32>} : memref<216x1024xbf16, #tpu.memory_space<vmem>>, vector<8x1024xbf16>,
    %c0_137 = arith.constant 0 : index
    %c119 = arith.constant 119 : index
    %135 = vector.load %arg10[%c0_137, %c119] : memref<8x1280xbf16, #tpu.memory_space<vmem>>, vector<8x1024xbf16>
    %c88_138 = arith.constant 88 : index
    %c0_139 = arith.constant 0 : index
    %136 = vector.load %arg11[%c88_138, %c0_139] : memref<216x1024xbf16, #tpu.memory_space<vmem>>, vector<8x1024xbf16>
    tpu.vector_store %arg11[%c88_138, %c0_139], %135 {strides = array<i32>} : memref<216x1024xbf16, #tpu.memory_space<vmem>>, vector<8x1024xbf16>,
    %c0_140 = arith.constant 0 : index
    %c127 = arith.constant 127 : index
    %137 = vector.load %arg10[%c0_140, %c127] : memref<8x1280xbf16, #tpu.memory_space<vmem>>, vector<8x1024xbf16>
    %c96_141 = arith.constant 96 : index
    %c0_142 = arith.constant 0 : index
    %138 = vector.load %arg11[%c96_141, %c0_142] : memref<216x1024xbf16, #tpu.memory_space<vmem>>, vector<8x1024xbf16>
    tpu.vector_store %arg11[%c96_141, %c0_142], %137 {strides = array<i32>} : memref<216x1024xbf16, #tpu.memory_space<vmem>>, vector<8x1024xbf16>,
    %c0_143 = arith.constant 0 : index
    %c128_144 = arith.constant 128 : index
    %139 = vector.load %arg10[%c0_143, %c128_144] : memref<8x1280xbf16, #tpu.memory_space<vmem>>, vector<8x1024xbf16>
    %c104_145 = arith.constant 104 : index
    %c0_146 = arith.constant 0 : index
    %140 = vector.load %arg11[%c104_145, %c0_146] : memref<216x1024xbf16, #tpu.memory_space<vmem>>, vector<8x1024xbf16>
    tpu.vector_store %arg11[%c104_145, %c0_146], %139 {strides = array<i32>} : memref<216x1024xbf16, #tpu.memory_space<vmem>>, vector<8x1024xbf16>,
    %c0_147 = arith.constant 0 : index
    %c129 = arith.constant 129 : index
    %141 = vector.load %arg10[%c0_147, %c129] : memref<8x1280xbf16, #tpu.memory_space<vmem>>, vector<8x1024xbf16>
    %c112_148 = arith.constant 112 : index
    %c0_149 = arith.constant 0 : index
    %142 = vector.load %arg11[%c112_148, %c0_149] : memref<216x1024xbf16, #tpu.memory_space<vmem>>, vector<8x1024xbf16>
    tpu.vector_store %arg11[%c112_148, %c0_149], %141 {strides = array<i32>} : memref<216x1024xbf16, #tpu.memory_space<vmem>>, vector<8x1024xbf16>,
    %c0_150 = arith.constant 0 : index
    %c137 = arith.constant 137 : index
    %143 = vector.load %arg10[%c0_150, %c137] : memref<8x1280xbf16, #tpu.memory_space<vmem>>, vector<8x1024xbf16>
    %c120_151 = arith.constant 120 : index
    %c0_152 = arith.constant 0 : index
    %144 = vector.load %arg11[%c120_151, %c0_152] : memref<216x1024xbf16, #tpu.memory_space<vmem>>, vector<8x1024xbf16>
    tpu.vector_store %arg11[%c120_151, %c0_152], %143 {strides = array<i32>} : memref<216x1024xbf16, #tpu.memory_space<vmem>>, vector<8x1024xbf16>,
    %c0_153 = arith.constant 0 : index
    %c138 = arith.constant 138 : index
    %145 = vector.load %arg10[%c0_153, %c138] : memref<8x1280xbf16, #tpu.memory_space<vmem>>, vector<8x1024xbf16>
    %c128_154 = arith.constant 128 : index
    %c0_155 = arith.constant 0 : index
    %146 = vector.load %arg11[%c128_154, %c0_155] : memref<216x1024xbf16, #tpu.memory_space<vmem>>, vector<8x1024xbf16>
    tpu.vector_store %arg11[%c128_154, %c0_155], %145 {strides = array<i32>} : memref<216x1024xbf16, #tpu.memory_space<vmem>>, vector<8x1024xbf16>,
    %c0_156 = arith.constant 0 : index
    %c139 = arith.constant 139 : index
    %147 = vector.load %arg10[%c0_156, %c139] : memref<8x1280xbf16, #tpu.memory_space<vmem>>, vector<8x1024xbf16>
    %c136 = arith.constant 136 : index
    %c0_157 = arith.constant 0 : index
    %148 = vector.load %arg11[%c136, %c0_157] : memref<216x1024xbf16, #tpu.memory_space<vmem>>, vector<8x1024xbf16>
    tpu.vector_store %arg11[%c136, %c0_157], %147 {strides = array<i32>} : memref<216x1024xbf16, #tpu.memory_space<vmem>>, vector<8x1024xbf16>,
    %c0_158 = arith.constant 0 : index
    %c217 = arith.constant 217 : index
    %149 = vector.load %arg10[%c0_158, %c217] : memref<8x1280xbf16, #tpu.memory_space<vmem>>, vector<8x1024xbf16>
    %c144 = arith.constant 144 : index
    %c0_159 = arith.constant 0 : index
    %150 = vector.load %arg11[%c144, %c0_159] : memref<216x1024xbf16, #tpu.memory_space<vmem>>, vector<8x1024xbf16>
    tpu.vector_store %arg11[%c144, %c0_159], %149 {strides = array<i32>} : memref<216x1024xbf16, #tpu.memory_space<vmem>>, vector<8x1024xbf16>,
    %c0_160 = arith.constant 0 : index
    %c218 = arith.constant 218 : index
    %151 = vector.load %arg10[%c0_160, %c218] : memref<8x1280xbf16, #tpu.memory_space<vmem>>, vector<8x1024xbf16>
    %c152 = arith.constant 152 : index
    %c0_161 = arith.constant 0 : index
    %152 = vector.load %arg11[%c152, %c0_161] : memref<216x1024xbf16, #tpu.memory_space<vmem>>, vector<8x1024xbf16>
    tpu.vector_store %arg11[%c152, %c0_161], %151 {strides = array<i32>} : memref<216x1024xbf16, #tpu.memory_space<vmem>>, vector<8x1024xbf16>,
    %c0_162 = arith.constant 0 : index
    %c219 = arith.constant 219 : index
    %153 = vector.load %arg10[%c0_162, %c219] : memref<8x1280xbf16, #tpu.memory_space<vmem>>, vector<8x1024xbf16>
    %c160 = arith.constant 160 : index
    %c0_163 = arith.constant 0 : index
    %154 = vector.load %arg11[%c160, %c0_163] : memref<216x1024xbf16, #tpu.memory_space<vmem>>, vector<8x1024xbf16>
    tpu.vector_store %arg11[%c160, %c0_163], %153 {strides = array<i32>} : memref<216x1024xbf16, #tpu.memory_space<vmem>>, vector<8x1024xbf16>,
    %c0_164 = arith.constant 0 : index
    %c227 = arith.constant 227 : index
    %155 = vector.load %arg10[%c0_164, %c227] : memref<8x1280xbf16, #tpu.memory_space<vmem>>, vector<8x1024xbf16>
    %c168 = arith.constant 168 : index
    %c0_165 = arith.constant 0 : index
    %156 = vector.load %arg11[%c168, %c0_165] : memref<216x1024xbf16, #tpu.memory_space<vmem>>, vector<8x1024xbf16>
    tpu.vector_store %arg11[%c168, %c0_165], %155 {strides = array<i32>} : memref<216x1024xbf16, #tpu.memory_space<vmem>>, vector<8x1024xbf16>,
    %c0_166 = arith.constant 0 : index
    %c228 = arith.constant 228 : index
    %157 = vector.load %arg10[%c0_166, %c228] : memref<8x1280xbf16, #tpu.memory_space<vmem>>, vector<8x1024xbf16>
    %c176 = arith.constant 176 : index
    %c0_167 = arith.constant 0 : index
    %158 = vector.load %arg11[%c176, %c0_167] : memref<216x1024xbf16, #tpu.memory_space<vmem>>, vector<8x1024xbf16>
    tpu.vector_store %arg11[%c176, %c0_167], %157 {strides = array<i32>} : memref<216x1024xbf16, #tpu.memory_space<vmem>>, vector<8x1024xbf16>,
    %c0_168 = arith.constant 0 : index
    %c229 = arith.constant 229 : index
    %159 = vector.load %arg10[%c0_168, %c229] : memref<8x1280xbf16, #tpu.memory_space<vmem>>, vector<8x1024xbf16>
    %c184 = arith.constant 184 : index
    %c0_169 = arith.constant 0 : index
    %160 = vector.load %arg11[%c184, %c0_169] : memref<216x1024xbf16, #tpu.memory_space<vmem>>, vector<8x1024xbf16>
    tpu.vector_store %arg11[%c184, %c0_169], %159 {strides = array<i32>} : memref<216x1024xbf16, #tpu.memory_space<vmem>>, vector<8x1024xbf16>,
    %c0_170 = arith.constant 0 : index
    %c237 = arith.constant 237 : index
    %161 = vector.load %arg10[%c0_170, %c237] : memref<8x1280xbf16, #tpu.memory_space<vmem>>, vector<8x1024xbf16>
    %c192 = arith.constant 192 : index
    %c0_171 = arith.constant 0 : index
    %162 = vector.load %arg11[%c192, %c0_171] : memref<216x1024xbf16, #tpu.memory_space<vmem>>, vector<8x1024xbf16>
    tpu.vector_store %arg11[%c192, %c0_171], %161 {strides = array<i32>} : memref<216x1024xbf16, #tpu.memory_space<vmem>>, vector<8x1024xbf16>,
    %c0_172 = arith.constant 0 : index
    %c238 = arith.constant 238 : index
    %163 = vector.load %arg10[%c0_172, %c238] : memref<8x1280xbf16, #tpu.memory_space<vmem>>, vector<8x1024xbf16>
    %c200_173 = arith.constant 200 : index
    %c0_174 = arith.constant 0 : index
    %164 = vector.load %arg11[%c200_173, %c0_174] : memref<216x1024xbf16, #tpu.memory_space<vmem>>, vector<8x1024xbf16>
    tpu.vector_store %arg11[%c200_173, %c0_174], %163 {strides = array<i32>} : memref<216x1024xbf16, #tpu.memory_space<vmem>>, vector<8x1024xbf16>,
    %c0_175 = arith.constant 0 : index
    %c239 = arith.constant 239 : index
    %165 = vector.load %arg10[%c0_175, %c239] : memref<8x1280xbf16, #tpu.memory_space<vmem>>, vector<8x1024xbf16>
    %c208 = arith.constant 208 : index
    %c0_176 = arith.constant 0 : index
    %166 = vector.load %arg11[%c208, %c0_176] : memref<216x1024xbf16, #tpu.memory_space<vmem>>, vector<8x1024xbf16>
    tpu.vector_store %arg11[%c208, %c0_176], %165 {strides = array<i32>} : memref<216x1024xbf16, #tpu.memory_space<vmem>>, vector<8x1024xbf16>,
    %c0_177 = arith.constant 0 : index
    %c0_178 = arith.constant 0 : index
    %167 = vector.load %arg4[%c0_177, %c0_178] : memref<8x216xbf16, #tpu.memory_space<vmem>>, vector<8x216xbf16>
    %c0_179 = arith.constant 0 : index
    %c0_180 = arith.constant 0 : index
    %168 = vector.load %arg11[%c0_179, %c0_180] : memref<216x1024xbf16, #tpu.memory_space<vmem>>, vector<216x1024xbf16>
    %cst_181 = arith.constant dense<0.000000e+00> : vector<8x1024xf32>
    %169 = tpu.matmul %167, %168, %cst_181 {dimension_numbers = #tpu.dot_dimension_numbers<[1], [0], [0], [1], [0, 0, 1, 1], [], []>} : vector<8x216xbf16>, vector<216x1024xbf16>, vector<8x1024xf32> -> vector<8x1024xf32>
    %c0_182 = arith.constant 0 : index
    %c0_183 = arith.constant 0 : index
    %170 = vector.load %arg7[%c0_182, %c0_183] : memref<1x1024xf32, #tpu.memory_space<vmem>>, vector<1x1024xf32>
    %171 = vector.broadcast %170 : vector<1x1024xf32> to vector<8x1024xf32>
    %172 = arith.mulf %169, %171 : vector<8x1024xf32>
    %cst_184 = arith.constant dense<0.000000e+00> : vector<8xf32>
    %173 = vector.multi_reduction <add>, %172, %cst_184 [1] : vector<8x1024xf32> to vector<8xf32>
    %174 = vector.shape_cast %173 : vector<8xf32> to vector<8x1xf32>
    %cst_185 = arith.constant 0.001953125 : f32
    %175 = vector.broadcast %cst_185 : f32 to vector<8x1xf32>
    %176 = arith.mulf %174, %175 : vector<8x1xf32>
    %177 = vector.broadcast %176 : vector<8x1xf32> to vector<8x1024xf32>
    %178 = arith.subf %169, %177 : vector<8x1024xf32>
    %179 = vector.broadcast %170 : vector<1x1024xf32> to vector<8x1024xf32>
    %180 = arith.mulf %178, %179 : vector<8x1024xf32>
    %181 = arith.mulf %180, %180 : vector<8x1024xf32>
    %cst_186 = arith.constant dense<0.000000e+00> : vector<8xf32>
    %182 = vector.multi_reduction <add>, %181, %cst_186 [1] : vector<8x1024xf32> to vector<8xf32>
    %183 = vector.shape_cast %182 : vector<8xf32> to vector<8x1xf32>
    %cst_187 = arith.constant 0.001953125 : f32
    %184 = vector.broadcast %cst_187 : f32 to vector<8x1xf32>
    %185 = arith.mulf %183, %184 : vector<8x1xf32>
    %cst_188 = arith.constant 9.99999974E-6 : f32
    %186 = vector.broadcast %cst_188 : f32 to vector<8x1xf32>
    %187 = arith.addf %185, %186 : vector<8x1xf32>
    %188 = math.rsqrt %187 : vector<8x1xf32>
    %189 = vector.broadcast %188 : vector<8x1xf32> to vector<8x1024xf32>
    %190 = arith.mulf %180, %189 : vector<8x1024xf32>
    %cst_189 = arith.constant 0.000000e+00 : f32
    %191 = vector.broadcast %cst_189 : f32 to vector<8x1024xf32>
    %192 = arith.maximumf %190, %191 : vector<8x1024xf32>
    %c0_190 = arith.constant 0 : index
    %c0_191 = arith.constant 0 : index
    %c0_192 = arith.constant 0 : index
    %193 = vector.load %arg8[%c0_190, %c0_191, %c0_192] : memref<1x8x1024xf32, #tpu.memory_space<vmem>>, vector<1x8x1024xf32>
    %194 = vector.shape_cast %193 : vector<1x8x1024xf32> to vector<8x1024xf32>
    %195 = vector.shape_cast %192 : vector<8x1024xf32> to vector<1x8x1024xf32>
    tpu.vector_store %arg8[%c0_190, %c0_191, %c0_192], %195 {strides = array<i32>} : memref<1x8x1024xf32, #tpu.memory_space<vmem>>, vector<1x8x1024xf32>,
    return
  }
  func.func @transform_0(%arg0: i32) -> (i32, i32, i32) {
    %c0_i32 = arith.constant 0 : i32
    %c0_i32_0 = arith.constant 0 : i32
    %c0_i32_1 = arith.constant 0 : i32
    return %arg0, %c0_i32, %c0_i32_0 : i32, i32, i32
  }
  func.func @transform_1(%arg0: i32) -> (i32, i32) {
    %c0_i32 = arith.constant 0 : i32
    %c0_i32_0 = arith.constant 0 : i32
    %c0_i32_1 = arith.constant 0 : i32
    return %c0_i32, %c0_i32_0 : i32, i32
  }
  func.func @transform_2(%arg0: i32) -> (i32, i32) {
    %c0_i32 = arith.constant 0 : i32
    %c0_i32_0 = arith.constant 0 : i32
    %c0_i32_1 = arith.constant 0 : i32
    return %c0_i32, %c0_i32_0 : i32, i32
  }
  func.func @transform_3(%arg0: i32) -> (i32, i32) {
    %c0_i32 = arith.constant 0 : i32
    %c0_i32_0 = arith.constant 0 : i32
    %c0_i32_1 = arith.constant 0 : i32
    return %c0_i32, %c0_i32_0 : i32, i32
  }
  func.func @transform_4(%arg0: i32) -> (i32, i32) {
    %c0_i32 = arith.constant 0 : i32
    %c0_i32_0 = arith.constant 0 : i32
    %c0_i32_1 = arith.constant 0 : i32
    return %c0_i32, %c0_i32_0 : i32, i32
  }
  func.func @transform_5(%arg0: i32) -> (i32, i32) {
    %c0_i32 = arith.constant 0 : i32
    %c0_i32_0 = arith.constant 0 : i32
    %c0_i32_1 = arith.constant 0 : i32
    return %c0_i32, %c0_i32_0 : i32, i32
  }
  func.func @transform_6(%arg0: i32) -> (i32, i32) {
    %c0_i32 = arith.constant 0 : i32
    %c0_i32_0 = arith.constant 0 : i32
    %c0_i32_1 = arith.constant 0 : i32
    return %c0_i32, %c0_i32_0 : i32, i32
  }
  func.func @transform_7(%arg0: i32) -> (i32, i32, i32) {
    %c0_i32 = arith.constant 0 : i32
    %c0_i32_0 = arith.constant 0 : i32
    %c0_i32_1 = arith.constant 0 : i32
    return %arg0, %c0_i32, %c0_i32_0 : i32, i32, i32
  }
}

</mosaic_0001>

<bundles_post_ra>
// kernel: unet_conv_block.1
= control target key start
LH: loop header
LB: loop body
LE: loop exit
PB: predicated region body
PF: predicated region fallthrough
CT: control target
= control target key end

     0   :  { %s5474_s24 = smov 0   ;;  %s7014_s0 = inlined_call_operand.vmem [shape: bf16[2,4,1280], index: 0, kind: input, shape index: {}]   ;;  %s7015_s1 = inlined_call_operand.vmem [shape: bf16[8,108], index: 1, kind: input, shape index: {}]   ;;  %s7016_s2 = inlined_call_operand.vmem [shape: f32[8,1], index: 2, kind: input, shape index: {}]   ;;  %s7017_s3 = inlined_call_operand.vmem [shape: bf16[8,216], index: 3, kind: input, shape index: {}]   ;;  %s7018_s4 = inlined_call_operand.vmem [shape: f32[8,1], index: 4, kind: input, shape index: {}]   ;;  %s7019_s5 = inlined_call_operand.vmem [shape: f32[1,1024], index: 5, kind: input, shape index: {}, may-alias: {5,6}]   ;;  %s7020_s6 = inlined_call_operand.vmem [shape: f32[1,1024], index: 6, kind: input, shape index: {}, may-alias: {5,6}]   ;;  %s7021_s7 = inlined_call_operand.vmem [shape: f32[2,8,1024], index: 7, kind: output, shape index: {}]  }
   0x1 LB: > { %s5074_s2 = sadd.s32 4294967295, %s5385_s24   ;;  %p5078_p0 = scmp.ge.s32.totalorder %s5385_s24, 1  ;;  %s5385_s24 = sphi %s5474_s24, %s17_s24  }
   0x2   : > { %p237_p1 = scmp.lt.s32.totalorder %s5385_s24, 3 }
   0x4   : > { %p238_p2 = pnand %p5078_p0, %p237_p1 }
   0x5   : > { %p269_p3 = scmp.lt.s32.totalorder (!%p238_p2), %s5074_s2, 1  ;;  %v332_v0 = vlaneseq (!%p238_p2)  ;;  %v5387_v1 = vmov (!%p238_p2), 1983009808   ;;  %s5388_s28 = smov (!%p238_p2), 126   ;;  %vm381_vm0 = vcmask (!%p238_p2), 1043456   ;;  %vm7070_vm1 = vcmask (!%p238_p2), 1039360  }
   0x6   : > { %241 = sbr.rel (%p238_p2) target bundleno = 1875 (0x753), region = 48  ;;  %v330_v2 = vunpack.c.l.s4 (!%p238_p2), %v5387_v1  ;;  %s5389_s29 = smov (!%p238_p2), 127   ;;  %vm7077_vm2 = vcmask (!%p238_p2), 965632   ;;  %vm458_vm3 = vcmask (!%p238_p2), 1031168   ;;  %vm7078_vm4 = vcmask (!%p238_p2), 957440  }
   0x7   : > { %v5484_v3 = vshrl.u32 (!%p238_p2), %v332_v0, 7  ;;  %s5390_s30 = smov (!%p238_p2), 118   ;;  %s5391_s8 = smov (!%p238_p2), 117   ;;  %vm685_vm5 = vcmask (!%p238_p2), 949248   ;;  %vm760_vm6 = vcmask (!%p238_p2), 883712   ;;  %vm836_vm7 = vcmask (!%p238_p2), 875520  }
   0x8   : > { %v331_v4 = vunpack.c.0.s8 (!%p238_p2), %v330_v2  ;;  %s5392_s9 = smov (!%p238_p2), 116   ;;  %s5393_s10 = smov (!%p238_p2), 108   ;;  %vm911_vm8 = vcmask (!%p238_p2), 867328   ;;  %vm7089_vm9 = vcmask (!%p238_p2), 228352   ;;  %vm7095_vm10 = vcmask (!%p238_p2), 220160  }
   0x9   : > { %s5394_s11 = smov (!%p238_p2), 107   ;;  %s5395_s12 = smov (!%p238_p2), 106   ;;  %vm1138_vm11 = vcmask (!%p238_p2), 211968   ;;  %vm7032_vm12 = vcmask (!%p238_p2), 146432   ;;  %vm7033_vm13 = vcmask (!%p238_p2), 138240   ;;  %vm7030_vm14 = vcmask (!%p238_p2), 130048  }
   0xa   : > { %v5488_v5 = vsub.s32 (!%p238_p2), %v331_v4, %v5484_v3  ;;  %s7055_s13 = smov (!%p238_p2), 28   ;;  %s5397_s14 = smov (!%p238_p2), 27   ;;  %vm7031_vm15 = vcmask (!%p238_p2), 64512  }
   0xb   : > { %s5398_s15 = smov (!%p238_p2), 26   ;;  %s5399_s16 = smov (!%p238_p2), 18  }
   0xc   : > { %s5400_s17 = smov (!%p238_p2), 17   ;;  %s5401_s18 = smov (!%p238_p2), 16  }
   0xd   : > { %s7198_s2 = smov (!%p269_p3, %s5074_s2), 1  ;;  %s5402_s19 = smov 8  }
   0xe   : > { %s5296_s4 = smul.u32 20, %s7198_s2  ;;  %s5403_s20 = smov 7  }
   0xf   : > { %s5404_s21 = smov 6   ;;  %s7022_s22 = smov 56  }
  0x10   : > { %s5493_s27 = scalar_lea.vmem %s7014_s0, %s5296_s4  ;;  %s5406_s23 = smov 55  }
  0x11   : > { %v399_v6 = vld [vmem:[%s5493_s27] sm:$0xff]  ;;  %v5507_v11 = vld [vmem:[%s5493_s27 + $0x8] sm:$0xff]  ;;  %s7024_s4 = smov 54   ;;  %s5408_s25 = smov 46  }
  0x12   : > { %v5497_v7 = vrot.slane %v399_v6, %v5488_v5  ;;  %v405_v8 = vcombine.high %v399_v6, %v399_v6  ;;  %v328_v9 = vcombine.low %v399_v6, %v399_v6  ;;  %5082 = vst.sshfl [vmem:[#allocation2] sm:$0xf pattern:$0x76325410] %v399_v6  ;;  %v5515_v12 = vrot.slane %v5507_v11, %v5488_v5  ;;  %v1607_v16 = vld [vmem:[%s5493_s27 + $0x2] sm:$0xff]  ;;  %v5622_v22 = vld [vmem:[%s5493_s27 + $0xa] sm:$0xff] }
  0x13   : > { %v343_v13 = vcombine.low %v5507_v11, %v5507_v11  ;;  %v5605_v17 = vrot.slane %v1607_v16, %v5488_v5  ;;  %v1688_v18 = vcombine.low %v1607_v16, %v1607_v16  ;;  %v1613_v19 = vcombine.high %v1607_v16, %v1607_v16  ;;  %s7026_s26 = smov 45   ;;  %v281_v4 = vld [vmem:[%s5493_s27 + $0x8] sm:$0xff] }
  0x14   : > { %442 = vrot.lane.b32.xlu1 %v5497_v7, %s5388_s28  ;;  %368 = vrot.lane.b32.xlu0 %v5497_v7, %s5389_s29  ;;  %v5504_v10 = vrot.slane %v328_v9, %v5488_v5  ;;  %5083 = vst.sshfl [vmem:[#allocation2 + $0x8] sm:$0xf pattern:$0x76325410] %v405_v8  ;;  %v419_v14 = vrot.slane %v405_v8, %v5488_v5 }
  0x15   : > { %v5525_v15 = vrot.slane %v343_v13, %v5488_v5  ;;  %v5612_v20 = vrot.slane %v1688_v18, %v5488_v5  ;;  %v5615_v21 = vrot.slane %v1613_v19, %v5488_v5  ;;  %v5630_v23 = vrot.slane %v5622_v22, %v5488_v5  ;;  %5084 = vst.sshfl [vmem:[#allocation2 + $0x10] sm:$0xf pattern:$0x76325410] %v281_v4 }
  0x16   : > { %v1703_v24 = vcombine.low %v5622_v22, %v5622_v22 }
  0x18   : > { %520 = vrot.lane.b32.xlu1 %v5497_v7, %s5390_s30  ;;  %366 = vrot.lane.b32.xlu0 %v5504_v10, %s5389_s29  ;;  %v5639_v25 = vrot.slane %v1703_v24, %v5488_v5 }
  0x1c   : > { %446 = vrot.lane.b32.xlu1 %v5515_v12, %s5388_s28  ;;  %518 = vrot.lane.b32.xlu0 %v5504_v10, %s5390_s30 }
  0x20   : > { %444 = vrot.lane.b32.xlu1 %v419_v14, %s5388_s28  ;;  %370 = vrot.lane.b32.xlu0 %v5525_v15, %s5389_s29 }
  0x24   : > { %593 = vrot.lane.b32.xlu1 %v5497_v7, %s5391_s8  ;;  %522 = vrot.lane.b32.xlu0 %v5525_v15, %s5390_s30 }
  0x28   : > { %669 = vrot.lane.b32.xlu1 %v5504_v10, %s5392_s9  ;;  %595 = vrot.lane.b32.xlu0 %v419_v14, %s5391_s8 }
  0x2c   : > { %744 = vrot.lane.b32.xlu1 %v5497_v7, %s5393_s10  ;;  %671 = vrot.lane.b32.xlu0 %v5497_v7, %s5392_s9 }
  0x30   : > { %820 = vrot.lane.b32.xlu1 %v5504_v10, %s5394_s11  ;;  %746 = vrot.lane.b32.xlu0 %v419_v14, %s5393_s10 }
  0x34   : > { %597 = vrot.lane.b32.xlu1 %v5515_v12, %s5391_s8  ;;  %822 = vrot.lane.b32.xlu0 %v5497_v7, %s5394_s11 }
  0x38   : > { %748 = vrot.lane.b32.xlu1 %v5515_v12, %s5393_s10  ;;  %673 = vrot.lane.b32.xlu0 %v5525_v15, %s5392_s9 }
  0x3c   : > { %895 = vrot.lane.b32.xlu1 %v5497_v7, %s5395_s12  ;;  %824 = vrot.lane.b32.xlu0 %v5525_v15, %s5394_s11 }
  0x40   : > { %971 = vrot.lane.b32.xlu1 %v5504_v10, %s7055_s13  ;;  %897 = vrot.lane.b32.xlu0 %v419_v14, %s5395_s12 }
  0x44   : > { %1046 = vrot.lane.b32.xlu1 %v5497_v7, %s5397_s14  ;;  %973 = vrot.lane.b32.xlu0 %v5497_v7, %s7055_s13 }
  0x48   : > { %1122 = vrot.lane.b32.xlu1 %v5504_v10, %s5398_s15  ;;  %1048 = vrot.lane.b32.xlu0 %v419_v14, %s5397_s14 }
  0x4c   : > { %899 = vrot.lane.b32.xlu1 %v5515_v12, %s5395_s12  ;;  %1124 = vrot.lane.b32.xlu0 %v5497_v7, %s5398_s15 }
  0x50   : > { %1050 = vrot.lane.b32.xlu1 %v5515_v12, %s5397_s14  ;;  %975 = vrot.lane.b32.xlu0 %v5525_v15, %s7055_s13 }
  0x54   : > { %1197 = vrot.lane.b32.xlu1 %v5497_v7, %s5399_s16  ;;  %1126 = vrot.lane.b32.xlu0 %v5525_v15, %s5398_s15 }
  0x58   : > { %1273 = vrot.lane.b32.xlu1 %v5504_v10, %s5400_s17  ;;  %1199 = vrot.lane.b32.xlu0 %v419_v14, %s5399_s16 }
  0x5c   : > { %1348 = vrot.lane.b32.xlu1 %v5497_v7, %s5401_s18  ;;  %1275 = vrot.lane.b32.xlu0 %v5497_v7, %s5400_s17 }
  0x60   : > { %1424 = vrot.lane.b32.xlu1 %v5504_v10, %s5402_s19  ;;  %1350 = vrot.lane.b32.xlu0 %v419_v14, %s5401_s18 }
  0x64   : > { %1201 = vrot.lane.b32.xlu1 %v5515_v12, %s5399_s16  ;;  %1426 = vrot.lane.b32.xlu0 %v5497_v7, %s5402_s19 }
  0x68   : > { %1352 = vrot.lane.b32.xlu1 %v5515_v12, %s5401_s18  ;;  %1277 = vrot.lane.b32.xlu0 %v5525_v15, %s5400_s17 }
  0x6c   : > { %1499 = vrot.lane.b32.xlu1 %v5497_v7, %s5403_s20  ;;  %1428 = vrot.lane.b32.xlu0 %v5525_v15, %s5402_s19 }
  0x70   : > { %1575 = vrot.lane.b32.xlu1 %v5504_v10, %s5404_s21  ;;  %1501 = vrot.lane.b32.xlu0 %v419_v14, %s5403_s20 }
  0x74   : > { %1650 = vrot.lane.b32.xlu1 %v5605_v17, %s7022_s22  ;;  %1577 = vrot.lane.b32.xlu0 %v5497_v7, %s5404_s21 }
  0x78   : > { %1726 = vrot.lane.b32.xlu1 %v5612_v20, %s5406_s23  ;;  %1652 = vrot.lane.b32.xlu0 %v5615_v21, %s7022_s22 }
  0x7c   : > { %1503 = vrot.lane.b32.xlu1 %v5515_v12, %s5403_s20  ;;  %1728 = vrot.lane.b32.xlu0 %v5605_v17, %s5406_s23 }
  0x80   : > { %1654 = vrot.lane.b32.xlu1 %v5630_v23, %s7022_s22  ;;  %1579 = vrot.lane.b32.xlu0 %v5525_v15, %s5404_s21  ;;  %s7028_s22 = smov 44  }
  0x84   : > { %1801 = vrot.lane.b32.xlu1 %v5605_v17, %s7024_s4  ;;  %1730 = vrot.lane.b32.xlu0 %v5639_v25, %s5406_s23 }
  0x86   : > { %v443_v26 = vpop.permute.xlu1 %442  ;;  %v369_v27 = vpop.permute.xlu0 %368 }
  0x87   : > { %v377_v30 = vrot.slane %v369_v27, 4  ;;  %v452_v42 = vrot.slane %v443_v26, 4 }
  0x88   : > { %1877 = vrot.lane.b32.xlu1 %v5612_v20, %s5408_s25  ;;  %1803 = vrot.lane.b32.xlu0 %v5615_v21, %s7024_s4 }
  0x8a   : > { %v521_v28 = vpop.permute.xlu1 %520  ;;  %v367_v29 = vpop.permute.xlu0 %366 }
  0x8b   : > { %v376_v31 = vrot.slane %v367_v29, 4  ;;  %v529_v36 = vrot.slane %v521_v28, 4 }
  0x8c   : > { %1952 = vrot.lane.b32.xlu1 %v5605_v17, %s7026_s26  ;;  %1879 = vrot.lane.b32.xlu0 %v5605_v17, %s5408_s25 }
  0x8d   : > { %v382_v32 = vsel %vm381_vm0, %v376_v31, %v377_v30 }
  0x8e   : > { %v384_v33 = vsel %vm7070_vm1, %v367_v29, %v382_v32  ;;  %v5655_v34 = vpop.permute.xlu1 %446  ;;  %v519_v35 = vpop.permute.xlu0 %518 }
  0x8f   : > { %395 = vst [vmem:[#allocation2] sm:$0xcc] %v384_v33  ;;  %v528_v37 = vrot.slane %v519_v35, 4  ;;  %v454_v43 = vrot.slane %v5655_v34, 4 }
  0x90   : > { %2028 = vrot.lane.b32.xlu1 %v5612_v20, %s7028_s22  ;;  %1954 = vrot.lane.b32.xlu0 %v5615_v21, %s7026_s26 }
  0x91   : > { %v533_v38 = vsel %vm381_vm0, %v528_v37, %v529_v36  ;;  %v299_v37 = vcombine.high %v281_v4, %v281_v4 }
  0x92   : > { %v535_v39 = vsel %vm7077_vm2, %v519_v35, %v533_v38  ;;  %v445_v40 = vpop.permute.xlu1 %444  ;;  %v5663_v41 = vpop.permute.xlu0 %370 }
  0x93   : > { %546 = vst [vmem:[#allocation2 + $0x20] sm:$0xcc] %v535_v39  ;;  %v453_v44 = vrot.slane %v445_v40, 4  ;;  %v378_v45 = vrot.slane %v5663_v41, 4 }
  0x94   : > { %1805 = vrot.lane.b32.xlu1 %v5630_v23, %s7024_s4  ;;  %2030 = vrot.lane.b32.xlu0 %v5605_v17, %s7028_s22  ;;  %s5411_s4 = smov 36   ;;  %5085 = vst.sshfl [vmem:[#allocation2 + $0x18] sm:$0xf pattern:$0x76325410] %v299_v37 }
  0x95   : > { %v457_v46 = vsel %vm381_vm0, %v452_v42, %v453_v44  ;;  %v460_v47 = vsel %vm381_vm0, %v453_v44, %v454_v43  ;;  %v385_v48 = vsel %vm381_vm0, %v377_v30, %v378_v45 }
  0x96   : > { %v459_v49 = vsel %vm458_vm3, %v443_v26, %v457_v46  ;;  %v461_v50 = vsel %vm458_vm3, %v445_v40, %v460_v47  ;;  %v386_v51 = vsel %vm7070_vm1, %v369_v27, %v385_v48  ;;  %v594_v52 = vpop.permute.xlu1 %593  ;;  %v5681_v53 = vpop.permute.xlu0 %522  ;;  %v2287_v1 = vld [vmem:[#allocation2] sm:$0xff]  ;;  %v5360_v46 = vld [vmem:[%s5493_s27 + $0x10] ss:$0 sps:$4 sm:$0x33]  }
  0x97   : > { %470 = vst [vmem:[#allocation2 + $0x20] sm:$0x33] %v459_v49  ;;  %471 = vst [vmem:[#allocation2 + $0x28] sm:$0x33] %v461_v50  ;;  %v530_v54 = vrot.slane %v5681_v53, 4  ;;  %v603_v59 = vrot.slane %v594_v52, 4 }
  0x98   : > { %396 = vst [vmem:[#allocation2 + $0x8] sm:$0xcc] %v386_v51  ;;  %1956 = vrot.lane.b32.xlu1 %v5630_v23, %s7026_s26  ;;  %1881 = vrot.lane.b32.xlu0 %v5639_v25, %s5408_s25  ;;  %s5412_s26 = smov 35   ;;  %v5414_v49 = vmov 0  }
  0x99   : > { %v536_v55 = vsel %vm381_vm0, %v529_v36, %v530_v54  ;;  %2676 = vmatprep.mubr.bf16.mxu0 %v5414_v49  ;;  %2920 = vst [vmem:[#allocation3] sm:$0xf] %v5414_v49  ;;  %2921 = vst [vmem:[#allocation3 + $0x24] sm:$0xf] %v5414_v49  ;;  %2717 = vmatprep.mubr.bf16.mxu1 %v5414_v49 }
  0x9a   : > { %v537_v56 = vsel %vm7077_vm2, %v521_v28, %v536_v55  ;;  %v670_v57 = vpop.permute.xlu1 %669  ;;  %v596_v58 = vpop.permute.xlu0 %595 }
  0x9b   : > { %547 = vst [vmem:[#allocation2 + $0x28] sm:$0xcc] %v537_v56  ;;  %v604_v60 = vrot.slane %v596_v58, 4  ;;  %v679_v6 = vrot.slane %v670_v57, 4 }
  0x9c   : > { %2103 = vrot.lane.b32.xlu1 %v5605_v17, %s5411_s4  ;;  %2032 = vrot.lane.b32.xlu0 %v5639_v25, %s7028_s22  ;;  %s5413_s22 = smov 34  }
  0x9d   : > { %v608_v61 = vsel %vm381_vm0, %v603_v59, %v604_v60 }
  0x9e   : > { %v610_v62 = vsel %vm7078_vm4, %v594_v52, %v608_v61  ;;  %v745_v63 = vpop.permute.xlu1 %744  ;;  %v5698_v0 = vpop.permute.xlu0 %671  ;;  %v2291_v2 = vld [vmem:[#allocation2 + $0x20] sm:$0xff] }
  0x9f   : > { %621 = vst [vmem:[#allocation2 + $0x40] sm:$0x33] %v610_v62  ;;  %v680_v7 = vrot.slane %v5698_v0, 4  ;;  %v5100_v8 = vcombine.high %v2287_v1, %v2291_v2  ;;  %v5099_v9 = vcombine.low %v2287_v1, %v2291_v2  ;;  %v2288_v16 = vld [vmem:[#allocation2 + $0x8] sm:$0xff]  ;;  %v754_v19 = vrot.slane %v745_v63, 4 }
  0xa0   : > { %2179 = vrot.lane.b32.xlu1 %v5612_v20, %s5412_s26  ;;  %2105 = vrot.lane.b32.xlu0 %v5615_v21, %s5411_s4  ;;  %v1175_v20 = vcombine.high %v5507_v11, %v5507_v11 }
  0xa1   : > { %v684_v10 = vsel %vm381_vm0, %v679_v6, %v680_v7  ;;  %2644 = vmatprep.subr.bf16.mxu0 %v5100_v8  ;;  %v5775_v8 = vld.sshfl [vmem:[%s5493_s27 + $0x10] sm:$0x3 pattern:$0x76325410] }
  0xa2   : > { %v686_v13 = vsel %vm685_vm5, %v670_v57, %v684_v10  ;;  %v821_v14 = vpop.permute.xlu1 %820  ;;  %v747_v15 = vpop.permute.xlu0 %746  ;;  %2645 = vmatpush1.bf16.msra.mxu0 %v5099_v9  ;;  %v2292_v18 = vld [vmem:[#allocation2 + $0x28] sm:$0xff]  ;;  %v365_v57 = vrot.slane %v5360_v46, %v5488_v5 }
  0xa3   : > { %697 = vst [vmem:[#allocation2 + $0x40] sm:$0xcc] %v686_v13  ;;  %v755_v24 = vrot.slane %v747_v15, 4  ;;  %v5102_v26 = vcombine.high %v2288_v16, %v2292_v18  ;;  %v5101_v27 = vcombine.low %v2288_v16, %v2292_v18  ;;  %v830_v32 = vrot.slane %v821_v14, 4 }
  0xa4   : > { %2254 = vrot.lane.b32.xlu1 %v5605_v17, %s5413_s22  ;;  %2181 = vrot.lane.b32.xlu0 %v5605_v17, %s5412_s26  ;;  %v5724_v17 = vrot.slane %v1175_v20, %v5488_v5 }
  0xa5   : > { %v759_v28 = vsel %vm381_vm0, %v754_v19, %v755_v24  ;;  %2685 = vmatprep.subr.bf16.mxu1 %v5102_v26 }
  0xa6   : > { %v761_v29 = vsel %vm760_vm6, %v745_v63, %v759_v28  ;;  %v5716_v30 = vpop.permute.xlu1 %597  ;;  %v823_v31 = vpop.permute.xlu0 %822  ;;  %2686 = vmatpush1.bf16.msra.mxu1 %v5101_v27 }
  0xa7   : > { %772 = vst [vmem:[#allocation2 + $0x60] sm:$0x33] %v761_v29  ;;  %v605_v11 = vrot.slane %v5716_v30, 4  ;;  %v831_v33 = vrot.slane %v823_v31, 4 }
  0xa8   : > { %372 = vrot.lane.b32.xlu1 %v5515_v12, %s5389_s29  ;;  %2256 = vrot.lane.b32.xlu0 %v5615_v21, %s5413_s22 }
  0xa9   : > { %v611_v35 = vsel %vm381_vm0, %v604_v60, %v605_v11  ;;  %v835_v36 = vsel %vm381_vm0, %v830_v32, %v831_v33  ;;  %v5362_v32 = vld [vmem:[%s5493_s27 + $0x10] ss:$0 sps:$4 sm:$0x33]  }
  0xaa   : > { %v612_v38 = vsel %vm7078_vm4, %v596_v58, %v611_v35  ;;  %v837_v39 = vsel %vm836_vm7, %v821_v14, %v835_v36  ;;  %v5732_v40 = vpop.permute.xlu1 %748  ;;  %v5734_v42 = vpop.permute.xlu0 %673  ;;  %v5361_v58 = vld [vmem:[%s5493_s27 + $0x10] ss:$0 sps:$4 sm:$0x33]   ;;  %v2295_v63 = vld [vmem:[#allocation2 + $0x40] sm:$0xff] }
  0xab   : > { %622 = vst [vmem:[#allocation2 + $0x48] sm:$0x33] %v612_v38  ;;  %848 = vst [vmem:[#allocation2 + $0x60] sm:$0xcc] %v837_v39  ;;  %v756_v21 = vrot.slane %v5732_v40, 4  ;;  %v681_v44 = vrot.slane %v5734_v42, 4  ;;  %v517_v6 = vrot.slane %v5361_v58, %v5488_v5 }
  0xac   : > { %524 = vrot.lane.b32.xlu1 %v5515_v12, %s5390_s30  ;;  %448 = vrot.lane.b32.xlu0 %v5724_v17, %s5388_s28 }
  0xad   : > { %v762_v47 = vsel %vm381_vm0, %v755_v24, %v756_v21  ;;  %v687_v48 = vsel %vm381_vm0, %v680_v7, %v681_v44 }
  0xae   : > { %v763_v50 = vsel %vm760_vm6, %v747_v15, %v762_v47  ;;  %v688_v51 = vsel %vm685_vm5, %v5698_v0, %v687_v48  ;;  %v896_v52 = vpop.permute.xlu1 %895  ;;  %v5756_v55 = vpop.permute.xlu0 %824  ;;  %v668_v47 = vrot.slane %v5362_v32, %v5488_v5  ;;  %v5363_v48 = vld [vmem:[%s5493_s27 + $0x10] ss:$0 sps:$4 sm:$0x33]  }
  0xaf   : > { %773 = vst [vmem:[#allocation2 + $0x68] sm:$0x33] %v763_v50  ;;  %698 = vst [vmem:[#allocation2 + $0x48] sm:$0xcc] %v688_v51  ;;  %v832_v56 = vrot.slane %v5756_v55, 4  ;;  %v905_v1 = vrot.slane %v896_v52, 4 }
  0xb0   : > { %2183 = vrot.lane.b32.xlu1 %v5639_v25, %s5412_s26  ;;  %2107 = vrot.lane.b32.xlu0 %v5630_v23, %s5411_s4 }
  0xb1   : > { %v838_v59 = vsel %vm381_vm0, %v831_v33, %v832_v56 }
  0xb2   : > { %v839_v60 = vsel %vm836_vm7, %v823_v31, %v838_v59  ;;  %v972_v61 = vpop.permute.xlu1 %971  ;;  %v898_v62 = vpop.permute.xlu0 %897  ;;  %v2299_v0 = vld [vmem:[#allocation2 + $0x60] sm:$0xff] }
  0xb3   : > { %849 = vst [vmem:[#allocation2 + $0x68] sm:$0xcc] %v839_v60  ;;  %v906_v25 = vrot.slane %v898_v62, 4  ;;  %v5108_v2 = vcombine.high %v2295_v63, %v2299_v0  ;;  %v5107_v4 = vcombine.low %v2295_v63, %v2299_v0  ;;  %v981_v14 = vrot.slane %v972_v61, 4 }
  0xb4   : > { %374 = vrot.lane.b32.xlu1 %v365_v57, %s5389_s29  ;;  %2258 = vrot.lane.b32.xlu0 %v5630_v23, %s5413_s22  ;;  %v819_v63 = vrot.slane %v5363_v48, %v5488_v5 }
  0xb5   : > { %v910_v7 = vsel %vm381_vm0, %v905_v1, %v906_v25  ;;  %2646 = vmatprep.subr.bf16.mxu0 %v5108_v2 }
  0xb6   : > { %v912_v9 = vsel %vm911_vm8, %v896_v52, %v910_v7  ;;  %v1047_v10 = vpop.permute.xlu1 %1046  ;;  %v974_v13 = vpop.permute.xlu0 %973  ;;  %2647 = vmatpush1.bf16.msra.mxu0 %v5107_v4  ;;  %v2296_v26 = vld [vmem:[#allocation2 + $0x48] sm:$0xff] }
  0xb7   : > { %923 = vst [vmem:[#allocation2 + $0x80] sm:$0x33] %v912_v9  ;;  %v982_v15 = vrot.slane %v974_v13, 4  ;;  %v1056_v20 = vrot.slane %v1047_v10, 4 }
  0xb8   : > { %526 = vrot.lane.b32.xlu1 %v517_v6, %s5390_s30  ;;  %450 = vrot.lane.b32.xlu0 %v5775_v8, %s5388_s28  ;;  %s7098_s28 = smov 56  }
  0xb9   : > { %v986_v16 = vsel %vm381_vm0, %v981_v14, %v982_v15 }
  0xba   : > { %v988_v18 = vsel %vm7089_vm9, %v972_v61, %v986_v16  ;;  %v1123_v19 = vpop.permute.xlu1 %1122  ;;  %v1049_v24 = vpop.permute.xlu0 %1048  ;;  %v2300_v27 = vld [vmem:[#allocation2 + $0x68] sm:$0xff] }
  0xbb   : > { %999 = vst [vmem:[#allocation2 + $0x80] sm:$0xcc] %v988_v18  ;;  %v1057_v28 = vrot.slane %v1049_v24, 4  ;;  %v5110_v29 = vcombine.high %v2296_v26, %v2300_v27  ;;  %v5109_v31 = vcombine.low %v2296_v26, %v2300_v27  ;;  %v1132_v38 = vrot.slane %v1123_v19, 4 }
  0xbc   : > { %675 = vrot.lane.b32.xlu1 %v5515_v12, %s5392_s9  ;;  %599 = vrot.lane.b32.xlu0 %v5724_v17, %s5391_s8  ;;  %v5364_v26 = vld [vmem:[%s5493_s27 + $0x10] ss:$0 sps:$4 sm:$0x33]  }
  0xbd   : > { %v1061_v33 = vsel %vm381_vm0, %v1056_v20, %v1057_v28  ;;  %2687 = vmatprep.subr.bf16.mxu1 %v5110_v29 }
  0xbe   : > { %v1063_v35 = vsel %vm7095_vm10, %v1047_v10, %v1061_v33  ;;  %v5790_v36 = vpop.permute.xlu1 %899  ;;  %v1125_v37 = vpop.permute.xlu0 %1124  ;;  %2688 = vmatpush1.bf16.msra.mxu1 %v5109_v31  ;;  %v970_v33 = vrot.slane %v5364_v26, %v5488_v5 }
  0xbf   : > { %1074 = vst [vmem:[#allocation2 + $0xa0] sm:$0x33] %v1063_v35  ;;  %v907_v39 = vrot.slane %v5790_v36, 4  ;;  %v1133_v46 = vrot.slane %v1125_v37, 4 }
  0xc0   : > { %826 = vrot.lane.b32.xlu1 %v5515_v12, %s5394_s11  ;;  %750 = vrot.lane.b32.xlu0 %v5724_v17, %s5393_s10  ;;  %v5365_v35 = vld [vmem:[%s5493_s27 + $0x10] ss:$0 sps:$4 sm:$0x33]  }
  0xc1   : > { %v913_v50 = vsel %vm381_vm0, %v906_v25, %v907_v39  ;;  %v1137_v51 = vsel %vm381_vm0, %v1132_v38, %v1133_v46 }
  0xc2   : > { %v914_v52 = vsel %vm911_vm8, %v898_v62, %v913_v50  ;;  %v1139_v57 = vsel %vm1138_vm11, %v1123_v19, %v1137_v51  ;;  %v5805_v58 = vpop.permute.xlu1 %1050  ;;  %v5807_v59 = vpop.permute.xlu0 %975  ;;  %v2303_v14 = vld [vmem:[#allocation2 + $0x80] sm:$0xff] }
  0xc3   : > { %924 = vst [vmem:[#allocation2 + $0x88] sm:$0x33] %v914_v52  ;;  %1150 = vst [vmem:[#allocation2 + $0xa0] sm:$0xcc] %v1139_v57  ;;  %v1058_v60 = vrot.slane %v5805_v58, 4  ;;  %v983_v61 = vrot.slane %v5807_v59, 4 }
  0xc4   : > { %677 = vrot.lane.b32.xlu1 %v668_v47, %s5392_s9  ;;  %601 = vrot.lane.b32.xlu0 %v5775_v8, %s5391_s8  ;;  %s7099_s9 = smov 54  }
  0xc5   : > { %v1064_v62 = vsel %vm381_vm0, %v1057_v28, %v1058_v60  ;;  %v989_v0 = vsel %vm381_vm0, %v982_v15, %v983_v61 }
  0xc6   : > { %v1065_v1 = vsel %vm7095_vm10, %v1049_v24, %v1064_v62  ;;  %v990_v25 = vsel %vm7089_vm9, %v974_v13, %v989_v0  ;;  %v1198_v2 = vpop.permute.xlu1 %1197  ;;  %v5823_v4 = vpop.permute.xlu0 %1126  ;;  %v1121_v62 = vrot.slane %v5365_v35, %v5488_v5 }
  0xc7   : > { %1075 = vst [vmem:[#allocation2 + $0xa8] sm:$0x33] %v1065_v1  ;;  %1000 = vst [vmem:[#allocation2 + $0x88] sm:$0xcc] %v990_v25  ;;  %v1134_v6 = vrot.slane %v5823_v4, 4  ;;  %v1207_v16 = vrot.slane %v1198_v2, 4 }
  0xc8   : > { %828 = vrot.lane.b32.xlu1 %v819_v63, %s5394_s11  ;;  %752 = vrot.lane.b32.xlu0 %v5775_v8, %s5393_s10  ;;  %s7100_s10 = smov 44   ;;  %s7101_s11 = smov 45  }
  0xc9   : > { %v1140_v7 = vsel %vm381_vm0, %v1133_v46, %v1134_v6 }
  0xca   : > { %v1141_v9 = vsel %vm1138_vm11, %v1125_v37, %v1140_v7  ;;  %v1274_v10 = vpop.permute.xlu1 %1273  ;;  %v1200_v13 = vpop.permute.xlu0 %1199  ;;  %v2307_v15 = vld [vmem:[#allocation2 + $0xa0] sm:$0xff] }
  0xcb   : > { %1151 = vst [vmem:[#allocation2 + $0xa8] sm:$0xcc] %v1141_v9  ;;  %v1208_v18 = vrot.slane %v1200_v13, 4  ;;  %v5116_v19 = vcombine.high %v2303_v14, %v2307_v15  ;;  %v5115_v24 = vcombine.low %v2303_v14, %v2307_v15  ;;  %v1283_v31 = vrot.slane %v1274_v10, 4 }
  0xcc   : > { %977 = vrot.lane.b32.xlu1 %v5515_v12, %s7055_s13  ;;  %901 = vrot.lane.b32.xlu0 %v5724_v17, %s5395_s12 }
  0xcd   : > { %v1212_v27 = vsel %vm381_vm0, %v1207_v16, %v1208_v18  ;;  %2648 = vmatprep.subr.bf16.mxu0 %v5116_v19 }
  0xce   : > { %v1214_v20 = vsel %vm7032_vm12, %v1198_v2, %v1212_v27  ;;  %v1349_v28 = vpop.permute.xlu1 %1348  ;;  %v1276_v29 = vpop.permute.xlu0 %1275  ;;  %2649 = vmatpush1.bf16.msra.mxu0 %v5115_v24  ;;  %v2304_v48 = vld [vmem:[#allocation2 + $0x88] sm:$0xff] }
  0xcf   : > { %1225 = vst [vmem:[#allocation2 + $0xc0] sm:$0x33] %v1214_v20  ;;  %v1284_v32 = vrot.slane %v1276_v29, 4  ;;  %v1358_v51 = vrot.slane %v1349_v28, 4 }
  0xd0   : > { %1128 = vrot.lane.b32.xlu1 %v5515_v12, %s5398_s15  ;;  %1052 = vrot.lane.b32.xlu0 %v5724_v17, %s5397_s14 }
  0xd1   : > { %v1288_v37 = vsel %vm381_vm0, %v1283_v31, %v1284_v32 }
  0xd2   : > { %v1290_v38 = vsel %vm7033_vm13, %v1274_v10, %v1288_v37  ;;  %v1425_v46 = vpop.permute.xlu1 %1424  ;;  %v1351_v47 = vpop.permute.xlu0 %1350  ;;  %v2308_v50 = vld [vmem:[#allocation2 + $0xa8] sm:$0xff] }
  0xd3   : > { %1301 = vst [vmem:[#allocation2 + $0xc0] sm:$0xcc] %v1290_v38  ;;  %v1359_v52 = vrot.slane %v1351_v47, 4  ;;  %v5118_v57 = vcombine.high %v2304_v48, %v2308_v50  ;;  %v5117_v63 = vcombine.low %v2304_v48, %v2308_v50  ;;  %v1434_v7 = vrot.slane %v1425_v46, 4 }
  0xd4   : > { %979 = vrot.lane.b32.xlu1 %v970_v33, %s7055_s13  ;;  %903 = vrot.lane.b32.xlu0 %v5775_v8, %s5395_s12  ;;  %s7052_s12 = smov 90  }
  0xd5   : > { %v1363_v0 = vsel %vm381_vm0, %v1358_v51, %v1359_v52  ;;  %2689 = vmatprep.subr.bf16.mxu1 %v5118_v57 }
  0xd6   : > { %v1365_v1 = vsel %vm7030_vm14, %v1349_v28, %v1363_v0  ;;  %v5854_v25 = vpop.permute.xlu1 %1201  ;;  %v1427_v2 = vpop.permute.xlu0 %1426  ;;  %2690 = vmatpush1.bf16.msra.mxu1 %v5117_v63 }
  0xd7   : > { %1376 = vst [vmem:[#allocation2 + $0xe0] sm:$0x33] %v1365_v1  ;;  %v1209_v9 = vrot.slane %v5854_v25, 4  ;;  %v1435_v10 = vrot.slane %v1427_v2, 4 }
  0xd8   : > { %1130 = vrot.lane.b32.xlu1 %v1121_v62, %s5398_s15  ;;  %1054 = vrot.lane.b32.xlu0 %v5775_v8, %s5397_s14  ;;  %s5415_s15 = smov 119  }
  0xd9   : > { %v1215_v14 = vsel %vm381_vm0, %v1208_v18, %v1209_v9  ;;  %v1439_v15 = vsel %vm381_vm0, %v1434_v7, %v1435_v10 }
  0xda   : > { %v1216_v16 = vsel %vm7032_vm12, %v1200_v13, %v1215_v14  ;;  %v1441_v19 = vsel %vm7031_vm15, %v1425_v46, %v1439_v15  ;;  %v5866_v24 = vpop.permute.xlu1 %1352  ;;  %v5868_v26 = vpop.permute.xlu0 %1277  ;;  %v5366_v13 = vld [vmem:[%s5493_s27 + $0x10] ss:$0 sps:$4 sm:$0x33]   ;;  %v2311_v51 = vld [vmem:[#allocation2 + $0xc0] sm:$0xff]  ;;  %vm7034_vm12 = vcmask 457728  }
  0xdb   : > { %1226 = vst [vmem:[#allocation2 + $0xc8] sm:$0x33] %v1216_v16  ;;  %1452 = vst [vmem:[#allocation2 + $0xe0] sm:$0xcc] %v1441_v19  ;;  %v1360_v27 = vrot.slane %v5866_v24, 4  ;;  %v1285_v20 = vrot.slane %v5868_v26, 4  ;;  %v1272_v46 = vrot.slane %v5366_v13, %v5488_v5  ;;  %v1628_v19 = vcombine.high %v5622_v22, %v5622_v22 }
  0xdc   : > { %1279 = vrot.lane.b32.xlu1 %v5515_v12, %s5400_s17  ;;  %1203 = vrot.lane.b32.xlu0 %v5724_v17, %s5399_s16 }
  0xdd   : > { %v1366_v18 = vsel %vm381_vm0, %v1359_v52, %v1360_v27  ;;  %v1291_v28 = vsel %vm381_vm0, %v1284_v32, %v1285_v20  ;;  %v5367_v32 = vld [vmem:[%s5493_s27 + $0x10] ss:$0 sps:$4 sm:$0x33]  }
  0xde   : > { %v1367_v31 = vsel %vm7030_vm14, %v1351_v47, %v1366_v18  ;;  %v1292_v33 = vsel %vm7033_vm13, %v1276_v29, %v1291_v28  ;;  %v1500_v35 = vpop.permute.xlu1 %1499  ;;  %v5885_v37 = vpop.permute.xlu0 %1428  ;;  %vm7036_vm14 = vcmask 56320   ;;  %v1423_v1 = vrot.slane %v5367_v32, %v5488_v5 }
  0xdf   : > { %1377 = vst [vmem:[#allocation2 + $0xe8] sm:$0x33] %v1367_v31  ;;  %1302 = vst [vmem:[#allocation2 + $0xc8] sm:$0xcc] %v1292_v33  ;;  %v1436_v38 = vrot.slane %v5885_v37, 4  ;;  %v1509_v57 = vrot.slane %v1500_v35, 4 }
  0xe0   : > { %1430 = vrot.lane.b32.xlu1 %v5515_v12, %s5402_s19  ;;  %1354 = vrot.lane.b32.xlu0 %v5724_v17, %s5401_s18  ;;  %vm7035_vm13 = vcmask 449536  }
  0xe1   : > { %v1442_v29 = vsel %vm381_vm0, %v1435_v10, %v1436_v38 }
  0xe2   : > { %v1443_v47 = vsel %vm7031_vm15, %v1427_v2, %v1442_v29  ;;  %v1576_v48 = vpop.permute.xlu1 %1575  ;;  %v1502_v50 = vpop.permute.xlu0 %1501  ;;  %v2315_v52 = vld [vmem:[#allocation2 + $0xe0] sm:$0xff]  ;;  %vm7038_vm15 = vcmask 48128  }
  0xe3   : > { %1453 = vst [vmem:[#allocation2 + $0xe8] sm:$0xcc] %v1443_v47  ;;  %v1510_v63 = vrot.slane %v1502_v50, 4  ;;  %v5124_v62 = vcombine.high %v2311_v51, %v2315_v52  ;;  %v5123_v0 = vcombine.low %v2311_v51, %v2315_v52  ;;  %v1585_v15 = vrot.slane %v1576_v48, 4 }
  0xe4   : > { %1281 = vrot.lane.b32.xlu1 %v1272_v46, %s5400_s17  ;;  %1205 = vrot.lane.b32.xlu0 %v5775_v8, %s5399_s16  ;;  %v5916_v47 = vrot.slane %v1628_v19, %v5488_v5 }
  0xe5   : > { %v1514_v7 = vsel %vm381_vm0, %v1509_v57, %v1510_v63  ;;  %2650 = vmatprep.subr.bf16.mxu0 %v5124_v62 }
  0xe6   : > { %v1516_v2 = vsel %vm7036_vm14, %v1500_v35, %v1514_v7  ;;  %v1651_v10 = vpop.permute.xlu1 %1650  ;;  %v1578_v14 = vpop.permute.xlu0 %1577  ;;  %2651 = vmatpush1.bf16.msra.mxu0 %v5123_v0  ;;  %v2312_v33 = vld [vmem:[#allocation2 + $0xc8] sm:$0xff]  ;;  %v5369_v7 = vld [vmem:[%s5493_s27 + $0x12] ss:$0 sps:$4 sm:$0x33]  }
  0xe7   : > { %1527 = vst [vmem:[#allocation2 + $0x100] sm:$0x33] %v1516_v2  ;;  %v1586_v16 = vrot.slane %v1578_v14, 4  ;;  %v1660_v46 = vrot.slane %v1651_v10, 4 }
  0xe8   : > { %1432 = vrot.lane.b32.xlu1 %v1423_v1, %s5402_s19  ;;  %1356 = vrot.lane.b32.xlu0 %v5775_v8, %s5401_s18  ;;  %s5429_s18 = smov 89   ;;  %s5430_s19 = smov 11  }
  0xe9   : > { %v1590_v13 = vsel %vm381_vm0, %v1585_v15, %v1586_v16 }
  0xea   : > { %v1592_v18 = vsel %vm7038_vm15, %v1576_v48, %v1590_v13  ;;  %v1727_v28 = vpop.permute.xlu1 %1726  ;;  %v1653_v31 = vpop.permute.xlu0 %1652  ;;  %v2316_v35 = vld [vmem:[#allocation2 + $0xe8] sm:$0xff]  ;;  %v5368_v48 = vld [vmem:[%s5493_s27 + $0x10] ss:$0 sps:$4 sm:$0x33]  }
  0xeb   : > { %1603 = vst [vmem:[#allocation2 + $0x100] sm:$0xcc] %v1592_v18  ;;  %v1661_v32 = vrot.slane %v1653_v31, 4  ;;  %v5126_v29 = vcombine.high %v2312_v33, %v2316_v35  ;;  %v5125_v22 = vcombine.low %v2312_v33, %v2316_v35  ;;  %v1736_v0 = vrot.slane %v1727_v28, 4 }
  0xec   : > { %1581 = vrot.lane.b32.xlu1 %v5515_v12, %s5404_s21  ;;  %1505 = vrot.lane.b32.xlu0 %v5724_v17, %s5403_s20  ;;  %v1574_v1 = vrot.slane %v5368_v48, %v5488_v5 }
  0xed   : > { %v1665_v51 = vsel %vm381_vm0, %v1660_v46, %v1661_v32  ;;  %2691 = vmatprep.subr.bf16.mxu1 %v5126_v29  ;;  %v5953_v46 = vld.sshfl [vmem:[%s5493_s27 + $0x12] sm:$0x3 pattern:$0x76325410] }
  0xee   : > { %v1667_v52 = vsel %vm7034_vm12, %v1651_v10, %v1665_v51  ;;  %v5921_v57 = vpop.permute.xlu1 %1503  ;;  %v1729_v62 = vpop.permute.xlu0 %1728  ;;  %2692 = vmatpush1.bf16.msra.mxu1 %v5125_v22 }
  0xef   : > { %1678 = vst [vmem:[#allocation2 + $0x120] sm:$0x33] %v1667_v52  ;;  %v1511_v12 = vrot.slane %v5921_v57, 4  ;;  %v1737_v17 = vrot.slane %v1729_v62, 4 }
  0xf0   : > { %1732 = vrot.lane.b32.xlu1 %v5630_v23, %s5406_s23  ;;  %1656 = vrot.lane.b32.xlu0 %v5916_v47, %s7098_s28 }
  0xf1   : > { %v1517_v2 = vsel %vm381_vm0, %v1510_v63, %v1511_v12  ;;  %v1741_v10 = vsel %vm381_vm0, %v1736_v0, %v1737_v17  ;;  %v1725_v63 = vrot.slane %v5369_v7, %v5488_v5 }
  0xf2   : > { %v1518_v15 = vsel %vm7036_vm14, %v1502_v50, %v1517_v2  ;;  %v1743_v19 = vsel %vm7035_vm13, %v1727_v28, %v1741_v10  ;;  %v5936_v13 = vpop.permute.xlu1 %1654  ;;  %v5938_v18 = vpop.permute.xlu0 %1579  ;;  %v2319_v52 = vld [vmem:[#allocation2 + $0x100] sm:$0xff]  ;;  %vm7039_vm14 = vcmask 367616  }
  0xf3   : > { %1528 = vst [vmem:[#allocation2 + $0x108] sm:$0x33] %v1518_v15  ;;  %1754 = vst [vmem:[#allocation2 + $0x120] sm:$0xcc] %v1743_v19  ;;  %v7037_v33 = vrot.slane %v5936_v13, 4  ;;  %v1587_v35 = vrot.slane %v5938_v18, 4 }
  0xf4   : > { %1583 = vrot.lane.b32.xlu1 %v1574_v1, %s5404_s21  ;;  %1507 = vrot.lane.b32.xlu0 %v5775_v8, %s5403_s20  ;;  %s5416_s20 = smov 38   ;;  %s5417_s21 = smov 29  }
  0xf5   : > { %v1668_v50 = vsel %vm381_vm0, %v1661_v32, %v7037_v33  ;;  %v1593_v28 = vsel %vm381_vm0, %v1586_v16, %v1587_v35 }
  0xf6   : > { %v1669_v29 = vsel %vm7034_vm12, %v1653_v31, %v1668_v50  ;;  %v1594_v22 = vsel %vm7038_vm15, %v1578_v14, %v1593_v28  ;;  %v1802_v48 = vpop.permute.xlu1 %1801  ;;  %v5957_v51 = vpop.permute.xlu0 %1730  ;;  %vm7042_vm12 = vcmask 441344   ;;  %vm7041_vm15 = vcmask 359424  }
  0xf7   : > { %1679 = vst [vmem:[#allocation2 + $0x128] sm:$0x33] %v1669_v29  ;;  %1604 = vst [vmem:[#allocation2 + $0x108] sm:$0xcc] %v1594_v22  ;;  %v7046_v8 = vrot.slane %v5957_v51, 4  ;;  %v1811_v1 = vrot.slane %v1802_v48, 4 }
  0xf8   : > { %1734 = vrot.lane.b32.xlu1 %v1725_v63, %s5406_s23  ;;  %1658 = vrot.lane.b32.xlu0 %v5953_v46, %s7098_s28  ;;  %v5371_v22 = vld [vmem:[%s5493_s27 + $0x12] ss:$0 sps:$4 sm:$0x33]   ;;  %s5419_s23 = smov 37   ;;  %s5423_s28 = smov 109  }
  0xf9   : > { %v1744_v16 = vsel %vm381_vm0, %v1737_v17, %v7046_v8  ;;  %v5370_v17 = vld [vmem:[%s5493_s27 + $0x12] ss:$0 sps:$4 sm:$0x33]  }
  0xfa   : > { %v1745_v31 = vsel %vm7035_vm13, %v1729_v62, %v1744_v16  ;;  %v1878_v14 = vpop.permute.xlu1 %1877  ;;  %v1804_v32 = vpop.permute.xlu0 %1803  ;;  %v2323_v0 = vld [vmem:[#allocation2 + $0x120] sm:$0xff]  ;;  %vm7047_vm13 = vcmask 375808   ;;  %v1876_v29 = vrot.slane %v5370_v17, %v5488_v5  ;;  %v2027_v17 = vrot.slane %v5371_v22, %v5488_v5 }
  0xfb   : > { %1755 = vst [vmem:[#allocation2 + $0x128] sm:$0xcc] %v1745_v31  ;;  %v1812_v7 = vrot.slane %v1804_v32, 4  ;;  %v5132_v2 = vcombine.high %v2319_v52, %v2323_v0  ;;  %v5131_v10 = vcombine.low %v2319_v52, %v2323_v0  ;;  %v1887_v50 = vrot.slane %v1878_v14, 4 }
  0xfc   : > { %1883 = vrot.lane.b32.xlu1 %v5630_v23, %s5408_s25  ;;  %1807 = vrot.lane.b32.xlu0 %v5916_v47, %s7099_s9 }
  0xfd   : > { %v1816_v62 = vsel %vm381_vm0, %v1811_v1, %v1812_v7  ;;  %2652 = vmatprep.subr.bf16.mxu0 %v5132_v2 }
  0xfe   : > { %v1818_v15 = vsel %vm7042_vm12, %v1802_v48, %v1816_v62  ;;  %v1953_v19 = vpop.permute.xlu1 %1952  ;;  %v1880_v63 = vpop.permute.xlu0 %1879  ;;  %2653 = vmatpush1.bf16.msra.mxu0 %v5131_v10  ;;  %v2320_v0 = vld [vmem:[#allocation2 + $0x108] sm:$0xff] }
  0xff   : > { %1829 = vst [vmem:[#allocation2 + $0x140] sm:$0x33] %v1818_v15  ;;  %v1888_v28 = vrot.slane %v1880_v63, 4  ;;  %v1962_v2 = vrot.slane %v1953_v19, 4 }
 0x100   : > { %2034 = vrot.lane.b32.xlu1 %v5630_v23, %s7100_s10  ;;  %1958 = vrot.lane.b32.xlu0 %v5916_v47, %s7101_s11 }
 0x101   : > { %v1892_v16 = vsel %vm381_vm0, %v1887_v50, %v1888_v28 }
 0x102   : > { %v1894_v48 = vsel %vm7047_vm13, %v1878_v14, %v1892_v16  ;;  %v2029_v31 = vpop.permute.xlu1 %2028  ;;  %v1955_v52 = vpop.permute.xlu0 %1954  ;;  %v2324_v1 = vld [vmem:[#allocation2 + $0x128] sm:$0xff] }
 0x103   : > { %1905 = vst [vmem:[#allocation2 + $0x140] sm:$0xcc] %v1894_v48  ;;  %v1963_v10 = vrot.slane %v1955_v52, 4  ;;  %v5134_v62 = vcombine.high %v2320_v0, %v2324_v1  ;;  %v5133_v15 = vcombine.low %v2320_v0, %v2324_v1  ;;  %v2038_v48 = vrot.slane %v2029_v31, 4 }
 0x104   : > { %1885 = vrot.lane.b32.xlu1 %v1876_v29, %s5408_s25  ;;  %1809 = vrot.lane.b32.xlu0 %v5953_v46, %s7099_s9  ;;  %s5421_s25 = smov 111   ;;  %s5424_s9 = smov 101  }
 0x105   : > { %v1967_v50 = vsel %vm381_vm0, %v1962_v2, %v1963_v10  ;;  %2693 = vmatprep.subr.bf16.mxu1 %v5134_v62 }
 0x106   : > { %v1969_v14 = vsel %vm7039_vm14, %v1953_v19, %v1967_v50  ;;  %v5988_v16 = vpop.permute.xlu1 %1805  ;;  %v2031_v33 = vpop.permute.xlu0 %2030  ;;  %2694 = vmatpush1.bf16.msra.mxu1 %v5133_v15 }
 0x107   : > { %1980 = vst [vmem:[#allocation2 + $0x160] sm:$0x33] %v1969_v14  ;;  %v7044_v0 = vrot.slane %v5988_v16, 4  ;;  %v2039_v29 = vrot.slane %v2031_v33, 4 }
 0x108   : > { %2036 = vrot.lane.b32.xlu1 %v2027_v17, %s7100_s10  ;;  %1960 = vrot.lane.b32.xlu0 %v5953_v46, %s7101_s11  ;;  %s7048_s10 = smov 100   ;;  %s5426_s11 = smov 99  }
 0x109   : > { %v1819_v19 = vsel %vm381_vm0, %v1812_v7, %v7044_v0  ;;  %v2043_v22 = vsel %vm381_vm0, %v2038_v48, %v2039_v29  ;;  %v5372_v7 = vld [vmem:[%s5493_s27 + $0x12] ss:$0 sps:$4 sm:$0x33]   ;;  %s7050_s27 = smov 91  }
 0x10a   : > { %v1820_v1 = vsel %vm7042_vm12, %v1804_v32, %v1819_v19  ;;  %v2045_v2 = vsel %vm7041_vm15, %v2029_v31, %v2043_v22  ;;  %v6000_v62 = vpop.permute.xlu1 %1956  ;;  %v6002_v15 = vpop.permute.xlu0 %1881  ;;  %vm2270_vm12 = vcmask 277504  }
 0x10b   : > { %1830 = vst [vmem:[#allocation2 + $0x148] sm:$0x33] %v1820_v1  ;;  %2056 = vst [vmem:[#allocation2 + $0x160] sm:$0xcc] %v2045_v2  ;;  %v7040_v17 = vrot.slane %v6000_v62, 4  ;;  %v7045_v50 = vrot.slane %v6002_v15, 4 }
 0x10c   : > { %2185 = vrot.lane.b32.xlu1 %v5630_v23, %s5412_s26  ;;  %2109 = vrot.lane.b32.xlu0 %v5916_v47, %s5411_s4  ;;  %v2327_v2 = vld [vmem:[#allocation2 + $0x140] sm:$0xff] }
 0x10d   : > { %v1970_v32 = vsel %vm381_vm0, %v1963_v10, %v7040_v17  ;;  %v1895_v31 = vsel %vm381_vm0, %v1888_v28, %v7045_v50  ;;  %v2178_v10 = vrot.slane %v5372_v7, %v5488_v5 }
 0x10e   : > { %v1971_v14 = vsel %vm7039_vm14, %v1955_v52, %v1970_v32  ;;  %v1896_v48 = vsel %vm7047_vm13, %v1880_v63, %v1895_v31  ;;  %v2104_v19 = vpop.permute.xlu1 %2103  ;;  %v6019_v22 = vpop.permute.xlu0 %2032  ;;  %vm2119_vm14 = vcmask 293888   ;;  %vm2619_vm13 = vcmask 1045504  }
 0x10f   : > { %1981 = vst [vmem:[#allocation2 + $0x168] sm:$0x33] %v1971_v14  ;;  %1906 = vst [vmem:[#allocation2 + $0x148] sm:$0xcc] %v1896_v48  ;;  %v7043_v23 = vrot.slane %v6019_v22, 4  ;;  %v2113_v31 = vrot.slane %v2104_v19, 4 }
 0x110   : > { %2111 = vrot.lane.b32.xlu1 %v5953_v46, %s5411_s4  ;;  %2260 = vrot.lane.b32.xlu0 %v5916_v47, %s5413_s22  ;;  %s7054_s4 = smov 19  }
 0x111   : > { %v2046_v28 = vsel %vm381_vm0, %v2039_v29, %v7043_v23 }
 0x112   : > { %v2047_v63 = vsel %vm7041_vm15, %v2031_v33, %v2046_v28  ;;  %v2180_v52 = vpop.permute.xlu1 %2179  ;;  %v2106_v1 = vpop.permute.xlu0 %2105  ;;  %v2331_v32 = vld [vmem:[#allocation2 + $0x160] sm:$0xff]  ;;  %vm2195_vm15 = vcmask 285696  }
 0x113   : > { %2057 = vst [vmem:[#allocation2 + $0x168] sm:$0xcc] %v2047_v63  ;;  %v2114_v14 = vrot.slane %v2106_v1, 4  ;;  %v5140_v48 = vcombine.high %v2327_v2, %v2331_v32  ;;  %v5139_v17 = vcombine.low %v2327_v2, %v2331_v32  ;;  %v2189_v7 = vrot.slane %v2180_v52, 4 }
 0x114   : > { %2262 = vrot.lane.b32.xlu1 %v5953_v46, %s5413_s22  ;;  %2187 = vrot.lane.b32.xlu0 %v2178_v10, %s5412_s26  ;;  %s5418_s22 = smov 39   ;;  %s5422_s26 = smov 110  }
 0x115   : > { %v2118_v5 = vsel %vm381_vm0, %v2113_v31, %v2114_v14  ;;  %2654 = vmatprep.subr.bf16.mxu0 %v5140_v48 }
 0x116   : > { %v2120_v47 = vsel %vm2119_vm14, %v2104_v19, %v2118_v5  ;;  %v2255_v33 = vpop.permute.xlu1 %2254  ;;  %v2182_v29 = vpop.permute.xlu0 %2181  ;;  %2655 = vmatpush1.bf16.msra.mxu0 %v5139_v17  ;;  %v2328_v23 = vld [vmem:[#allocation2 + $0x148] sm:$0xff] }
 0x117   : > { %2131 = vst [vmem:[#allocation2 + $0x180] sm:$0x33] %v2120_v47  ;;  %v2190_v28 = vrot.slane %v2182_v29, 4  ;;  %v2264_v2 = vrot.slane %v2255_v33, 4 }
 0x119   : > { %v2194_v63 = vsel %vm381_vm0, %v2189_v7, %v2190_v28 }
 0x11a   : > { %v2196_v32 = vsel %vm2195_vm15, %v2180_v52, %v2194_v63  ;;  %v373_v46 = vpop.permute.xlu1 %372  ;;  %v2257_v10 = vpop.permute.xlu0 %2256  ;;  %v2332_v31 = vld [vmem:[#allocation2 + $0x168] sm:$0xff] }
 0x11b   : > { %2207 = vst [vmem:[#allocation2 + $0x180] sm:$0xcc] %v2196_v32  ;;  %v379_v48 = vrot.slane %v373_v46, 4  ;;  %v2265_v19 = vrot.slane %v2257_v10, 4  ;;  %v5142_v5 = vcombine.high %v2328_v23, %v2332_v31  ;;  %v5141_v0 = vcombine.low %v2328_v23, %v2332_v31 }
 0x11d   : > { %v387_v17 = vsel %vm381_vm0, %v378_v45, %v379_v48  ;;  %v2269_v47 = vsel %vm381_vm0, %v2264_v2, %v2265_v19  ;;  %2695 = vmatprep.subr.bf16.mxu1 %v5142_v5 }
 0x11e   : > { %v388_v52 = vsel %vm7070_vm1, %v5663_v41, %v387_v17  ;;  %v2271_v7 = vsel %vm2270_vm12, %v2255_v33, %v2269_v47  ;;  %v525_v63 = vpop.permute.xlu1 %524  ;;  %v449_v50 = vpop.permute.xlu0 %448  ;;  %2696 = vmatpush1.bf16.msra.mxu1 %v5141_v0 }
 0x11f   : > { %397 = vst [vmem:[#allocation2 + $0x10] sm:$0xcc] %v388_v52  ;;  %2282 = vst [vmem:[#allocation2 + $0x1a0] sm:$0x33] %v2271_v7  ;;  %v531_v32 = vrot.slane %v525_v63, 4  ;;  %v455_v8 = vrot.slane %v449_v50, 4 }
 0x121   : > { %v538_v23 = vsel %vm381_vm0, %v530_v54, %v531_v32  ;;  %v462_v45 = vsel %vm381_vm0, %v454_v43, %v455_v8 }
 0x122   : > { %v539_v41 = vsel %vm7077_vm2, %v5681_v53, %v538_v23  ;;  %v463_v33 = vsel %vm458_vm3, %v5655_v34, %v462_v45  ;;  %v6055_v2 = vpop.permute.xlu1 %2183  ;;  %v6057_v0 = vpop.permute.xlu0 %2107  ;;  %v2335_v52 = vld [vmem:[#allocation2 + $0x180] sm:$0xff] }
 0x123   : > { %548 = vst [vmem:[#allocation2 + $0x30] sm:$0xcc] %v539_v41  ;;  %472 = vst [vmem:[#allocation2 + $0x30] sm:$0x33] %v463_v33  ;;  %v2191_v31 = vrot.slane %v6055_v2, 4  ;;  %v2115_v54 = vrot.slane %v6057_v0, 4 }
 0x125   : > { %v2197_v43 = vsel %vm381_vm0, %v2190_v28, %v2191_v31  ;;  %v2121_v53 = vsel %vm381_vm0, %v2114_v14, %v2115_v54 }
 0x126   : > { %v2198_v34 = vsel %vm2195_vm15, %v2182_v29, %v2197_v43  ;;  %v2122_v5 = vsel %vm2119_vm14, %v2106_v1, %v2121_v53  ;;  %v375_v17 = vpop.permute.xlu1 %374  ;;  %v6069_v47 = vpop.permute.xlu0 %2258  ;;  %v2339_v7 = vld [vmem:[#allocation2 + $0x1a0] sm:$0x33] }
 0x127   : > { %2208 = vst [vmem:[#allocation2 + $0x188] sm:$0xcc] %v2198_v34  ;;  %2132 = vst [vmem:[#allocation2 + $0x188] sm:$0x33] %v2122_v5  ;;  %v380_v23 = vrot.slane %v375_v17, 4  ;;  %v2266_v45 = vrot.slane %v6069_v47, 4  ;;  %v5148_v28 = vcombine.high %v2335_v52, %v2339_v7  ;;  %v5147_v41 = vcombine.low %v2335_v52, %v2339_v7 }
 0x128   : > { %v2289_v5 = vld [vmem:[#allocation2 + $0x10] sm:$0xff] }
 0x129   : > { %v389_v33 = vsel %vm381_vm0, %v379_v48, %v380_v23  ;;  %v2272_v14 = vsel %vm381_vm0, %v2265_v19, %v2266_v45  ;;  %5155 = vmatprep.subr.msk.bf16.mxu0 %vm2619_vm13, %v5148_v28  ;;  %v2621_v1 = vsel %vm2619_vm13, %v5147_v41, 0  ;;  %v6083_v48 = vld [vmem:[%s7015_s1] sm:$0xf] }
 0x12a   : > { %v390_v29 = vsel %vm7070_vm1, %v373_v46, %v389_v33  ;;  %v2273_v43 = vsel %vm2270_vm12, %v2257_v10, %v2272_v14  ;;  %v527_v53 = vpop.permute.xlu1 %526  ;;  %v451_v34 = vpop.permute.xlu0 %450  ;;  %2657 = vmatpush1.bf16.msra.mxu0 %v2621_v1  ;;  %v2293_v17 = vld [vmem:[#allocation2 + $0x30] sm:$0xff] }
 0x12b   : > { %398 = vst [vmem:[#allocation2 + $0x18] sm:$0xcc] %v390_v29  ;;  %2283 = vst [vmem:[#allocation2 + $0x1a8] sm:$0x33] %v2273_v43  ;;  %v532_v19 = vrot.slane %v527_v53, 4  ;;  %v456_v52 = vrot.slane %v451_v34, 4  ;;  %v5103_v7 = vcombine.low %v2289_v5, %v2293_v17  ;;  %v5104_v23 = vcombine.high %v2289_v5, %v2293_v17 }
 0x12d   : > { %v540_v46 = vsel %vm381_vm0, %v531_v32, %v532_v19  ;;  %v464_v10 = vsel %vm381_vm0, %v455_v8, %v456_v52  ;;  %2726 = vmatprep.subr.bf16.mxu0 %v5104_v23  ;;  %5156 = vmatmul.mubr.msk.bf16.vlgmr.msra.gmra.mrb[0].mxu0 %vm760_vm6, %v6083_v48 }
 0x12e   : > { %v541_v28 = vsel %vm7077_vm2, %v525_v63, %v540_v46  ;;  %v465_v41 = vsel %vm458_vm3, %v449_v50, %v464_v10  ;;  %v676_v33 = vpop.permute.xlu1 %675  ;;  %v600_v14 = vpop.permute.xlu0 %599  ;;  %2727 = vmatpush1.bf16.msra.mxu0 %v5103_v7  ;;  %2758 = vmatprep.mubr.bf16.mxu0 %v5414_v49  ;;  %v2336_v34 = vld [vmem:[#allocation2 + $0x188] sm:$0xff]  ;;  %vm7102_vm3 = vcmask 138240  }
 0x12f   : > { %549 = vst [vmem:[#allocation2 + $0x38] sm:$0xcc] %v541_v28  ;;  %473 = vst [vmem:[#allocation2 + $0x38] sm:$0x33] %v465_v41  ;;  %v682_v1 = vrot.slane %v676_v33, 4  ;;  %v606_v29 = vrot.slane %v600_v14, 4 }
 0x131   : > { %v689_v8 = vsel %vm381_vm0, %v681_v44, %v682_v1  ;;  %v613_v32 = vsel %vm381_vm0, %v605_v11, %v606_v29 }
 0x132   : > { %v690_v50 = vsel %vm685_vm5, %v5734_v42, %v689_v8  ;;  %v614_v63 = vsel %vm7078_vm4, %v5716_v30, %v613_v32  ;;  %v827_v43 = vpop.permute.xlu1 %826  ;;  %v751_v53 = vpop.permute.xlu0 %750  ;;  %v2340_v5 = vld [vmem:[#allocation2 + $0x1a8] sm:$0x33]  ;;  %v2290_v28 = vld [vmem:[#allocation2 + $0x18] sm:$0xff] }
 0x133   : > { %699 = vst [vmem:[#allocation2 + $0x50] sm:$0xcc] %v690_v50  ;;  %623 = vst [vmem:[#allocation2 + $0x50] sm:$0x33] %v614_v63  ;;  %v833_v17 = vrot.slane %v827_v43, 4  ;;  %v757_v19 = vrot.slane %v751_v53, 4  ;;  %v5150_v52 = vcombine.high %v2336_v34, %v2340_v5  ;;  %v5149_v44 = vcombine.low %v2336_v34, %v2340_v5 }
 0x135   : > { %v840_v11 = vsel %vm381_vm0, %v832_v56, %v833_v17  ;;  %v764_v42 = vsel %vm381_vm0, %v756_v21, %v757_v19  ;;  %5157 = vmatprep.subr.msk.bf16.mxu1 %vm2619_vm13, %v5150_v52  ;;  %v2627_v30 = vsel %vm2619_vm13, %v5149_v44, 0 }
 0x136   : > { %v841_v7 = vsel %vm836_vm7, %v5756_v55, %v840_v11  ;;  %v765_v23 = vsel %vm760_vm6, %v5732_v40, %v764_v42  ;;  %v678_v46 = vpop.permute.xlu1 %677  ;;  %v602_v10 = vpop.permute.xlu0 %601  ;;  %2698 = vmatpush1.bf16.msra.mxu1 %v2627_v30  ;;  %v2294_v41 = vld [vmem:[#allocation2 + $0x38] sm:$0xff] }
 0x137   : > { %850 = vst [vmem:[#allocation2 + $0x70] sm:$0xcc] %v841_v7  ;;  %774 = vst [vmem:[#allocation2 + $0x70] sm:$0x33] %v765_v23  ;;  %v683_v56 = vrot.slane %v678_v46, 4  ;;  %v607_v8 = vrot.slane %v602_v10, 4  ;;  %v5105_v21 = vcombine.low %v2290_v28, %v2294_v41  ;;  %v5106_v32 = vcombine.high %v2290_v28, %v2294_v41 }
 0x139   : > { %v691_v50 = vsel %vm381_vm0, %v682_v1, %v683_v56  ;;  %v615_v63 = vsel %vm381_vm0, %v606_v29, %v607_v8  ;;  %2767 = vmatprep.subr.bf16.mxu1 %v5106_v32  ;;  %5158 = vmatmul.mubr.msk.bf16.vlgmr.msra.gmra.mrb[0].mxu1 %vm760_vm6, %v6083_v48 }
 0x13a   : > { %v692_v40 = vsel %vm685_vm5, %v676_v33, %v691_v50  ;;  %v616_v55 = vsel %vm7078_vm4, %v600_v14, %v615_v63  ;;  %v829_v34 = vpop.permute.xlu1 %828  ;;  %v753_v5 = vpop.permute.xlu0 %752  ;;  %2768 = vmatpush1.bf16.msra.mxu1 %v5105_v21  ;;  %2799 = vmatprep.mubr.bf16.mxu1 %v5414_v49  ;;  %v2297_v14 = vld [vmem:[#allocation2 + $0x50] sm:$0xff]  ;;  %vm7103_vm5 = vcmask 146432  }
 0x13b   : > { %700 = vst [vmem:[#allocation2 + $0x58] sm:$0xcc] %v692_v40  ;;  %624 = vst [vmem:[#allocation2 + $0x58] sm:$0x33] %v616_v55  ;;  %v834_v52 = vrot.slane %v829_v34, 4  ;;  %v758_v44 = vrot.slane %v753_v5, 4 }
 0x13d   : > { %v842_v1 = vsel %vm381_vm0, %v833_v17, %v834_v52  ;;  %v766_v29 = vsel %vm381_vm0, %v757_v19, %v758_v44 }
 0x13e   : > { %v843_v11 = vsel %vm836_vm7, %v827_v43, %v842_v1  ;;  %v767_v42 = vsel %vm760_vm6, %v751_v53, %v766_v29  ;;  %v978_v33 = vpop.permute.xlu1 %977  ;;  %v902_v30 = vpop.permute.xlu0 %901  ;;  %v2301_v7 = vld [vmem:[#allocation2 + $0x70] sm:$0xff]  ;;  %vm7104_vm7 = vcmask 64512  }
 0x13f   : > { %851 = vst [vmem:[#allocation2 + $0x78] sm:$0xcc] %v843_v11  ;;  %775 = vst [vmem:[#allocation2 + $0x78] sm:$0x33] %v767_v42  ;;  %v984_v23 = vrot.slane %v978_v33, 4  ;;  %v908_v49 = vrot.slane %v902_v30, 4  ;;  %v5111_v46 = vcombine.low %v2297_v14, %v2301_v7  ;;  %v5112_v10 = vcombine.high %v2297_v14, %v2301_v7 }
 0x141   : > { %v991_v17 = vsel %vm381_vm0, %v983_v61, %v984_v23  ;;  %v915_v43 = vsel %vm381_vm0, %v907_v39, %v908_v49  ;;  %2728 = vmatprep.subr.bf16.mxu0 %v5112_v10 }
 0x142   : > { %v992_v53 = vsel %vm7089_vm9, %v5807_v59, %v991_v17  ;;  %v916_v19 = vsel %vm911_vm8, %v5790_v36, %v915_v43  ;;  %v1129_v28 = vpop.permute.xlu1 %1128  ;;  %v1053_v41 = vpop.permute.xlu0 %1052  ;;  %2729 = vmatpush1.bf16.msra.mxu0 %v5111_v46  ;;  %v2298_v50 = vld [vmem:[#allocation2 + $0x58] sm:$0xff] }
 0x143   : > { %1001 = vst [vmem:[#allocation2 + $0x90] sm:$0xcc] %v992_v53  ;;  %925 = vst [vmem:[#allocation2 + $0x90] sm:$0x33] %v916_v19  ;;  %v1135_v56 = vrot.slane %v1129_v28, 4  ;;  %v1059_v8 = vrot.slane %v1053_v41, 4 }
 0x145   : > { %v1142_v61 = vsel %vm381_vm0, %v1134_v6, %v1135_v56  ;;  %v1066_v39 = vsel %vm381_vm0, %v1058_v60, %v1059_v8 }
 0x146   : > { %v1143_v59 = vsel %vm1138_vm11, %v5823_v4, %v1142_v61  ;;  %v1067_v36 = vsel %vm7095_vm10, %v5805_v58, %v1066_v39  ;;  %v980_v21 = vpop.permute.xlu1 %979  ;;  %v904_v32 = vpop.permute.xlu0 %903  ;;  %v2302_v63 = vld [vmem:[#allocation2 + $0x78] sm:$0xff] }
 0x147   : > { %1152 = vst [vmem:[#allocation2 + $0xb0] sm:$0xcc] %v1143_v59  ;;  %1076 = vst [vmem:[#allocation2 + $0xb0] sm:$0x33] %v1067_v36  ;;  %v985_v40 = vrot.slane %v980_v21, 4  ;;  %v909_v55 = vrot.slane %v904_v32, 4  ;;  %v5113_v34 = vcombine.low %v2298_v50, %v2302_v63  ;;  %v5114_v6 = vcombine.high %v2298_v50, %v2302_v63 }
 0x149   : > { %v993_v5 = vsel %vm381_vm0, %v984_v23, %v985_v40  ;;  %v917_v60 = vsel %vm381_vm0, %v908_v49, %v909_v55  ;;  %2769 = vmatprep.subr.bf16.mxu1 %v5114_v6 }
 0x14a   : > { %v994_v4 = vsel %vm7089_vm9, %v978_v33, %v993_v5  ;;  %v918_v52 = vsel %vm911_vm8, %v902_v30, %v917_v60  ;;  %v1131_v58 = vpop.permute.xlu1 %1130  ;;  %v1055_v44 = vpop.permute.xlu0 %1054  ;;  %2770 = vmatpush1.bf16.msra.mxu1 %v5113_v34  ;;  %v2305_v33 = vld [vmem:[#allocation2 + $0x90] sm:$0xff]  ;;  %vm7105_vm8 = vcmask 130048  }
 0x14b   : > { %1002 = vst [vmem:[#allocation2 + $0x98] sm:$0xcc] %v994_v4  ;;  %926 = vst [vmem:[#allocation2 + $0x98] sm:$0x33] %v918_v52  ;;  %v1136_v1 = vrot.slane %v1131_v58, 4  ;;  %v1060_v29 = vrot.slane %v1055_v44, 4 }
 0x14d   : > { %v1144_v11 = vsel %vm381_vm0, %v1135_v56, %v1136_v1  ;;  %v1068_v42 = vsel %vm381_vm0, %v1059_v8, %v1060_v29 }
 0x14e   : > { %v1145_v14 = vsel %vm1138_vm11, %v1129_v28, %v1144_v11  ;;  %v1069_v7 = vsel %vm7095_vm10, %v1053_v41, %v1068_v42  ;;  %v1280_v23 = vpop.permute.xlu1 %1279  ;;  %v1204_v49 = vpop.permute.xlu0 %1203  ;;  %v2309_v46 = vld [vmem:[#allocation2 + $0xb0] sm:$0xff]  ;;  %vm7106_vm11 = vmmov %vm7102_vm3 }
 0x14f   : > { %1153 = vst [vmem:[#allocation2 + $0xb8] sm:$0xcc] %v1145_v14  ;;  %1077 = vst [vmem:[#allocation2 + $0xb8] sm:$0x33] %v1069_v7  ;;  %v1286_v30 = vrot.slane %v1280_v23, 4  ;;  %v1210_v10 = vrot.slane %v1204_v49, 4  ;;  %v5119_v17 = vcombine.low %v2305_v33, %v2309_v46  ;;  %v5120_v43 = vcombine.high %v2305_v33, %v2309_v46 }
 0x151   : > { %v1293_v53 = vsel %vm381_vm0, %v1285_v20, %v1286_v30  ;;  %v1217_v19 = vsel %vm381_vm0, %v1209_v9, %v1210_v10  ;;  %2730 = vmatprep.subr.bf16.mxu0 %v5120_v43 }
 0x152   : > { %v1294_v28 = vsel %vm7102_vm3, %v5868_v26, %v1293_v53  ;;  %v1218_v41 = vsel %vm7103_vm5, %v5854_v25, %v1217_v19  ;;  %v1431_v56 = vpop.permute.xlu1 %1430  ;;  %v1355_v8 = vpop.permute.xlu0 %1354  ;;  %2731 = vmatpush1.bf16.msra.mxu0 %v5119_v17  ;;  %v2306_v21 = vld [vmem:[#allocation2 + $0x98] sm:$0xff]  ;;  %vm7107_vm3 = vmmov %vm7103_vm5 }
 0x153   : > { %1303 = vst [vmem:[#allocation2 + $0xd0] sm:$0xcc] %v1294_v28  ;;  %1227 = vst [vmem:[#allocation2 + $0xd0] sm:$0x33] %v1218_v41  ;;  %v1437_v61 = vrot.slane %v1431_v56, 4  ;;  %v1361_v39 = vrot.slane %v1355_v8, 4 }
 0x154   : > { %vm7108_vm5 = vmmov %vm7104_vm7 }
 0x155   : > { %v1444_v20 = vsel %vm381_vm0, %v1436_v38, %v1437_v61  ;;  %v1368_v9 = vsel %vm381_vm0, %v1360_v27, %v1361_v39 }
 0x156   : > { %v1445_v26 = vsel %vm7104_vm7, %v5885_v37, %v1444_v20  ;;  %v1369_v25 = vsel %vm7105_vm8, %v5866_v24, %v1368_v9  ;;  %v1282_v59 = vpop.permute.xlu1 %1281  ;;  %v1206_v36 = vpop.permute.xlu0 %1205  ;;  %v2310_v32 = vld [vmem:[#allocation2 + $0xb8] sm:$0xff]  ;;  %vm7109_vm7 = vmmov %vm7105_vm8  ;;  %vm7110_vm8 = vcmask 48128  }
 0x157   : > { %1454 = vst [vmem:[#allocation2 + $0xf0] sm:$0xcc] %v1445_v26  ;;  %1378 = vst [vmem:[#allocation2 + $0xf0] sm:$0x33] %v1369_v25  ;;  %v1287_v50 = vrot.slane %v1282_v59, 4  ;;  %v1211_v63 = vrot.slane %v1206_v36, 4  ;;  %v5121_v40 = vcombine.low %v2306_v21, %v2310_v32  ;;  %v5122_v38 = vcombine.high %v2306_v21, %v2310_v32 }
 0x159   : > { %v1295_v55 = vsel %vm381_vm0, %v1286_v30, %v1287_v50  ;;  %v1219_v27 = vsel %vm381_vm0, %v1210_v10, %v1211_v63  ;;  %2771 = vmatprep.subr.bf16.mxu1 %v5122_v38 }
 0x15a   : > { %v1296_v37 = vsel %vm7106_vm11, %v1280_v23, %v1295_v55  ;;  %v1220_v34 = vsel %vm7107_vm3, %v1204_v49, %v1219_v27  ;;  %v1433_v24 = vpop.permute.xlu1 %1432  ;;  %v1357_v6 = vpop.permute.xlu0 %1356  ;;  %2772 = vmatpush1.bf16.msra.mxu1 %v5121_v40  ;;  %v2313_v11 = vld [vmem:[#allocation2 + $0xd0] sm:$0xff]  ;;  %vm7111_vm11 = vcmask 56320   ;;  %vm7114_vm3 = vcmask 449536  }
 0x15b   : > { %1304 = vst [vmem:[#allocation2 + $0xd8] sm:$0xcc] %v1296_v37  ;;  %1228 = vst [vmem:[#allocation2 + $0xd8] sm:$0x33] %v1220_v34  ;;  %v1438_v5 = vrot.slane %v1433_v24, 4  ;;  %v1362_v60 = vrot.slane %v1357_v6, 4 }
 0x15d   : > { %v1446_v4 = vsel %vm381_vm0, %v1437_v61, %v1438_v5  ;;  %v1370_v52 = vsel %vm381_vm0, %v1361_v39, %v1362_v60 }
 0x15e   : > { %v1447_v58 = vsel %vm7108_vm5, %v1431_v56, %v1446_v4  ;;  %v1371_v44 = vsel %vm7109_vm7, %v1355_v8, %v1370_v52  ;;  %v1582_v1 = vpop.permute.xlu1 %1581  ;;  %v1506_v29 = vpop.permute.xlu0 %1505  ;;  %v2317_v42 = vld [vmem:[#allocation2 + $0xf0] sm:$0xff]  ;;  %vm7115_vm5 = vcmask 457728   ;;  %vm7116_vm7 = vmmov %vm7110_vm8 }
 0x15f   : > { %1455 = vst [vmem:[#allocation2 + $0xf8] sm:$0xcc] %v1447_v58  ;;  %1379 = vst [vmem:[#allocation2 + $0xf8] sm:$0x33] %v1371_v44  ;;  %v1588_v14 = vrot.slane %v1582_v1, 4  ;;  %v1512_v7 = vrot.slane %v1506_v29, 4  ;;  %v5127_v23 = vcombine.low %v2313_v11, %v2317_v42  ;;  %v5128_v49 = vcombine.high %v2313_v11, %v2317_v42 }
 0x160   : > { %v7120_v58 = vrot.slane %v6002_v15, 4 }
 0x161   : > { %v1595_v33 = vsel %vm381_vm0, %v1587_v35, %v1588_v14  ;;  %v1519_v46 = vsel %vm381_vm0, %v1511_v12, %v1512_v7  ;;  %2732 = vmatprep.subr.bf16.mxu0 %v5128_v49  ;;  %v7112_v35 = vrot.slane %v5957_v51, 4  ;;  %v7113_v12 = vrot.slane %v5936_v13, 4 }
 0x162   : > { %v1596_v30 = vsel %vm7110_vm8, %v5938_v18, %v1595_v33  ;;  %v1520_v10 = vsel %vm7111_vm11, %v5921_v57, %v1519_v46  ;;  %v1733_v17 = vpop.permute.xlu1 %1732  ;;  %v1657_v43 = vpop.permute.xlu0 %1656  ;;  %2733 = vmatpush1.bf16.msra.mxu0 %v5127_v23  ;;  %v2314_v61 = vld [vmem:[#allocation2 + $0xd8] sm:$0xff]  ;;  %vm7117_vm8 = vmmov %vm7111_vm11  ;;  %v7124_v33 = vrot.slane %v6019_v22, 4 }
 0x163   : > { %1605 = vst [vmem:[#allocation2 + $0x110] sm:$0xcc] %v1596_v30  ;;  %1529 = vst [vmem:[#allocation2 + $0x110] sm:$0x33] %v1520_v10  ;;  %v1739_v53 = vrot.slane %v1733_v17, 4  ;;  %v1663_v19 = vrot.slane %v1657_v43, 4 }
 0x164   : > { %vm7118_vm11 = vmmov %vm7114_vm3  ;;  %v7125_v30 = vrot.slane %v6000_v62, 4 }
 0x165   : > { %v1746_v28 = vsel %vm381_vm0, %v7112_v35, %v1739_v53  ;;  %v1670_v41 = vsel %vm381_vm0, %v7113_v12, %v1663_v19 }
 0x166   : > { %v1747_v18 = vsel %vm7114_vm3, %v5957_v51, %v1746_v28  ;;  %v1671_v57 = vsel %vm7115_vm5, %v5936_v13, %v1670_v41  ;;  %v1584_v56 = vpop.permute.xlu1 %1583  ;;  %v1508_v8 = vpop.permute.xlu0 %1507  ;;  %v2318_v39 = vld [vmem:[#allocation2 + $0xf8] sm:$0xff]  ;;  %vm7119_vm3 = vmmov %vm7115_vm5  ;;  %vm7122_vm5 = vcmask 375808  }
 0x167   : > { %1756 = vst [vmem:[#allocation2 + $0x130] sm:$0xcc] %v1747_v18  ;;  %1680 = vst [vmem:[#allocation2 + $0x130] sm:$0x33] %v1671_v57  ;;  %v1589_v20 = vrot.slane %v1584_v56, 4  ;;  %v1513_v9 = vrot.slane %v1508_v8, 4  ;;  %v5129_v26 = vcombine.low %v2314_v61, %v2318_v39  ;;  %v5130_v25 = vcombine.high %v2314_v61, %v2318_v39 }
 0x169   : > { %v1597_v59 = vsel %vm381_vm0, %v1588_v14, %v1589_v20  ;;  %v1521_v36 = vsel %vm381_vm0, %v1512_v7, %v1513_v9  ;;  %2773 = vmatprep.subr.bf16.mxu1 %v5130_v25 }
 0x16a   : > { %v1598_v51 = vsel %vm7116_vm7, %v1582_v1, %v1597_v59  ;;  %v1522_v21 = vsel %vm7117_vm8, %v1506_v29, %v1521_v36  ;;  %v1735_v13 = vpop.permute.xlu1 %1734  ;;  %v1659_v32 = vpop.permute.xlu0 %1658  ;;  %2774 = vmatpush1.bf16.msra.mxu1 %v5129_v26  ;;  %v2321_v24 = vld [vmem:[#allocation2 + $0x110] sm:$0xff]  ;;  %v7121_v1 = vrot.slane %v5988_v16, 4  ;;  %vm7123_vm7 = vcmask 441344  }
 0x16b   : > { %1606 = vst [vmem:[#allocation2 + $0x118] sm:$0xcc] %v1598_v51  ;;  %1530 = vst [vmem:[#allocation2 + $0x118] sm:$0x33] %v1522_v21  ;;  %v1740_v50 = vrot.slane %v1735_v13, 4  ;;  %v1664_v63 = vrot.slane %v1659_v32, 4 }
 0x16c   : > { %vm7126_vm8 = vcmask 359424  }
 0x16d   : > { %v1748_v40 = vsel %vm381_vm0, %v1739_v53, %v1740_v50  ;;  %v1672_v38 = vsel %vm381_vm0, %v1663_v19, %v1664_v63 }
 0x16e   : > { %v1749_v55 = vsel %vm7118_vm11, %v1733_v17, %v1748_v40  ;;  %v1673_v27 = vsel %vm7119_vm3, %v1657_v43, %v1672_v38  ;;  %v1884_v37 = vpop.permute.xlu1 %1883  ;;  %v1808_v34 = vpop.permute.xlu0 %1807  ;;  %v2325_v6 = vld [vmem:[#allocation2 + $0x130] sm:$0xff]  ;;  %vm7127_vm11 = vcmask 367616   ;;  %vm7128_vm3 = vmmov %vm7122_vm5 }
 0x16f   : > { %1757 = vst [vmem:[#allocation2 + $0x138] sm:$0xcc] %v1749_v55  ;;  %1681 = vst [vmem:[#allocation2 + $0x138] sm:$0x33] %v1673_v27  ;;  %v1890_v5 = vrot.slane %v1884_v37, 4  ;;  %v1814_v60 = vrot.slane %v1808_v34, 4  ;;  %v5135_v4 = vcombine.low %v2321_v24, %v2325_v6  ;;  %v5136_v52 = vcombine.high %v2321_v24, %v2325_v6 }
 0x171   : > { %v1897_v44 = vsel %vm381_vm0, %v7120_v58, %v1890_v5  ;;  %v1821_v29 = vsel %vm381_vm0, %v7121_v1, %v1814_v60  ;;  %2734 = vmatprep.subr.bf16.mxu0 %v5136_v52 }
 0x172   : > { %v1898_v11 = vsel %vm7122_vm5, %v6002_v15, %v1897_v44  ;;  %v1822_v42 = vsel %vm7123_vm7, %v5988_v16, %v1821_v29  ;;  %v2035_v14 = vpop.permute.xlu1 %2034  ;;  %v1959_v7 = vpop.permute.xlu0 %1958  ;;  %2735 = vmatpush1.bf16.msra.mxu0 %v5135_v4  ;;  %v2322_v53 = vld [vmem:[#allocation2 + $0x118] sm:$0xff]  ;;  %vm7129_vm5 = vmmov %vm7123_vm7 }
 0x173   : > { %1907 = vst [vmem:[#allocation2 + $0x150] sm:$0xcc] %v1898_v11  ;;  %1831 = vst [vmem:[#allocation2 + $0x150] sm:$0x33] %v1822_v42  ;;  %v2041_v23 = vrot.slane %v2035_v14, 4  ;;  %v1965_v49 = vrot.slane %v1959_v7, 4 }
 0x174   : > { %vm7130_vm7 = vmmov %vm7126_vm8 }
 0x175   : > { %v2048_v46 = vsel %vm381_vm0, %v7124_v33, %v2041_v23  ;;  %v1972_v10 = vsel %vm381_vm0, %v7125_v30, %v1965_v49 }
 0x176   : > { %v2049_v15 = vsel %vm7126_vm8, %v6019_v22, %v2048_v46  ;;  %v1973_v16 = vsel %vm7127_vm11, %v6000_v62, %v1972_v10  ;;  %v1886_v17 = vpop.permute.xlu1 %1885  ;;  %v1810_v43 = vpop.permute.xlu0 %1809  ;;  %v2326_v19 = vld [vmem:[#allocation2 + $0x138] sm:$0xff]  ;;  %vm7131_vm8 = vmmov %vm7127_vm11  ;;  %vm3194_vm11 = vcmask 809984  }
 0x177   : > { %2058 = vst [vmem:[#allocation2 + $0x170] sm:$0xcc] %v2049_v15  ;;  %1982 = vst [vmem:[#allocation2 + $0x170] sm:$0x33] %v1973_v16  ;;  %v1891_v35 = vrot.slane %v1886_v17, 4  ;;  %v1815_v28 = vrot.slane %v1810_v43, 4  ;;  %v5137_v12 = vcombine.low %v2322_v53, %v2326_v19  ;;  %v5138_v41 = vcombine.high %v2322_v53, %v2326_v19 }
 0x178   : > { %v3557_v17 = vld [vmem:[#allocation3 + $0x24] sm:$0xf]  ;;  %v7068_v53 = vsub.s32 0, %v5484_v3 }
 0x179   : > { %v1899_v18 = vsel %vm381_vm0, %v1890_v5, %v1891_v35  ;;  %v1823_v57 = vsel %vm381_vm0, %v1814_v60, %v1815_v28  ;;  %2775 = vmatprep.subr.bf16.mxu1 %v5138_v41  ;;  %3571 = vrot.lane.b32.xlu1 %v3557_v17, %s5415_s15  ;;  %v3640_v43 = vld [vmem:[#allocation3 + $0x24] sm:$0xf]  ;;  %v7067_v28 = vsub.s32 1, %v5484_v3 }
 0x17a   : > { %v1900_v22 = vsel %vm7128_vm3, %v1884_v37, %v1899_v18  ;;  %v1824_v56 = vsel %vm7129_vm5, %v1808_v34, %v1823_v57  ;;  %v2037_v62 = vpop.permute.xlu1 %2036  ;;  %v1961_v8 = vpop.permute.xlu0 %1960  ;;  %2776 = vmatpush1.bf16.msra.mxu1 %v5137_v12  ;;  %v2329_v51 = vld [vmem:[#allocation2 + $0x150] sm:$0xff]  ;;  %v3723_v19 = vld [vmem:[#allocation3 + $0x24] sm:$0xf]  ;;  %vm4706_vm3 = vcmask 719872   ;;  %vm7057_vm5 = vcmask 744448  }
 0x17b   : > { %1908 = vst [vmem:[#allocation2 + $0x158] sm:$0xcc] %v1900_v22  ;;  %1832 = vst [vmem:[#allocation2 + $0x158] sm:$0x33] %v1824_v56  ;;  %v2042_v61 = vrot.slane %v2037_v62, 4  ;;  %v1966_v39 = vrot.slane %v1961_v8, 4 }
 0x17c   : > { %v2808_v35 = vld [vmem:[%s7019_s5] sm:$0xff] }
 0x17d   : > { %v2050_v20 = vsel %vm381_vm0, %v2041_v23, %v2042_v61  ;;  %v1974_v9 = vsel %vm381_vm0, %v1965_v49, %v1966_v39  ;;  %3654 = vrot.lane.b32.xlu1 %v3640_v43, %s5391_s8  ;;  %v3807_v12 = vld [vmem:[#allocation3 + $0x24] sm:$0xf]  ;;  %v2817_v41 = vrot.slane %v2808_v35, %v7067_v28 }
 0x17e   : > { %v2051_v26 = vsel %vm7130_vm7, %v2035_v14, %v2050_v20  ;;  %v1975_v25 = vsel %vm7131_vm8, %v1959_v7, %v1974_v9  ;;  %v2186_v59 = vpop.permute.xlu1 %2185  ;;  %v2110_v36 = vpop.permute.xlu0 %2109  ;;  %v2333_v21 = vld [vmem:[#allocation2 + $0x170] sm:$0xff]  ;;  %v3890_v56 = vld [vmem:[#allocation3 + $0x24] sm:$0xf]  ;;  %v7066_v20 = vsub.s32 2, %v5484_v3  ;;  %v7065_v9 = vsub.s32 3, %v5484_v3 }
 0x17f   : > { %2059 = vst [vmem:[#allocation2 + $0x178] sm:$0xcc] %v2051_v26  ;;  %1983 = vst [vmem:[#allocation2 + $0x178] sm:$0x33] %v1975_v25  ;;  %v2192_v13 = vrot.slane %v2186_v59, 4  ;;  %v2116_v32 = vrot.slane %v2110_v36, 4  ;;  %v5143_v50 = vcombine.low %v2329_v51, %v2333_v21  ;;  %v5144_v63 = vcombine.high %v2329_v51, %v2333_v21 }
 0x180   : > { %v2821_v26 = vrot.slane %v2808_v35, %v7066_v20  ;;  %v2825_v25 = vrot.slane %v2808_v35, %v7065_v9  ;;  %vm7056_vm7 = vcmask 736256   ;;  %vm7058_vm8 = vcmask 728064  }
 0x181   : > { %v2199_v40 = vsel %vm381_vm0, %v2191_v31, %v2192_v13  ;;  %v2123_v38 = vsel %vm381_vm0, %v2115_v54, %v2116_v32  ;;  %2736 = vmatprep.subr.bf16.mxu0 %v5144_v63  ;;  %3737 = vrot.lane.b32.xlu1 %v3723_v19, %s5416_s20 }
 0x182   : > { %v2200_v55 = vsel %vm2195_vm15, %v6055_v2, %v2199_v40  ;;  %v2124_v27 = vsel %vm2119_vm14, %v6057_v0, %v2123_v38  ;;  %v2112_v37 = vpop.permute.xlu1 %2111  ;;  %v2261_v34 = vpop.permute.xlu0 %2260  ;;  %2737 = vmatpush1.bf16.msra.mxu0 %v5143_v50  ;;  %v2330_v4 = vld [vmem:[#allocation2 + $0x158] sm:$0xff]  ;;  %v7064_v40 = vsub.s32 4, %v5484_v3  ;;  %v7063_v38 = vsub.s32 5, %v5484_v3 }
 0x183   : > { %2209 = vst [vmem:[#allocation2 + $0x190] sm:$0xcc] %v2200_v55  ;;  %2133 = vst [vmem:[#allocation2 + $0x190] sm:$0x33] %v2124_v27  ;;  %v2117_v24 = vrot.slane %v2112_v37, 4  ;;  %v2267_v6 = vrot.slane %v2261_v34, 4 }
 0x184   : > { %v2829_v55 = vrot.slane %v2808_v35, %v7064_v40  ;;  %v7061_v27 = vsub.s32 6, %v5484_v3  ;;  %v2833_v37 = vrot.slane %v2808_v35, %v7063_v38 }
 0x185   : > { %v2125_v31 = vsel %vm381_vm0, %v2116_v32, %v2117_v24  ;;  %v2274_v54 = vsel %vm381_vm0, %v2266_v45, %v2267_v6  ;;  %3821 = vrot.lane.b32.xlu1 %v3807_v12, %s5417_s21 }
 0x186   : > { %v2126_v5 = vsel %vm2119_vm14, %v2110_v36, %v2125_v31  ;;  %v2275_v2 = vsel %vm2270_vm12, %v6069_v47, %v2274_v54  ;;  %v2263_v60 = vpop.permute.xlu1 %2262  ;;  %v2188_v0 = vpop.permute.xlu0 %2187  ;;  %v2334_v52 = vld [vmem:[#allocation2 + $0x178] sm:$0xff]  ;;  %v2837_v54 = vrot.slane %v2808_v35, %v7061_v27  ;;  %vm3110_vm14 = vcmask 826368  }
 0x187   : > { %2134 = vst [vmem:[#allocation2 + $0x198] sm:$0x33] %v2126_v5  ;;  %2284 = vst [vmem:[#allocation2 + $0x1b0] sm:$0x33] %v2275_v2  ;;  %v2268_v58 = vrot.slane %v2263_v60, 4  ;;  %v2193_v44 = vrot.slane %v2188_v0, 4  ;;  %v5145_v1 = vcombine.low %v2330_v4, %v2334_v52  ;;  %v5146_v29 = vcombine.high %v2330_v4, %v2334_v52 }
 0x189   : > { %v2276_v11 = vsel %vm381_vm0, %v2267_v6, %v2268_v58  ;;  %v2201_v42 = vsel %vm381_vm0, %v2192_v13, %v2193_v44  ;;  %2777 = vmatprep.subr.bf16.mxu1 %v5146_v29  ;;  %3904 = vrot.lane.b32.xlu1 %v3890_v56, %s5397_s14 }
 0x18a   : > { %v2277_v45 = vsel %vm2270_vm12, %v2261_v34, %v2276_v11  ;;  %v2202_v14 = vsel %vm2195_vm15, %v2186_v59, %v2201_v42  ;;  %2778 = vmatpush1.bf16.msra.mxu1 %v5145_v1  ;;  %v2337_v47 = vld [vmem:[#allocation2 + $0x190] sm:$0xff]  ;;  %v7059_v34 = vsub.s32 7, %v5484_v3  ;;  %vm3026_vm12 = vcmask 900096  }
 0x18b   : > { %2285 = vst [vmem:[#allocation2 + $0x1b8] sm:$0x33] %v2277_v45  ;;  %2210 = vst [vmem:[#allocation2 + $0x198] sm:$0xcc] %v2202_v14  ;;  %vm3152_vm15 = vcmask 818176  }
 0x18c   : > { %v2841_v60 = vrot.slane %v2808_v35, %v7059_v34 }
 0x18e   : > { %v2341_v7 = vld [vmem:[#allocation2 + $0x1b0] sm:$0x33] }
 0x18f   : > { %v5152_v23 = vcombine.high %v2337_v47, %v2341_v7  ;;  %v5151_v49 = vcombine.low %v2337_v47, %v2341_v7 }
 0x191   : > { %5159 = vmatprep.subr.msk.bf16.mxu0 %vm2619_vm13, %v5152_v23  ;;  %v2633_v33 = vsel %vm2619_vm13, %v5151_v49, 0 }
 0x192   : > { %2739 = vmatpush1.bf16.msra.mxu0 %v2633_v33  ;;  %v2338_v46 = vld [vmem:[#allocation2 + $0x198] sm:$0xff] }
 0x193   : > { %v2342_v30 = vld [vmem:[#allocation2 + $0x1b8] sm:$0x33] }
 0x194   : > { %v5154_v10 = vcombine.high %v2338_v46, %v2342_v30  ;;  %v5153_v15 = vcombine.low %v2338_v46, %v2342_v30 }
 0x195   : > { %5160 = vmatmul.mubr.msk.bf16.vlgmr.msra.gmra.mrb[4].mxu0 %vm760_vm6, %v6083_v48 }
 0x196   : > { %5161 = vmatprep.subr.msk.bf16.mxu1 %vm2619_vm13, %v5154_v10  ;;  %v2639_v16 = vsel %vm2619_vm13, %v5153_v15, 0  ;;  %vm3068_vm13 = vcmask 891904  }
 0x197   : > { %2780 = vmatpush1.bf16.msra.mxu1 %v2639_v16 }
 0x19a   : > { %5162 = vmatmul.mubr.msk.bf16.vlgmr.msra.gmra.mrb[4].mxu1 %vm760_vm6, %v6083_v48  ;;  %v2813_v48 = vrot.slane %v2808_v35, %v7068_v53  ;;  %vm2984_vm6 = vcmask 908288  }
 0x200   : > { %v2678_v18 = vpop.f32.mrb[0].mxu0 }
 0x201   : > { %v2850_v57 = vmul.f32 %v2813_v48, %v2678_v18  ;;  %v2680_v22 = vpop.f32.mrb[1].mxu0 }
 0x202   : > { %v2851_v62 = vmul.f32 %v2817_v41, %v2680_v22  ;;  %v2682_v8 = vpop.f32.mrb[2].mxu0 }
 0x203   : > { %v2683_v61 = vpop.f32.mrb[3].mxu0 }
 0x204   : > { %v2858_v39 = vadd.f32 %v2851_v62, %v2850_v57 }
 0x20c   : > { %v2719_v59 = vpop.f32.mrb[0].mxu1 }
 0x20d   : > { %v2852_v36 = vmul.f32 %v2821_v26, %v2719_v59  ;;  %v2721_v51 = vpop.f32.mrb[1].mxu1 }
 0x20e   : > { %v2853_v21 = vmul.f32 %v2825_v25, %v2721_v51  ;;  %v2723_v13 = vpop.f32.mrb[2].mxu1 }
 0x20f   : > { %v2859_v32 = vadd.f32 %v2858_v39, %v2852_v36  ;;  %v2724_v50 = vpop.f32.mrb[3].mxu1 }
 0x210   : > { %v3516_v50 = vld [vmem:[#allocation3 + $0x24] sm:$0xf] }
 0x211   : > { %v2860_v63 = vadd.f32 %v2859_v32, %v2853_v21 }
 0x268   : > { %v2760_v24 = vpop.f32.mrb[4].mxu0 }
 0x269   : > { %v2854_v6 = vmul.f32 %v2829_v55, %v2760_v24  ;;  %v2762_v31 = vpop.f32.mrb[5].mxu0 }
 0x26a   : > { %v2855_v5 = vmul.f32 %v2833_v37, %v2762_v31  ;;  %v2764_v2 = vpop.f32.mrb[6].mxu0 }
 0x26b   : > { %v2861_v0 = vadd.f32 %v2860_v63, %v2854_v6  ;;  %v2765_v4 = vpop.f32.mrb[7].mxu0  ;;  %v3599_v63 = vld [vmem:[#allocation3 + $0x24] sm:$0xf] }
 0x26c   : > { %v3931_v6 = vld [vmem:[#allocation3 + $0x24] sm:$0xf] }
 0x26d   : > { %v2801_v52 = vpop.f32.mrb[4].mxu1  ;;  %v2862_v58 = vadd.f32 %v2861_v0, %v2855_v5 }
 0x26e   : > { %v2856_v44 = vmul.f32 %v2837_v54, %v2801_v52  ;;  %v2803_v1 = vpop.f32.mrb[5].mxu1 }
 0x26f   : > { %v2857_v29 = vmul.f32 %v2841_v60, %v2803_v1  ;;  %v2805_v11 = vpop.f32.mrb[6].mxu1 }
 0x270   : > { %v2863_v42 = vadd.f32 %v2862_v58, %v2856_v44  ;;  %v2806_v45 = vpop.f32.mrb[7].mxu1 }
 0x272   : > { %v2864_v14 = vadd.f32 %v2863_v42, %v2857_v29 }
 0x274   : > { %2865 = vadd.xlane.f32.xlu0 %v2864_v14 }
 0x28a   : > { %3530 = vrot.lane.b32.xlu0 %v3516_v50, %s5389_s29 }
 0x28e   : > { %3613 = vrot.lane.b32.xlu0 %v3599_v63, %s5390_s30 }
 0x301   : > { %v2866_v47 = vpop.xlane.xlu0 %2865 }
 0x302   : > { %v2867_v7 = vmul.f32 0.001953125, %v2866_v47 }
 0x304   : > { %v2868_v23 = vsub.f32 %v2678_v18, %v2867_v7  ;;  %v2869_v49 = vsub.f32 %v2680_v22, %v2867_v7  ;;  %v2870_v33 = vsub.f32 %v2719_v59, %v2867_v7  ;;  %v2871_v46 = vsub.f32 %v2721_v51, %v2867_v7 }
 0x305   : > { %v2872_v30 = vsub.f32 %v2760_v24, %v2867_v7  ;;  %v2873_v17 = vsub.f32 %v2762_v31, %v2867_v7  ;;  %v2874_v12 = vsub.f32 %v2801_v52, %v2867_v7  ;;  %v2875_v8 = vsub.f32 %v2803_v1, %v2867_v7  ;;  %v3849_v24 = vld [vmem:[#allocation3 + $0x24] sm:$0xf]  ;;  %v6304_v31 = vpop.permute.xlu1 %3571 }
 0x306   : > { %v2876_v10 = vmul.f32 %v2868_v23, %v2813_v48  ;;  %v2877_v15 = vmul.f32 %v2869_v49, %v2817_v41  ;;  %v2878_v16 = vmul.f32 %v2870_v33, %v2821_v26  ;;  %v2879_v43 = vmul.f32 %v2871_v46, %v2825_v25 }
 0x307   : > { %v2880_v57 = vmul.f32 %v2872_v30, %v2829_v55  ;;  %v2881_v61 = vmul.f32 %v2873_v17, %v2833_v37  ;;  %v2882_v18 = vmul.f32 %v2874_v12, %v2837_v54  ;;  %v2883_v51 = vmul.f32 %v2875_v8, %v2841_v60  ;;  %v3681_v55 = vld [vmem:[#allocation3 + $0x24] sm:$0xf] }
 0x308   : > { %v2884_v19 = vmul.f32 %v2876_v10, %v2876_v10  ;;  %v2885_v35 = vmul.f32 %v2877_v15, %v2877_v15  ;;  %v2886_v56 = vmul.f32 %v2878_v16, %v2878_v16  ;;  %v2887_v39 = vmul.f32 %v2879_v43, %v2879_v43  ;;  %3695 = vrot.lane.b32.xlu0 %v3681_v55, %s5418_s22  ;;  %v3765_v37 = vld [vmem:[#allocation3 + $0x24] sm:$0xf] }
 0x309   : > { %v2888_v22 = vmul.f32 %v2880_v57, %v2880_v57  ;;  %v2889_v21 = vmul.f32 %v2881_v61, %v2881_v61  ;;  %v2890_v41 = vmul.f32 %v2882_v18, %v2882_v18  ;;  %v2891_v13 = vmul.f32 %v2883_v51, %v2883_v51  ;;  %v6306_v54 = vpop.permute.xlu1 %3654 }
 0x30a   : > { %v2892_v62 = vadd.f32 %v2885_v35, %v2884_v19 }
 0x30c   : > { %v2893_v36 = vadd.f32 %v2892_v62, %v2886_v56  ;;  %3779 = vrot.lane.b32.xlu0 %v3765_v37, %s5419_s23  ;;  %v6367_v56 = vpop.permute.xlu0 %3530 }
 0x30d   : > { %v6308_v5 = vpop.permute.xlu1 %3737 }
 0x30e   : > { %v2894_v59 = vadd.f32 %v2893_v36, %v2887_v39 }
 0x310   : > { %v2895_v48 = vadd.f32 %v2894_v59, %v2888_v22  ;;  %3863 = vrot.lane.b32.xlu0 %v3849_v24, %s7055_s13  ;;  %v6377_v62 = vpop.permute.xlu0 %3613 }
 0x311   : > { %v6310_v2 = vpop.permute.xlu1 %3821 }
 0x312   : > { %v2896_v26 = vadd.f32 %v2895_v48, %v2889_v21 }
 0x314   : > { %v2897_v25 = vadd.f32 %v2896_v26, %v2890_v41  ;;  %3945 = vrot.lane.b32.xlu0 %v3931_v6, %s7054_s4 }
 0x315   : > { %v6312_v60 = vpop.permute.xlu1 %3904 }
 0x316   : > { %v2898_v32 = vadd.f32 %v2897_v25, %v2891_v13 }
 0x318   : > { %2899 = vadd.xlane.f32.xlu1 %v2898_v32 }
 0x37a   : > { %v6383_v8 = vpop.permute.xlu0 %3695 }
 0x3a5   : > { %v2900_v0 = vpop.xlane.xlu1 %2899 }
 0x3a6   : > { %v2901_v4 = vmul.f32 0.001953125, %v2900_v0 }
 0x3a8   : > { %v2902_v52 = vadd.f32 1e-05, %v2901_v4 }
 0x3aa   : > { %5375 = vrsqrt.f32 %v2902_v52 }
 0x3b4   : > { %v5376_v58 = vpop.eup %5375 }
 0x3b5   : > { %v2904_v44 = vmul.f32 %v5376_v58, %v2876_v10  ;;  %v2905_v1 = vmul.f32 %v5376_v58, %v2877_v15  ;;  %v2906_v29 = vmul.f32 %v5376_v58, %v2878_v16  ;;  %v2907_v11 = vmul.f32 %v5376_v58, %v2879_v43 }
 0x3b6   : > { %v2908_v42 = vmul.f32 %v5376_v58, %v2880_v57  ;;  %v2909_v45 = vmul.f32 %v5376_v58, %v2881_v61  ;;  %v2910_v14 = vmul.f32 %v5376_v58, %v2882_v18  ;;  %v2911_v30 = vmul.f32 %v5376_v58, %v2883_v51  ;;  %v6393_v61 = vpop.permute.xlu0 %3779 }
 0x3b7   : > { %v2912_v47 = vmax.f32 %v2904_v44, 0.0  ;;  %v2913_v7 = vmax.f32 %v2905_v1, 0.0  ;;  %v2914_v23 = vmax.f32 %v2906_v29, 0.0  ;;  %v2915_v49 = vmax.f32 %v2907_v11, 0.0 }
 0x3b8   : > { %v2916_v33 = vmax.f32 %v2908_v42, 0.0  ;;  %v2917_v46 = vmax.f32 %v2909_v45, 0.0  ;;  %v2918_v17 = vmax.f32 %v2910_v14, 0.0  ;;  %v2919_v10 = vmax.f32 %v2911_v30, 0.0 }
 0x3b9   : > { %v6314_v19 = vpack.c.bf16 %v2913_v7, %v2912_v47  ;;  %v6316_v35 = vpack.c.bf16 %v2915_v49, %v2914_v23 }
 0x3ba   : > { %v6318_v12 = vpack.c.bf16 %v2917_v46, %v2916_v33  ;;  %v6323_v15 = vpack.c.bf16 %v2919_v10, %v2918_v17  ;;  %v6399_v39 = vpop.permute.xlu0 %3863 }
 0x3bb   : > { %2954 = vst [vmem:[#allocation3 + $0x4] sm:$0xff] %v6314_v19  ;;  %2955 = vst [vmem:[#allocation3 + $0xc] sm:$0xff] %v6316_v35 }
 0x3bc   : > { %2956 = vst [vmem:[#allocation3 + $0x14] sm:$0xff] %v6318_v12  ;;  %2957 = vst [vmem:[#allocation3 + $0x1c] sm:$0xff] %v6323_v15 }
 0x3be   : > { %v6409_v36 = vpop.permute.xlu0 %3945 }
 0x3c2   : > { %v2959_v16 = vld [vmem:[#allocation3 + $0x8] sm:$0xff]  ;;  %v2958_v43 = vld [vmem:[#allocation3] sm:$0xff] }
 0x3c3   : > { %2970 = vrot.lane.b32.xlu1 %v2959_v16, %s5421_s25  ;;  %2968 = vrot.lane.b32.xlu0 %v2958_v43, %s5421_s25  ;;  %v3002_v57 = vld [vmem:[#allocation3 + $0x10] sm:$0xff]  ;;  %v3214_v34 = vld [vmem:[#allocation3 + $0x20] sm:$0xf] }
 0x3c4   : > { %v3466_v20 = vld [vmem:[#allocation3 + $0x20] sm:$0xf] }
 0x3c7   : > { %3012 = vrot.lane.b32.xlu1 %v2959_v16, %s5422_s26  ;;  %3010 = vrot.lane.b32.xlu0 %v2958_v43, %s5422_s26 }
 0x3cb   : > { %3014 = vrot.lane.b32.xlu1 %v3002_v57, %s5422_s26  ;;  %2972 = vrot.lane.b32.xlu0 %v3002_v57, %s5421_s25 }
 0x3cf   : > { %3054 = vrot.lane.b32.xlu1 %v2959_v16, %s5423_s28  ;;  %3052 = vrot.lane.b32.xlu0 %v2958_v43, %s5423_s28 }
 0x3d3   : > { %3096 = vrot.lane.b32.xlu1 %v2959_v16, %s5424_s9  ;;  %3094 = vrot.lane.b32.xlu0 %v2958_v43, %s5424_s9 }
 0x3d7   : > { %3098 = vrot.lane.b32.xlu1 %v3002_v57, %s5424_s9  ;;  %3056 = vrot.lane.b32.xlu0 %v3002_v57, %s5423_s28 }
 0x3db   : > { %3138 = vrot.lane.b32.xlu1 %v2959_v16, %s7048_s10  ;;  %3136 = vrot.lane.b32.xlu0 %v2958_v43, %s7048_s10 }
 0x3df   : > { %3180 = vrot.lane.b32.xlu1 %v2959_v16, %s5426_s11  ;;  %3178 = vrot.lane.b32.xlu0 %v2958_v43, %s5426_s11 }
 0x3e3   : > { %3182 = vrot.lane.b32.xlu1 %v3002_v57, %s5426_s11  ;;  %3140 = vrot.lane.b32.xlu0 %v3002_v57, %s7048_s10  ;;  %s5431_s10 = smov 10  }
 0x3e7   : > { %3222 = vrot.lane.b32.xlu1 %v2959_v16, %s7050_s27  ;;  %3220 = vrot.lane.b32.xlu0 %v2958_v43, %s7050_s27 }
 0x3eb   : > { %3264 = vrot.lane.b32.xlu1 %v2959_v16, %s7052_s12  ;;  %3262 = vrot.lane.b32.xlu0 %v2958_v43, %s7052_s12 }
 0x3ef   : > { %3266 = vrot.lane.b32.xlu1 %v3002_v57, %s7052_s12  ;;  %3224 = vrot.lane.b32.xlu0 %v3002_v57, %s7050_s27  ;;  %s5432_s27 = smov 9   ;;  %s5433_s12 = smov 1  }
 0x3f3   : > { %3306 = vrot.lane.b32.xlu1 %v2959_v16, %s5429_s18  ;;  %3304 = vrot.lane.b32.xlu0 %v2958_v43, %s5429_s18 }
 0x3f7   : > { %3348 = vrot.lane.b32.xlu1 %v2959_v16, %s5430_s19  ;;  %3346 = vrot.lane.b32.xlu0 %v2958_v43, %s5430_s19 }
 0x3fb   : > { %3350 = vrot.lane.b32.xlu1 %v3002_v57, %s5430_s19  ;;  %3308 = vrot.lane.b32.xlu0 %v3002_v57, %s5429_s18 }
 0x3ff   : > { %3390 = vrot.lane.b32.xlu1 %v2959_v16, %s5431_s10  ;;  %3388 = vrot.lane.b32.xlu0 %v2958_v43, %s5431_s10 }
 0x403   : > { %3432 = vrot.lane.b32.xlu1 %v2959_v16, %s5432_s27  ;;  %3430 = vrot.lane.b32.xlu0 %v2958_v43, %s5432_s27 }
 0x407   : > { %3434 = vrot.lane.b32.xlu1 %v3002_v57, %s5432_s27  ;;  %3392 = vrot.lane.b32.xlu0 %v3002_v57, %s5431_s10 }
 0x40b   : > { %3474 = vrot.lane.b32.xlu1 %v2959_v16, %s5433_s12  ;;  %3472 = vrot.lane.b32.xlu0 %v2958_v43, %s5433_s12 }
 0x40f   : > { %3522 = vrot.lane.b32.xlu1 %v6314_v19, %s5389_s29  ;;  %3476 = vrot.lane.b32.xlu0 %v3002_v57, %s5433_s12 }
 0x413   : > { %3563 = vrot.lane.b32.xlu1 %v6314_v19, %s5415_s15  ;;  %3524 = vrot.lane.b32.xlu0 %v6316_v35, %s5389_s29 }
 0x417   : > { %3526 = vrot.lane.b32.xlu1 %v6318_v12, %s5389_s29  ;;  %3565 = vrot.lane.b32.xlu0 %v6316_v35, %s5415_s15 }
 0x41b   : > { %3605 = vrot.lane.b32.xlu1 %v6314_v19, %s5390_s30  ;;  %3567 = vrot.lane.b32.xlu0 %v6318_v12, %s5415_s15 }
 0x41f   : > { %3646 = vrot.lane.b32.xlu1 %v6314_v19, %s5391_s8  ;;  %3607 = vrot.lane.b32.xlu0 %v6316_v35, %s5390_s30 }
 0x423   : > { %3609 = vrot.lane.b32.xlu1 %v6318_v12, %s5390_s30  ;;  %3648 = vrot.lane.b32.xlu0 %v6316_v35, %s5391_s8 }
 0x427   : > { %3687 = vrot.lane.b32.xlu1 %v6314_v19, %s5418_s22  ;;  %3650 = vrot.lane.b32.xlu0 %v6318_v12, %s5391_s8 }
 0x42b   : > { %3729 = vrot.lane.b32.xlu1 %v6314_v19, %s5416_s20  ;;  %3689 = vrot.lane.b32.xlu0 %v6316_v35, %s5418_s22 }
 0x42f   : > { %3691 = vrot.lane.b32.xlu1 %v6318_v12, %s5418_s22  ;;  %3731 = vrot.lane.b32.xlu0 %v6316_v35, %s5416_s20 }
 0x433   : > { %3771 = vrot.lane.b32.xlu1 %v6314_v19, %s5419_s23  ;;  %3733 = vrot.lane.b32.xlu0 %v6318_v12, %s5416_s20 }
 0x435   : > { %v2971_v18 = vpop.permute.xlu1 %2970  ;;  %v2969_v22 = vpop.permute.xlu0 %2968 }
 0x436   : > { %v2979_v59 = vrot.slane %v2971_v18, 4  ;;  %v2978_v51 = vrot.slane %v2969_v22, 4 }
 0x437   : > { %3813 = vrot.lane.b32.xlu1 %v6314_v19, %s5417_s21  ;;  %3773 = vrot.lane.b32.xlu0 %v6316_v35, %s5419_s23 }
 0x438   : > { %v2983_v41 = vsel %vm381_vm0, %v2978_v51, %v2979_v59 }
 0x439   : > { %v3013_v21 = vpop.permute.xlu1 %3012  ;;  %v3011_v48 = vpop.permute.xlu0 %3010  ;;  %v2985_v32 = vsel %vm2984_vm6, %v2969_v22, %v2983_v41 }
 0x43a   : > { %v3021_v26 = vrot.slane %v3013_v21, 4  ;;  %v3020_v13 = vrot.slane %v3011_v48, 4 }
 0x43b   : > { %3775 = vrot.lane.b32.xlu1 %v6318_v12, %s5419_s23  ;;  %3815 = vrot.lane.b32.xlu0 %v6316_v35, %s5417_s21 }
 0x43c   : > { %v3025_v25 = vsel %vm381_vm0, %v3020_v13, %v3021_v26 }
 0x43d   : > { %v3027_v50 = vsel %vm3026_vm12, %v3011_v48, %v3025_v25  ;;  %v6427_v63 = vpop.permute.xlu1 %3014  ;;  %v6429_v55 = vpop.permute.xlu0 %2972 }
 0x43e   : > { %v5169_v37 = vcombine.low %v2985_v32, %v3027_v50  ;;  %v3022_v24 = vrot.slane %v6427_v63, 4  ;;  %v2980_v6 = vrot.slane %v6429_v55, 4  ;;  %v5170_v0 = vcombine.high %v2985_v32, %v3027_v50 }
 0x43f   : > { %3855 = vrot.lane.b32.xlu1 %v6314_v19, %s7055_s13  ;;  %3817 = vrot.lane.b32.xlu0 %v6318_v12, %s5417_s21 }
 0x440   : > { %4735 = vmatprep.subr.bf16.mxu0 %v5170_v0  ;;  %v2986_v4 = vsel %vm381_vm0, %v2979_v59, %v2980_v6  ;;  %v3028_v52 = vsel %vm381_vm0, %v3021_v26, %v3022_v24 }
 0x441   : > { %v3055_v58 = vpop.permute.xlu1 %3054  ;;  %4736 = vmatpush1.bf16.msra.mxu0 %v5169_v37  ;;  %v3053_v44 = vpop.permute.xlu0 %3052  ;;  %v2987_v1 = vsel %vm2984_vm6, %v2971_v18, %v2986_v4  ;;  %v3029_v29 = vsel %vm3026_vm12, %v3013_v21, %v3028_v52 }
 0x442   : > { %v3063_v11 = vrot.slane %v3055_v58, 4  ;;  %v3062_v42 = vrot.slane %v3053_v44, 4  ;;  %v5171_v45 = vcombine.low %v2987_v1, %v3029_v29  ;;  %v5172_v14 = vcombine.high %v2987_v1, %v3029_v29 }
 0x443   : > { %3896 = vrot.lane.b32.xlu1 %v6314_v19, %s5397_s14  ;;  %3857 = vrot.lane.b32.xlu0 %v6316_v35, %s7055_s13 }
 0x444   : > { %4776 = vmatprep.subr.bf16.mxu1 %v5172_v14  ;;  %v3067_v23 = vsel %vm381_vm0, %v3062_v42, %v3063_v11 }
 0x445   : > { %v3097_v47 = vpop.permute.xlu1 %3096  ;;  %4777 = vmatpush1.bf16.msra.mxu1 %v5171_v45  ;;  %v3095_v7 = vpop.permute.xlu0 %3094  ;;  %v3069_v30 = vsel %vm3068_vm13, %v3053_v44, %v3067_v23 }
 0x446   : > { %v3105_v49 = vrot.slane %v3097_v47, 4  ;;  %v3104_v33 = vrot.slane %v3095_v7, 4 }
 0x447   : > { %3859 = vrot.lane.b32.xlu1 %v6318_v12, %s7055_s13  ;;  %3898 = vrot.lane.b32.xlu0 %v6316_v35, %s5397_s14  ;;  %s7132_s13 = smov 100  }
 0x448   : > { %v3109_v46 = vsel %vm381_vm0, %v3104_v33, %v3105_v49  ;;  %v6506_v33 = vld [vmem:[%s7017_s3] sm:$0xff] }
 0x449   : > { %v3111_v17 = vsel %vm3110_vm14, %v3095_v7, %v3109_v46  ;;  %v6457_v10 = vpop.permute.xlu1 %3098  ;;  %v6459_v16 = vpop.permute.xlu0 %3056 }
 0x44a   : > { %v5177_v43 = vcombine.low %v3069_v30, %v3111_v17  ;;  %v3106_v57 = vrot.slane %v6457_v10, 4  ;;  %v3064_v18 = vrot.slane %v6459_v16, 4  ;;  %v5178_v22 = vcombine.high %v3069_v30, %v3111_v17 }
 0x44b   : > { %3937 = vrot.lane.b32.xlu1 %v6314_v19, %s7054_s4  ;;  %3900 = vrot.lane.b32.xlu0 %v6318_v12, %s5397_s14 }
 0x44c   : > { %4737 = vmatprep.subr.bf16.mxu0 %v5178_v22  ;;  %v3070_v59 = vsel %vm381_vm0, %v3063_v11, %v3064_v18  ;;  %v3112_v51 = vsel %vm381_vm0, %v3105_v49, %v3106_v57  ;;  %v6512_v22 = vcombine.high %v6506_v33, %v6506_v33 }
 0x44d   : > { %v3139_v21 = vpop.permute.xlu1 %3138  ;;  %4738 = vmatpush1.bf16.msra.mxu0 %v5177_v43  ;;  %v3137_v48 = vpop.permute.xlu0 %3136  ;;  %v3071_v41 = vsel %vm3068_vm13, %v3055_v58, %v3070_v59  ;;  %v3113_v26 = vsel %vm3110_vm14, %v3097_v47, %v3112_v51 }
 0x44e   : > { %v3147_v13 = vrot.slane %v3139_v21, 4  ;;  %v3146_v25 = vrot.slane %v3137_v48, 4  ;;  %v5179_v32 = vcombine.low %v3071_v41, %v3113_v26  ;;  %v5180_v50 = vcombine.high %v3071_v41, %v3113_v26  ;;  %5282 = vmatprep.mubr.msk.bf16.mxu0 %vm4706_vm3, %v6512_v22  ;;  %5284 = vmatprep.mubr.msk.bf16.mxu1 %vm4706_vm3, %v6512_v22 }
 0x44f   : > { %3979 = vrot.lane.b32.xlu1 %v6314_v19, %s5399_s16  ;;  %3939 = vrot.lane.b32.xlu0 %v6316_v35, %s7054_s4 }
 0x450   : > { %4778 = vmatprep.subr.bf16.mxu1 %v5180_v50  ;;  %v3151_v4 = vsel %vm381_vm0, %v3146_v25, %v3147_v13 }
 0x451   : > { %v3181_v37 = vpop.permute.xlu1 %3180  ;;  %4779 = vmatpush1.bf16.msra.mxu1 %v5179_v32  ;;  %v3179_v0 = vpop.permute.xlu0 %3178  ;;  %v3153_v1 = vsel %vm3152_vm15, %v3137_v48, %v3151_v4  ;;  %v6514_v48 = vld [vmem:[#allocation3 + $0x18] sm:$0xff] }
 0x452   : > { %v3189_v52 = vrot.slane %v3181_v37, 4  ;;  %v3188_v58 = vrot.slane %v3179_v0, 4 }
 0x453   : > { %3941 = vrot.lane.b32.xlu1 %v6318_v12, %s7054_s4  ;;  %3981 = vrot.lane.b32.xlu0 %v6316_v35, %s5399_s16  ;;  %s7133_s4 = smov 90  }
 0x454   : > { %v3193_v44 = vsel %vm381_vm0, %v3188_v58, %v3189_v52 }
 0x455   : > { %v3195_v29 = vsel %vm3194_vm11, %v3179_v0, %v3193_v44  ;;  %v6487_v11 = vpop.permute.xlu1 %3182  ;;  %v6489_v42 = vpop.permute.xlu0 %3140 }
 0x456   : > { %v5185_v45 = vcombine.low %v3153_v1, %v3195_v29  ;;  %v7094_v14 = vrot.slane %v6487_v11, 4  ;;  %v7092_v47 = vrot.slane %v6489_v42, 4  ;;  %v5186_v7 = vcombine.high %v3153_v1, %v3195_v29 }
 0x457   : > { %4020 = vrot.lane.b32.xlu1 %v6314_v19, %s5400_s17  ;;  %3983 = vrot.lane.b32.xlu0 %v6318_v12, %s5399_s16 }
 0x458   : > { %4739 = vmatprep.subr.bf16.mxu0 %v5186_v7  ;;  %v3154_v23 = vsel %vm381_vm0, %v3147_v13, %v7092_v47  ;;  %v3196_v49 = vsel %vm381_vm0, %v3189_v52, %v7094_v14 }
 0x459   : > { %v3223_v46 = vpop.permute.xlu1 %3222  ;;  %4740 = vmatpush1.bf16.msra.mxu0 %v5185_v45  ;;  %v3221_v30 = vpop.permute.xlu0 %3220  ;;  %v3155_v17 = vsel %vm3152_vm15, %v3139_v21, %v3154_v23  ;;  %v3197_v43 = vsel %vm3194_vm11, %v3181_v37, %v3196_v49  ;;  %v3004_v45 = vld [vmem:[#allocation3 + $0x20] sm:$0xf] }
 0x45a   : > { %v3231_v59 = vrot.slane %v3223_v46, 4  ;;  %v3230_v51 = vrot.slane %v3221_v30, 4  ;;  %v5187_v41 = vcombine.low %v3155_v17, %v3197_v43  ;;  %v5188_v26 = vcombine.high %v3155_v17, %v3197_v43 }
 0x45b   : > { %2974 = vrot.lane.b32.xlu1 %v6514_v48, %s5421_s25  ;;  %4022 = vrot.lane.b32.xlu0 %v6316_v35, %s5400_s17 }
 0x45c   : > { %4780 = vmatprep.subr.bf16.mxu1 %v5188_v26  ;;  %v3235_v25 = vsel %vm381_vm0, %v3230_v51, %v3231_v59 }
 0x45d   : > { %v3265_v21 = vpop.permute.xlu1 %3264  ;;  %4781 = vmatpush1.bf16.msra.mxu1 %v5187_v41  ;;  %v3263_v13 = vpop.permute.xlu0 %3262  ;;  %v3237_v0 = vsel %vm7057_vm5, %v3221_v30, %v3235_v25 }
 0x45e   : > { %v3273_v32 = vrot.slane %v3265_v21, 4  ;;  %v3272_v50 = vrot.slane %v3263_v13, 4 }
 0x45f   : > { %4024 = vrot.lane.b32.xlu1 %v6318_v12, %s5400_s17  ;;  %3016 = vrot.lane.b32.xlu0 %v6514_v48, %s5422_s26  ;;  %v2962_v12 = vld [vmem:[#allocation3 + $0x20] sm:$0xf] }
 0x460   : > { %v3277_v37 = vsel %vm381_vm0, %v3272_v50, %v3273_v32  ;;  %v3088_v50 = vld [vmem:[#allocation3 + $0x20] sm:$0xf] }
 0x461   : > { %v3279_v4 = vsel %vm7056_vm7, %v3263_v13, %v3277_v37  ;;  %v6532_v52 = vpop.permute.xlu1 %3266  ;;  %v6534_v58 = vpop.permute.xlu0 %3224 }
 0x462   : > { %v5193_v44 = vcombine.low %v3237_v0, %v3279_v4  ;;  %v7091_v1 = vrot.slane %v6532_v52, 4  ;;  %v7086_v29 = vrot.slane %v6534_v58, 4  ;;  %v5194_v7 = vcombine.high %v3237_v0, %v3279_v4  ;;  %v3046_v0 = vld [vmem:[#allocation3 + $0x20] sm:$0xf] }
 0x463   : > { %3018 = vrot.lane.b32.xlu1 %v3004_v45, %s5422_s26  ;;  %2976 = vrot.lane.b32.xlu0 %v2962_v12, %s5421_s25  ;;  %s7134_s25 = smov 91  }
 0x464   : > { %v3238_v23 = vsel %vm381_vm0, %v3231_v59, %v7086_v29  ;;  %4741 = vmatprep.subr.bf16.mxu0 %v5194_v7  ;;  %v3280_v49 = vsel %vm381_vm0, %v3273_v32, %v7091_v1 }
 0x465   : > { %v3307_v30 = vpop.permute.xlu1 %3306  ;;  %4742 = vmatpush1.bf16.msra.mxu0 %v5193_v44  ;;  %v3305_v17 = vpop.permute.xlu0 %3304  ;;  %v3239_v43 = vsel %vm7057_vm5, %v3223_v46, %v3238_v23  ;;  %v3281_v51 = vsel %vm7056_vm7, %v3265_v21, %v3280_v49  ;;  %vm7060_vm7 = vcmask 89088   ;;  %vm3404_vm5 = vcmask 80896  }
 0x466   : > { %v3315_v41 = vrot.slane %v3307_v30, 4  ;;  %v3314_v26 = vrot.slane %v3305_v17, 4  ;;  %v5195_v13 = vcombine.low %v3239_v43, %v3281_v51  ;;  %v5196_v25 = vcombine.high %v3239_v43, %v3281_v51 }
 0x467   : > { %3100 = vrot.lane.b32.xlu1 %v6514_v48, %s5424_s9  ;;  %3058 = vrot.lane.b32.xlu0 %v6514_v48, %s5423_s28 }
 0x468   : > { %4782 = vmatprep.subr.bf16.mxu1 %v5196_v25  ;;  %v3319_v46 = vsel %vm381_vm0, %v3314_v26, %v3315_v41 }
 0x469   : > { %v3349_v59 = vpop.permute.xlu1 %3348  ;;  %4783 = vmatpush1.bf16.msra.mxu1 %v5195_v13  ;;  %v3347_v32 = vpop.permute.xlu0 %3346  ;;  %v3321_v44 = vsel %vm7058_vm8, %v3305_v17, %v3319_v46 }
 0x46a   : > { %v3357_v37 = vrot.slane %v3349_v59, 4  ;;  %v3356_v21 = vrot.slane %v3347_v32, 4 }
 0x46b   : > { %3102 = vrot.lane.b32.xlu1 %v3088_v50, %s5424_s9  ;;  %3060 = vrot.lane.b32.xlu0 %v3046_v0, %s5423_s28  ;;  %v3172_v0 = vld [vmem:[#allocation3 + $0x20] sm:$0xf] }
 0x46c   : > { %v3361_v4 = vsel %vm381_vm0, %v3356_v21, %v3357_v37 }
 0x46d   : > { %v3363_v45 = vsel %vm7060_vm7, %v3347_v32, %v3361_v4  ;;  %v6558_v12 = vpop.permute.xlu1 %3350  ;;  %v6560_v7 = vpop.permute.xlu0 %3308  ;;  %v3130_v4 = vld [vmem:[#allocation3 + $0x20] sm:$0xf] }
 0x46e   : > { %v5201_v23 = vcombine.low %v3321_v44, %v3363_v45  ;;  %v5202_v49 = vcombine.high %v3321_v44, %v3363_v45  ;;  %v7085_v43 = vrot.slane %v6558_v12, 4  ;;  %v7082_v51 = vrot.slane %v6560_v7, 4 }
 0x46f   : > { %3184 = vrot.lane.b32.xlu1 %v6514_v48, %s5426_s11  ;;  %3142 = vrot.lane.b32.xlu0 %v6514_v48, %s7132_s13 }
 0x470   : > { %v3364_v17 = vsel %vm381_vm0, %v3357_v37, %v7085_v43  ;;  %v3322_v26 = vsel %vm381_vm0, %v3315_v41, %v7082_v51  ;;  %4743 = vmatprep.subr.bf16.mxu0 %v5202_v49 }
 0x471   : > { %v3391_v13 = vpop.permute.xlu1 %3390  ;;  %4744 = vmatpush1.bf16.msra.mxu0 %v5201_v23  ;;  %v3389_v25 = vpop.permute.xlu0 %3388  ;;  %v3323_v32 = vsel %vm7058_vm8, %v3307_v30, %v3322_v26  ;;  %v3365_v50 = vsel %vm7060_vm7, %v3349_v59, %v3364_v17  ;;  %vm7062_vm8 = vcmask 72704   ;;  %vm3488_vm7 = vcmask 7168  }
 0x472   : > { %v3399_v46 = vrot.slane %v3391_v13, 4  ;;  %v3398_v21 = vrot.slane %v3389_v25, 4  ;;  %v5203_v44 = vcombine.low %v3323_v32, %v3365_v50  ;;  %v5204_v45 = vcombine.high %v3323_v32, %v3365_v50 }
 0x473   : > { %3186 = vrot.lane.b32.xlu1 %v3172_v0, %s5426_s11  ;;  %3144 = vrot.lane.b32.xlu0 %v3130_v4, %s7132_s13 }
 0x474   : > { %4784 = vmatprep.subr.bf16.mxu1 %v5204_v45  ;;  %v3403_v23 = vsel %vm381_vm0, %v3398_v21, %v3399_v46  ;;  %v3256_v45 = vld [vmem:[#allocation3 + $0x20] sm:$0xf] }
 0x475   : > { %v3433_v41 = vpop.permute.xlu1 %3432  ;;  %4785 = vmatpush1.bf16.msra.mxu1 %v5203_v44  ;;  %v3431_v37 = vpop.permute.xlu0 %3430  ;;  %v3405_v17 = vsel %vm3404_vm5, %v3389_v25, %v3403_v23 }
 0x476   : > { %v3441_v30 = vrot.slane %v3433_v41, 4  ;;  %v3440_v59 = vrot.slane %v3431_v37, 4 }
 0x477   : > { %3268 = vrot.lane.b32.xlu1 %v6514_v48, %s7133_s4  ;;  %3226 = vrot.lane.b32.xlu0 %v6514_v48, %s7134_s25 }
 0x478   : > { %v3445_v49 = vsel %vm381_vm0, %v3440_v59, %v3441_v30 }
 0x479   : > { %v3447_v26 = vsel %vm7062_vm8, %v3431_v37, %v3445_v49  ;;  %v6586_v32 = vpop.permute.xlu1 %3434  ;;  %v6588_v50 = vpop.permute.xlu0 %3392 }
 0x47a   : > { %v5209_v21 = vcombine.low %v3405_v17, %v3447_v26  ;;  %v5210_v0 = vcombine.high %v3405_v17, %v3447_v26  ;;  %v7081_v4 = vrot.slane %v6586_v32, 4  ;;  %v7080_v44 = vrot.slane %v6588_v50, 4 }
 0x47b   : > { %3270 = vrot.lane.b32.xlu1 %v3256_v45, %s7133_s4  ;;  %3228 = vrot.lane.b32.xlu0 %v3214_v34, %s7134_s25 }
 0x47c   : > { %v3448_v25 = vsel %vm381_vm0, %v3441_v30, %v7081_v4  ;;  %v3406_v37 = vsel %vm381_vm0, %v3399_v46, %v7080_v44  ;;  %4745 = vmatprep.subr.bf16.mxu0 %v5210_v0 }
 0x47d   : > { %v3475_v23 = vpop.permute.xlu1 %3474  ;;  %4746 = vmatpush1.bf16.msra.mxu0 %v5209_v21  ;;  %v3473_v59 = vpop.permute.xlu0 %3472  ;;  %v3407_v49 = vsel %vm3404_vm5, %v3391_v13, %v3406_v37  ;;  %v3449_v17 = vsel %vm7062_vm8, %v3433_v41, %v3448_v25  ;;  %v3340_v37 = vld [vmem:[#allocation3 + $0x20] sm:$0xf]  ;;  %vm7071_vm8 = vcmask 973824  }
 0x47e   : > { %v3483_v26 = vrot.slane %v3475_v23, 4  ;;  %v3482_v45 = vrot.slane %v3473_v59, 4  ;;  %v5211_v34 = vcombine.low %v3407_v49, %v3449_v17  ;;  %v5212_v27 = vcombine.high %v3407_v49, %v3449_v17  ;;  %v3298_v49 = vld [vmem:[#allocation3 + $0x20] sm:$0xf] }
 0x47f   : > { %3352 = vrot.lane.b32.xlu1 %v6514_v48, %s5430_s19  ;;  %3310 = vrot.lane.b32.xlu0 %v6514_v48, %s5429_s18 }
 0x480   : > { %v3487_v46 = vsel %vm381_vm0, %v3482_v45, %v3483_v26  ;;  %4786 = vmatprep.subr.bf16.mxu1 %v5212_v27 }
 0x481   : > { %v3489_v30 = vsel %vm3488_vm7, %v3473_v59, %v3487_v46  ;;  %v3523_v21 = vpop.permute.xlu1 %3522  ;;  %4787 = vmatpush1.bf16.msra.mxu1 %v5211_v34  ;;  %v6608_v13 = vpop.permute.xlu0 %3476 }
 0x482   : > { %v5217_v41 = vcombine.low %v3489_v30, %v6314_v19  ;;  %v5218_v0 = vcombine.high %v3489_v30, %v6314_v19  ;;  %v7076_v25 = vrot.slane %v6608_v13, 4  ;;  %v3532_v30 = vrot.slane %v3523_v21, 4 }
 0x483   : > { %3354 = vrot.lane.b32.xlu1 %v3340_v37, %s5430_s19  ;;  %3312 = vrot.lane.b32.xlu0 %v3298_v49, %s5429_s18 }
 0x484   : > { %v3490_v27 = vsel %vm381_vm0, %v3483_v26, %v7076_v25  ;;  %4747 = vmatprep.subr.bf16.mxu0 %v5218_v0  ;;  %v3424_v0 = vld [vmem:[#allocation3 + $0x20] sm:$0xf] }
 0x485   : > { %v3564_v59 = vpop.permute.xlu1 %3563  ;;  %4748 = vmatpush1.bf16.msra.mxu0 %v5217_v41  ;;  %v3525_v17 = vpop.permute.xlu0 %3524  ;;  %v3491_v45 = vsel %vm3488_vm7, %v3475_v23, %v3490_v27  ;;  %v3382_v27 = vld [vmem:[#allocation3 + $0x20] sm:$0xf] }
 0x486   : > { %v3533_v34 = vrot.slane %v3525_v17, 4  ;;  %v5219_v19 = vcombine.low %v3491_v45, %v6316_v35  ;;  %v5220_v46 = vcombine.high %v3491_v45, %v6316_v35  ;;  %v3573_v23 = vrot.slane %v3564_v59, 4 }
 0x487   : > { %3436 = vrot.lane.b32.xlu1 %v6514_v48, %s5432_s27  ;;  %3394 = vrot.lane.b32.xlu0 %v6514_v48, %s5431_s10 }
 0x488   : > { %4788 = vmatprep.subr.bf16.mxu1 %v5220_v46  ;;  %v3537_v37 = vsel %vm381_vm0, %v3532_v30, %v3533_v34 }
 0x489   : > { %v6625_v26 = vpop.permute.xlu1 %3526  ;;  %4789 = vmatpush1.bf16.msra.mxu1 %v5219_v19  ;;  %v3566_v41 = vpop.permute.xlu0 %3565  ;;  %v3538_v19 = vsel %vm7070_vm1, %v3523_v21, %v3537_v37 }
 0x48a   : > { %v7073_v49 = vrot.slane %v6625_v26, 4  ;;  %v3574_v35 = vrot.slane %v3566_v41, 4 }
 0x48b   : > { %3438 = vrot.lane.b32.xlu1 %v3424_v0, %s5432_s27  ;;  %3396 = vrot.lane.b32.xlu0 %v3382_v27, %s5431_s10 }
 0x48c   : > { %v3578_v45 = vsel %vm381_vm0, %v3573_v23, %v3574_v35  ;;  %v3539_v30 = vsel %vm381_vm0, %v3533_v34, %v7073_v49 }
 0x48d   : > { %v3606_v46 = vpop.permute.xlu1 %3605  ;;  %v6632_v38 = vpop.permute.xlu0 %3567  ;;  %v3580_v40 = vsel %vm7071_vm8, %v3564_v59, %v3578_v45  ;;  %v3540_v34 = vsel %vm7070_vm1, %v3525_v17, %v3539_v30  ;;  %vm3703_vm1 = vcmask 318464  }
 0x48e   : > { %v7074_v9 = vrot.slane %v6632_v38, 4  ;;  %v5225_v28 = vcombine.low %v3538_v19, %v3580_v40  ;;  %v5226_v0 = vcombine.high %v3538_v19, %v3580_v40 }
 0x48f   : > { %3480 = vrot.lane.b32.xlu1 %v3466_v20, %s5433_s12  ;;  %3478 = vrot.lane.b32.xlu0 %v6514_v48, %s5433_s12  ;;  %v3615_v20 = vrot.slane %v3606_v46, 4 }
 0x490   : > { %v3581_v21 = vsel %vm381_vm0, %v3574_v35, %v7074_v9  ;;  %4749 = vmatprep.subr.bf16.mxu0 %v5226_v0 }
 0x491   : > { %v3647_v59 = vpop.permute.xlu1 %3646  ;;  %4750 = vmatpush1.bf16.msra.mxu0 %v5225_v28  ;;  %v3608_v23 = vpop.permute.xlu0 %3607  ;;  %v3582_v37 = vsel %vm7071_vm8, %v3566_v41, %v3581_v21  ;;  %vm3745_vm8 = vcmask 310272  }
 0x492   : > { %v3616_v27 = vrot.slane %v3608_v23, 4  ;;  %v5227_v45 = vcombine.low %v3540_v34, %v3582_v37  ;;  %v5228_v40 = vcombine.high %v3540_v34, %v3582_v37  ;;  %v3656_v35 = vrot.slane %v3647_v59, 4 }
 0x493   : > { %3569 = vrot.lane.b32.xlu1 %v6323_v15, %s5415_s15  ;;  %3528 = vrot.lane.b32.xlu0 %v6323_v15, %s5389_s29  ;;  %s7135_s29 = smov 28  }
 0x494   : > { %4790 = vmatprep.subr.bf16.mxu1 %v5228_v40  ;;  %v3620_v17 = vsel %vm381_vm0, %v3615_v20, %v3616_v27 }
 0x495   : > { %v6652_v48 = vpop.permute.xlu1 %3609  ;;  %4791 = vmatpush1.bf16.msra.mxu1 %v5227_v45  ;;  %v3649_v28 = vpop.permute.xlu0 %3648  ;;  %v3621_v34 = vsel %vm7077_vm2, %v3606_v46, %v3620_v17 }
 0x496   : > { %v7069_v41 = vrot.slane %v6652_v48, 4  ;;  %v3657_v19 = vrot.slane %v3649_v28, 4 }
 0x497   : > { %3652 = vrot.lane.b32.xlu1 %v6323_v15, %s5391_s8  ;;  %3611 = vrot.lane.b32.xlu0 %v6323_v15, %s5390_s30  ;;  %s7136_s30 = smov 19  }
 0x498   : > { %v3661_v30 = vsel %vm381_vm0, %v3656_v35, %v3657_v19  ;;  %v3622_v45 = vsel %vm381_vm0, %v3616_v27, %v7069_v41 }
 0x499   : > { %v3688_v0 = vpop.permute.xlu1 %3687  ;;  %v6661_v21 = vpop.permute.xlu0 %3650  ;;  %v3662_v37 = vsel %vm7078_vm4, %v3647_v59, %v3661_v30  ;;  %v3623_v27 = vsel %vm7077_vm2, %v3608_v23, %v3622_v45  ;;  %vm7088_vm2 = vcmask 302080  }
 0x49a   : > { %v7072_v40 = vrot.slane %v6661_v21, 4  ;;  %v5233_v20 = vcombine.low %v3621_v34, %v3662_v37  ;;  %v5234_v53 = vcombine.high %v3621_v34, %v3662_v37  ;;  %v3697_v41 = vrot.slane %v3688_v0, 4 }
 0x49b   : > { %3735 = vrot.lane.b32.xlu1 %v6323_v15, %s5416_s20  ;;  %3693 = vrot.lane.b32.xlu0 %v6323_v15, %s5418_s22 }
 0x49c   : > { %v3663_v46 = vsel %vm381_vm0, %v3657_v19, %v7072_v40  ;;  %4751 = vmatprep.subr.bf16.mxu0 %v5234_v53 }
 0x49d   : > { %v3730_v59 = vpop.permute.xlu1 %3729  ;;  %4752 = vmatpush1.bf16.msra.mxu0 %v5233_v20  ;;  %v3690_v35 = vpop.permute.xlu0 %3689  ;;  %v3664_v17 = vsel %vm7078_vm4, %v3649_v28, %v3663_v46  ;;  %vm3829_vm4 = vcmask 236544  }
 0x49e   : > { %v3698_v30 = vrot.slane %v3690_v35, 4  ;;  %v5235_v34 = vcombine.low %v3623_v27, %v3664_v17  ;;  %v5236_v37 = vcombine.high %v3623_v27, %v3664_v17  ;;  %v3739_v23 = vrot.slane %v3730_v59, 4 }
 0x49f   : > { %3819 = vrot.lane.b32.xlu1 %v6323_v15, %s5417_s21  ;;  %3777 = vrot.lane.b32.xlu0 %v6323_v15, %s5419_s23 }
 0x4a0   : > { %4792 = vmatprep.subr.bf16.mxu1 %v5236_v37  ;;  %v3702_v28 = vsel %vm381_vm0, %v3697_v41, %v3698_v30 }
 0x4a1   : > { %v6682_v19 = vpop.permute.xlu1 %3691  ;;  %4793 = vmatpush1.bf16.msra.mxu1 %v5235_v34  ;;  %v3732_v53 = vpop.permute.xlu0 %3731  ;;  %v3704_v34 = vsel %vm3703_vm1, %v3688_v0, %v3702_v28 }
 0x4a2   : > { %v7075_v45 = vrot.slane %v6682_v19, 4  ;;  %v3740_v20 = vrot.slane %v3732_v53, 4 }
 0x4a3   : > { %3902 = vrot.lane.b32.xlu1 %v6323_v15, %s5397_s14  ;;  %3861 = vrot.lane.b32.xlu0 %v6323_v15, %s7135_s29 }
 0x4a4   : > { %v3744_v46 = vsel %vm381_vm0, %v3739_v23, %v3740_v20  ;;  %v3705_v41 = vsel %vm381_vm0, %v3698_v30, %v7075_v45 }
 0x4a5   : > { %v3772_v27 = vpop.permute.xlu1 %3771  ;;  %v6691_v17 = vpop.permute.xlu0 %3733  ;;  %v3746_v37 = vsel %vm3745_vm8, %v3730_v59, %v3744_v46  ;;  %v3973_v59 = vld [vmem:[#allocation3 + $0x24] sm:$0xf]  ;;  %v3706_v30 = vsel %vm3703_vm1, %v3690_v35, %v3705_v41 }
 0x4a6   : > { %v7079_v40 = vrot.slane %v6691_v17, 4  ;;  %v5241_v49 = vcombine.low %v3704_v34, %v3746_v37  ;;  %v5242_v9 = vcombine.high %v3704_v34, %v3746_v37  ;;  %v3781_v25 = vrot.slane %v3772_v27, 4 }
 0x4a7   : > { %3985 = vrot.lane.b32.xlu1 %v6323_v15, %s5399_s16  ;;  %3943 = vrot.lane.b32.xlu0 %v6323_v15, %s7136_s30 }
 0x4a8   : > { %v3747_v0 = vsel %vm381_vm0, %v3740_v20, %v7079_v40  ;;  %4753 = vmatprep.subr.bf16.mxu0 %v5242_v9  ;;  %v4014_v20 = vld [vmem:[#allocation3 + $0x24] sm:$0xf] }
 0x4a9   : > { %v3814_v23 = vpop.permute.xlu1 %3813  ;;  %4754 = vmatpush1.bf16.msra.mxu0 %v5241_v49  ;;  %v3774_v28 = vpop.permute.xlu0 %3773  ;;  %v3748_v46 = vsel %vm3745_vm8, %v3732_v53, %v3747_v0 }
 0x4aa   : > { %v3782_v34 = vrot.slane %v3774_v28, 4  ;;  %v5243_v37 = vcombine.low %v3706_v30, %v3748_v46  ;;  %v5244_v45 = vcombine.high %v3706_v30, %v3748_v46  ;;  %v3823_v35 = vrot.slane %v3814_v23, 4 }
 0x4ab   : > { %3987 = vrot.lane.b32.xlu1 %v3973_v59, %s5399_s16  ;;  %4026 = vrot.lane.b32.xlu0 %v6323_v15, %s5400_s17  ;;  %s5291_s16 = sshll.u32 %s7198_s2, 6 }
 0x4ac   : > { %4794 = vmatprep.subr.bf16.mxu1 %v5244_v45  ;;  %v3786_v53 = vsel %vm381_vm0, %v3781_v25, %v3782_v34  ;;  %s278_s20 = scalar_lea.vmem %s7021_s7, %s5291_s16 }
 0x4ad   : > { %v6711_v9 = vpop.permute.xlu1 %3775  ;;  %4795 = vmatpush1.bf16.msra.mxu1 %v5243_v37  ;;  %v3816_v49 = vpop.permute.xlu0 %3815  ;;  %v3788_v45 = vsel %vm7088_vm2, %v3772_v27, %v3786_v53 }
 0x4ae   : > { %v7083_v41 = vrot.slane %v6711_v9, 4  ;;  %v3824_v0 = vrot.slane %v3816_v49, 4 }
 0x4af   : > { %4028 = vrot.lane.b32.xlu1 %v4014_v20, %s5400_s17 }
 0x4b0   : > { %v3828_v59 = vsel %vm381_vm0, %v3823_v35, %v3824_v0  ;;  %v3789_v37 = vsel %vm381_vm0, %v3782_v34, %v7083_v41 }
 0x4b1   : > { %v3856_v15 = vpop.permute.xlu1 %3855  ;;  %v6717_v30 = vpop.permute.xlu0 %3817  ;;  %v3830_v46 = vsel %vm3829_vm4, %v3814_v23, %v3828_v59  ;;  %v3790_v27 = vsel %vm7088_vm2, %v3774_v28, %v3789_v37  ;;  %vm3953_vm2 = vcmask 154624  }
 0x4b2   : > { %v7084_v25 = vrot.slane %v6717_v30, 4  ;;  %v5249_v40 = vcombine.low %v3788_v45, %v3830_v46  ;;  %v5250_v44 = vcombine.high %v3788_v45, %v3830_v46  ;;  %v3865_v34 = vrot.slane %v3856_v15, 4 }
 0x4b4   : > { %v3831_v20 = vsel %vm381_vm0, %v3824_v0, %v7084_v25  ;;  %4755 = vmatprep.subr.bf16.mxu0 %v5250_v44 }
 0x4b5   : > { %v3897_v35 = vpop.permute.xlu1 %3896  ;;  %4756 = vmatpush1.bf16.msra.mxu0 %v5249_v40  ;;  %v3858_v4 = vpop.permute.xlu0 %3857  ;;  %v3832_v23 = vsel %vm3829_vm4, %v3816_v49, %v3831_v20 }
 0x4b6   : > { %v3866_v53 = vrot.slane %v3858_v4, 4  ;;  %v5251_v59 = vcombine.low %v3790_v27, %v3832_v23  ;;  %v5252_v51 = vcombine.high %v3790_v27, %v3832_v23  ;;  %v3906_v46 = vrot.slane %v3897_v35, 4 }
 0x4b8   : > { %4796 = vmatprep.subr.bf16.mxu1 %v5252_v51  ;;  %v3870_v0 = vsel %vm381_vm0, %v3865_v34, %v3866_v53 }
 0x4b9   : > { %v6730_v41 = vpop.permute.xlu1 %3859  ;;  %4797 = vmatpush1.bf16.msra.mxu1 %v5251_v59  ;;  %v3899_v45 = vpop.permute.xlu0 %3898  ;;  %v3871_v49 = vsel %vm7089_vm9, %v3856_v15, %v3870_v0 }
 0x4ba   : > { %v7087_v44 = vrot.slane %v6730_v41, 4  ;;  %v3907_v40 = vrot.slane %v3899_v45, 4 }
 0x4bc   : > { %v3911_v25 = vsel %vm381_vm0, %v3906_v46, %v3907_v40  ;;  %v3872_v51 = vsel %vm381_vm0, %v3866_v53, %v7087_v44 }
 0x4bd   : > { %v3938_v28 = vpop.permute.xlu1 %3937  ;;  %v6735_v37 = vpop.permute.xlu0 %3900  ;;  %v3912_v20 = vsel %vm7095_vm10, %v3897_v35, %v3911_v25  ;;  %v3873_v15 = vsel %vm7089_vm9, %v3858_v4, %v3872_v51  ;;  %vm7137_vm9 = vcmask 146432  }
 0x4be   : > { %v7090_v27 = vrot.slane %v6735_v37, 4  ;;  %v5257_v23 = vcombine.low %v3871_v49, %v3912_v20  ;;  %v5258_v59 = vcombine.high %v3871_v49, %v3912_v20  ;;  %v3947_v53 = vrot.slane %v3938_v28, 4 }
 0x4c0   : > { %v3913_v34 = vsel %vm381_vm0, %v3907_v40, %v7090_v27  ;;  %4757 = vmatprep.subr.bf16.mxu0 %v5258_v59 }
 0x4c1   : > { %v3980_v46 = vpop.permute.xlu1 %3979  ;;  %4758 = vmatpush1.bf16.msra.mxu0 %v5257_v23  ;;  %v3940_v43 = vpop.permute.xlu0 %3939  ;;  %v3914_v25 = vsel %vm7095_vm10, %v3899_v45, %v3913_v34  ;;  %vm7138_vm10 = vcmask 138240  }
 0x4c2   : > { %v3948_v35 = vrot.slane %v3940_v43, 4  ;;  %v5259_v0 = vcombine.low %v3873_v15, %v3914_v25  ;;  %v5260_v29 = vcombine.high %v3873_v15, %v3914_v25  ;;  %v3989_v20 = vrot.slane %v3980_v46, 4 }
 0x4c4   : > { %4798 = vmatprep.subr.bf16.mxu1 %v5260_v29  ;;  %v3952_v40 = vsel %vm381_vm0, %v3947_v53, %v3948_v35 }
 0x4c5   : > { %v6748_v44 = vpop.permute.xlu1 %3941  ;;  %4799 = vmatpush1.bf16.msra.mxu1 %v5259_v0  ;;  %v3982_v49 = vpop.permute.xlu0 %3981  ;;  %v3954_v34 = vsel %vm3953_vm2, %v3938_v28, %v3952_v40 }
 0x4c6   : > { %v7093_v23 = vrot.slane %v6748_v44, 4  ;;  %v3990_v59 = vrot.slane %v3982_v49, 4 }
 0x4c8   : > { %v3994_v4 = vsel %vm381_vm0, %v3989_v20, %v3990_v59  ;;  %v3955_v15 = vsel %vm381_vm0, %v3948_v35, %v7093_v23 }
 0x4c9   : > { %v4021_v51 = vpop.permute.xlu1 %4020  ;;  %v6753_v45 = vpop.permute.xlu0 %3983  ;;  %v3995_v29 = vsel %vm7137_vm9, %v3980_v46, %v3994_v4  ;;  %v3956_v28 = vsel %vm3953_vm2, %v3940_v43, %v3955_v15 }
 0x4ca   : > { %v7097_v25 = vrot.slane %v6753_v45, 4  ;;  %v5265_v0 = vcombine.low %v3954_v34, %v3995_v29  ;;  %v5266_v53 = vcombine.high %v3954_v34, %v3995_v29  ;;  %v4030_v20 = vrot.slane %v4021_v51, 4 }
 0x4cc   : > { %v3996_v27 = vsel %vm381_vm0, %v3990_v59, %v7097_v25  ;;  %4759 = vmatprep.subr.bf16.mxu0 %v5266_v53 }
 0x4cd   : > { %v2975_v1 = vpop.permute.xlu1 %2974  ;;  %4760 = vmatpush1.bf16.msra.mxu0 %v5265_v0  ;;  %v4023_v47 = vpop.permute.xlu0 %4022  ;;  %v3997_v46 = vsel %vm7137_vm9, %v3982_v49, %v3996_v27 }
 0x4ce   : > { %v2981_v40 = vrot.slane %v2975_v1, 4  ;;  %v4031_v4 = vrot.slane %v4023_v47, 4  ;;  %v5267_v35 = vcombine.low %v3956_v28, %v3997_v46  ;;  %v5268_v23 = vcombine.high %v3956_v28, %v3997_v46 }
 0x4d0   : > { %v4035_v14 = vsel %vm381_vm0, %v4030_v20, %v4031_v4  ;;  %4800 = vmatprep.subr.bf16.mxu1 %v5268_v23  ;;  %v2988_v59 = vsel %vm381_vm0, %v2980_v6, %v2981_v40 }
 0x4d1   : > { %v6770_v34 = vpop.permute.xlu1 %4024  ;;  %4801 = vmatpush1.bf16.msra.mxu1 %v5267_v35  ;;  %v3017_v29 = vpop.permute.xlu0 %3016  ;;  %v4036_v0 = vsel %vm7138_vm10, %v4021_v51, %v4035_v14  ;;  %v6784_v14 = vcombine.low %v6506_v33, %v6506_v33  ;;  %v2989_v46 = vsel %vm2984_vm6, %v6429_v55, %v2988_v59 }
 0x4d2   : > { %v7096_v43 = vrot.slane %v6770_v34, 4  ;;  %v3023_v27 = vrot.slane %v3017_v29, 4  ;;  %v5274_v49 = vcombine.high %v4036_v0, %v4036_v0  ;;  %v5273_v15 = vcombine.low %v4036_v0, %v4036_v0 }
 0x4d4   : > { %v4037_v53 = vsel %vm381_vm0, %v4031_v4, %v7096_v43  ;;  %v3030_v23 = vsel %vm381_vm0, %v3022_v24, %v3023_v27  ;;  %5281 = vmatprep.subr.msk.bf16.mxu0 %vm381_vm0, %v5274_v49  ;;  %v4712_v6 = vsel %vm381_vm0, %v5273_v15, 0 }
 0x4d5   : > { %v3019_v51 = vpop.permute.xlu1 %3018  ;;  %4762 = vmatpush1.bf16.msra.mxu0 %v4712_v6  ;;  %v2977_v20 = vpop.permute.xlu0 %2976  ;;  %v4038_v28 = vsel %vm7138_vm10, %v4023_v47, %v4037_v53  ;;  %v3031_v4 = vsel %vm3026_vm12, %v6427_v63, %v3030_v23  ;;  %vm7155_vm10 = vcmask 72704  }
 0x4d6   : > { %v3024_v24 = vrot.slane %v3019_v51, 4  ;;  %v2982_v35 = vrot.slane %v2977_v20, 4  ;;  %v5276_v0 = vcombine.high %v4038_v28, %v4038_v28  ;;  %v5173_v49 = vcombine.low %v2989_v46, %v3031_v4 }
 0x4d7   : > { %v5174_v15 = vcombine.high %v2989_v46, %v3031_v4  ;;  %v5275_v43 = vcombine.low %v4038_v28, %v4038_v28 }
 0x4d8   : > { %v3032_v33 = vsel %vm381_vm0, %v3023_v27, %v3024_v24  ;;  %v2990_v25 = vsel %vm381_vm0, %v2981_v40, %v2982_v35  ;;  %5283 = vmatprep.subr.msk.bf16.mxu1 %vm381_vm0, %v5276_v0  ;;  %4768 = vmatmul.mubr.bf16.vlgmr.msra.gmra.mrb[8].mxu0 %v6784_v14 }
 0x4d9   : > { %4817 = vmatprep.subr.bf16.mxu0 %v5174_v15  ;;  %v3101_v47 = vpop.permute.xlu1 %3100  ;;  %v4718_v55 = vsel %vm381_vm0, %v5275_v43, 0  ;;  %v3059_v59 = vpop.permute.xlu0 %3058  ;;  %v2991_v63 = vsel %vm2984_vm6, %v2975_v1, %v2990_v25  ;;  %v3033_v53 = vsel %vm3026_vm12, %v3017_v29, %v3032_v33  ;;  %5286 = vmatprep.mubr.msk.bf16.mxu0 %vm4706_vm3, %v6512_v22  ;;  %vm7143_vm6 = vcmask 744448  }
 0x4da   : > { %v3107_v23 = vrot.slane %v3101_v47, 4  ;;  %4803 = vmatpush1.bf16.msra.mxu1 %v4718_v55  ;;  %4818 = vmatpush1.bf16.msra.mxu0 %v5173_v49  ;;  %v3065_v40 = vrot.slane %v3059_v59, 4  ;;  %v5175_v27 = vcombine.low %v2991_v63, %v3033_v53  ;;  %v5176_v6 = vcombine.high %v2991_v63, %v3033_v53 }
 0x4db   : > { %v7139_v63 = vrot.slane %v6487_v11, 4  ;;  %v7140_v53 = vrot.slane %v6489_v42, 4  ;;  %vm7144_vm12 = vcmask 736256  }
 0x4dc   : > { %v3114_v51 = vsel %vm381_vm0, %v3106_v57, %v3107_v23  ;;  %v3072_v43 = vsel %vm381_vm0, %v3064_v18, %v3065_v40  ;;  %4858 = vmatprep.subr.bf16.mxu1 %v5176_v6 }
 0x4dd   : > { %v3103_v1 = vpop.permute.xlu1 %3102  ;;  %4809 = vmatmul.mubr.bf16.vlgmr.msra.gmra.mrb[8].mxu1 %v6784_v14  ;;  %v3061_v25 = vpop.permute.xlu0 %3060  ;;  %v3073_v29 = vsel %vm3068_vm13, %v6459_v16, %v3072_v43  ;;  %v3115_v20 = vsel %vm3110_vm14, %v6457_v10, %v3114_v51 }
 0x4de   : > { %v3108_v28 = vrot.slane %v3103_v1, 4  ;;  %4859 = vmatpush1.bf16.msra.mxu1 %v5175_v27  ;;  %v3066_v46 = vrot.slane %v3061_v25, 4  ;;  %v5181_v4 = vcombine.low %v3073_v29, %v3115_v20  ;;  %v5182_v57 = vcombine.high %v3073_v29, %v3115_v20  ;;  %5288 = vmatprep.mubr.msk.bf16.mxu1 %vm4706_vm3, %v6512_v22 }
 0x4e0   : > { %v3116_v18 = vsel %vm381_vm0, %v3107_v23, %v3108_v28  ;;  %v3074_v24 = vsel %vm381_vm0, %v3065_v40, %v3066_v46  ;;  %4819 = vmatprep.subr.bf16.mxu0 %v5182_v57 }
 0x4e1   : > { %v3185_v35 = vpop.permute.xlu1 %3184  ;;  %4820 = vmatpush1.bf16.msra.mxu0 %v5181_v4  ;;  %v3143_v0 = vpop.permute.xlu0 %3142  ;;  %v3075_v16 = vsel %vm3068_vm13, %v3059_v59, %v3074_v24  ;;  %v3117_v10 = vsel %vm3110_vm14, %v3101_v47, %v3116_v18  ;;  %v7141_v24 = vrot.slane %v6532_v52, 4  ;;  %vm7145_vm13 = vmmov %vm7143_vm6 }
 0x4e2   : > { %v3191_v49 = vrot.slane %v3185_v35, 4  ;;  %v3149_v15 = vrot.slane %v3143_v0, 4  ;;  %v5183_v33 = vcombine.low %v3075_v16, %v3117_v10  ;;  %v5184_v55 = vcombine.high %v3075_v16, %v3117_v10  ;;  %vm7146_vm14 = vmmov %vm7144_vm12 }
 0x4e3   : > { %v7142_v10 = vrot.slane %v6534_v58, 4 }
 0x4e4   : > { %v3198_v22 = vsel %vm381_vm0, %v7139_v63, %v3191_v49  ;;  %v3156_v23 = vsel %vm381_vm0, %v7140_v53, %v3149_v15  ;;  %4860 = vmatprep.subr.bf16.mxu1 %v5184_v55 }
 0x4e5   : > { %v3187_v40 = vpop.permute.xlu1 %3186  ;;  %4861 = vmatpush1.bf16.msra.mxu1 %v5183_v33  ;;  %v3145_v27 = vpop.permute.xlu0 %3144  ;;  %v3157_v59 = vsel %vm3152_vm15, %v6489_v42, %v3156_v23  ;;  %v3199_v47 = vsel %vm3194_vm11, %v6487_v11, %v3198_v22 }
 0x4e6   : > { %v3192_v6 = vrot.slane %v3187_v40, 4  ;;  %v3150_v51 = vrot.slane %v3145_v27, 4  ;;  %v5189_v43 = vcombine.low %v3157_v59, %v3199_v47  ;;  %v5190_v1 = vcombine.high %v3157_v59, %v3199_v47 }
 0x4e8   : > { %v3200_v25 = vsel %vm381_vm0, %v3191_v49, %v3192_v6  ;;  %v3158_v29 = vsel %vm381_vm0, %v3149_v15, %v3150_v51  ;;  %4821 = vmatprep.subr.bf16.mxu0 %v5190_v1  ;;  %v7147_v1 = vrot.slane %v6558_v12, 4 }
 0x4e9   : > { %v3269_v20 = vpop.permute.xlu1 %3268  ;;  %4822 = vmatpush1.bf16.msra.mxu0 %v5189_v43  ;;  %v3227_v28 = vpop.permute.xlu0 %3226  ;;  %v3159_v46 = vsel %vm3152_vm15, %v3143_v0, %v3158_v29  ;;  %v3201_v4 = vsel %vm3194_vm11, %v3185_v35, %v3200_v25  ;;  %v7148_v29 = vrot.slane %v6560_v7, 4  ;;  %vm7149_vm15 = vcmask 728064  }
 0x4ea   : > { %v3275_v42 = vrot.slane %v3269_v20, 4  ;;  %v3233_v57 = vrot.slane %v3227_v28, 4  ;;  %v5191_v18 = vcombine.low %v3159_v46, %v3201_v4  ;;  %v5192_v11 = vcombine.high %v3159_v46, %v3201_v4  ;;  %vm7151_vm3 = vmmov %vm7149_vm15 }
 0x4eb   : > { %vm7150_vm11 = vcmask 89088  }
 0x4ec   : > { %v3282_v16 = vsel %vm381_vm0, %v7141_v24, %v3275_v42  ;;  %v3240_v49 = vsel %vm381_vm0, %v7142_v10, %v3233_v57  ;;  %4862 = vmatprep.subr.bf16.mxu1 %v5192_v11  ;;  %vm7152_vm9 = vmmov %vm7150_vm11 }
 0x4ed   : > { %v3271_v15 = vpop.permute.xlu1 %3270  ;;  %4863 = vmatpush1.bf16.msra.mxu1 %v5191_v18  ;;  %v3229_v33 = vpop.permute.xlu0 %3228  ;;  %v3241_v0 = vsel %vm7143_vm6, %v6534_v58, %v3240_v49  ;;  %v3283_v35 = vsel %vm7144_vm12, %v6532_v52, %v3282_v16  ;;  %vm7156_vm6 = vmmov %vm7155_vm10 }
 0x4ee   : > { %v3276_v55 = vrot.slane %v3271_v15, 4  ;;  %v3234_v63 = vrot.slane %v3229_v33, 4  ;;  %v5197_v22 = vcombine.low %v3241_v0, %v3283_v35  ;;  %v5198_v53 = vcombine.high %v3241_v0, %v3283_v35 }
 0x4f0   : > { %v3284_v23 = vsel %vm381_vm0, %v3275_v42, %v3276_v55  ;;  %v3242_v40 = vsel %vm381_vm0, %v3233_v57, %v3234_v63  ;;  %4823 = vmatprep.subr.bf16.mxu0 %v5198_v53  ;;  %v7153_v63 = vrot.slane %v6586_v32, 4  ;;  %v7154_v53 = vrot.slane %v6588_v50, 4 }
 0x4f1   : > { %v3353_v27 = vpop.permute.xlu1 %3352  ;;  %4824 = vmatpush1.bf16.msra.mxu0 %v5197_v22  ;;  %v3311_v59 = vpop.permute.xlu0 %3310  ;;  %v3243_v47 = vsel %vm7145_vm13, %v3227_v28, %v3242_v40  ;;  %v3285_v6 = vsel %vm7146_vm14, %v3269_v20, %v3284_v23  ;;  %vm7166_vm14 = vcmask 957440  }
 0x4f2   : > { %v3359_v58 = vrot.slane %v3353_v27, 4  ;;  %v3317_v51 = vrot.slane %v3311_v59, 4  ;;  %v5199_v43 = vcombine.low %v3243_v47, %v3285_v6  ;;  %v5200_v52 = vcombine.high %v3243_v47, %v3285_v6 }
 0x4f4   : > { %v3366_v25 = vsel %vm381_vm0, %v7147_v1, %v3359_v58  ;;  %v3324_v46 = vsel %vm381_vm0, %v7148_v29, %v3317_v51  ;;  %4864 = vmatprep.subr.bf16.mxu1 %v5200_v52 }
 0x4f5   : > { %v3355_v4 = vpop.permute.xlu1 %3354  ;;  %4865 = vmatpush1.bf16.msra.mxu1 %v5199_v43  ;;  %v3313_v42 = vpop.permute.xlu0 %3312  ;;  %v3325_v28 = vsel %vm7149_vm15, %v6560_v7, %v3324_v46  ;;  %v3367_v20 = vsel %vm7150_vm11, %v6558_v12, %v3366_v25  ;;  %vm7167_vm15 = vcmask 965632  }
 0x4f6   : > { %v3360_v57 = vrot.slane %v3355_v4, 4  ;;  %v3318_v18 = vrot.slane %v3313_v42, 4  ;;  %v5205_v11 = vcombine.low %v3325_v28, %v3367_v20  ;;  %v5206_v24 = vcombine.high %v3325_v28, %v3367_v20  ;;  %vm7168_vm11 = vmmov %vm7167_vm15 }
 0x4f7   : > { %v7157_v20 = vrot.slane %v6608_v13, 4 }
 0x4f8   : > { %v3368_v16 = vsel %vm381_vm0, %v3359_v58, %v3360_v57  ;;  %v3326_v10 = vsel %vm381_vm0, %v3317_v51, %v3318_v18  ;;  %4825 = vmatprep.subr.bf16.mxu0 %v5206_v24  ;;  %v3536_v24 = vrot.slane %v6367_v56, 4  ;;  %v7158_v56 = vrot.slane %v6632_v38, 4 }
 0x4f9   : > { %v3437_v49 = vpop.permute.xlu1 %3436  ;;  %4826 = vmatpush1.bf16.msra.mxu0 %v5205_v11  ;;  %v3395_v15 = vpop.permute.xlu0 %3394  ;;  %v3327_v33 = vsel %vm7151_vm3, %v3311_v59, %v3326_v10  ;;  %v3369_v0 = vsel %vm7152_vm9, %v3353_v27, %v3368_v16  ;;  %v3577_v11 = vrot.slane %v6304_v31, 4  ;;  %v3507_v16 = vld [vmem:[#allocation3 + $0x1c] sm:$0xff]  ;;  %vm7169_vm3 = vmmov %vm7166_vm14  ;;  %vm7174_vm9 = vcmask 302080  }
 0x4fa   : > { %v3443_v7 = vrot.slane %v3437_v49, 4  ;;  %v3401_v35 = vrot.slane %v3395_v15, 4  ;;  %v5207_v55 = vcombine.low %v3327_v33, %v3369_v0  ;;  %v5208_v12 = vcombine.high %v3327_v33, %v3369_v0 }
 0x4fc   : > { %v3450_v22 = vsel %vm381_vm0, %v7153_v63, %v3443_v7  ;;  %v3408_v23 = vsel %vm381_vm0, %v7154_v53, %v3401_v35  ;;  %4866 = vmatprep.subr.bf16.mxu1 %v5208_v12  ;;  %v3506_v12 = vld [vmem:[#allocation3 + $0x14] sm:$0xff]  ;;  %v3660_v63 = vrot.slane %v6306_v54, 4 }
 0x4fd   : > { %v3439_v40 = vpop.permute.xlu1 %3438  ;;  %4867 = vmatpush1.bf16.msra.mxu1 %v5207_v55  ;;  %v3397_v47 = vpop.permute.xlu0 %3396  ;;  %v3409_v59 = vsel %vm3404_vm5, %v6588_v50, %v3408_v23  ;;  %v3451_v27 = vsel %vm7155_vm10, %v6586_v32, %v3450_v22  ;;  %vm7179_vm10 = vcmask 228352  }
 0x4fe   : > { %v3444_v6 = vrot.slane %v3439_v40, 4  ;;  %v3402_v58 = vrot.slane %v3397_v47, 4  ;;  %v5213_v51 = vcombine.low %v3409_v59, %v3451_v27  ;;  %v5214_v43 = vcombine.high %v3409_v59, %v3451_v27 }
 0x4ff   : > { %v7159_v40 = vrot.slane %v6625_v26, 4  ;;  %v3619_v59 = vrot.slane %v6377_v62, 4  ;;  %v3701_v62 = vrot.slane %v6383_v8, 4 }
 0x500   : > { %v3452_v52 = vsel %vm381_vm0, %v3443_v7, %v3444_v6  ;;  %v3410_v1 = vsel %vm381_vm0, %v3401_v35, %v3402_v58  ;;  %4827 = vmatprep.subr.bf16.mxu0 %v5214_v43 }
 0x501   : > { %v3481_v25 = vpop.permute.xlu1 %3480  ;;  %4828 = vmatpush1.bf16.msra.mxu0 %v5213_v51  ;;  %v3479_v29 = vpop.permute.xlu0 %3478  ;;  %v3411_v46 = vsel %vm3404_vm5, %v3395_v15, %v3410_v1  ;;  %v3453_v4 = vsel %vm7156_vm6, %v3437_v49, %v3452_v52  ;;  %vm7160_vm5 = vcmask 973824  }
 0x502   : > { %v3486_v50 = vrot.slane %v3481_v25, 4  ;;  %v3485_v42 = vrot.slane %v3479_v29, 4  ;;  %v5215_v28 = vcombine.low %v3411_v46, %v3453_v4  ;;  %v5216_v32 = vcombine.high %v3411_v46, %v3453_v4  ;;  %vm7163_vm13 = vmmov %vm7160_vm5 }
 0x503   : > { %v7164_v4 = vrot.slane %v6661_v21, 4 }
 0x504   : > { %v3492_v57 = vsel %vm381_vm0, %v7157_v20, %v3485_v42  ;;  %v3494_v18 = vsel %vm381_vm0, %v3485_v42, %v3486_v50  ;;  %4868 = vmatprep.subr.bf16.mxu1 %v5216_v32 }
 0x505   : > { %v3495_v10 = vsel %vm3488_vm7, %v3479_v29, %v3494_v18  ;;  %v3570_v15 = vpop.permute.xlu1 %3569  ;;  %4869 = vmatpush1.bf16.msra.mxu1 %v5215_v28  ;;  %v3529_v49 = vpop.permute.xlu0 %3528  ;;  %v3493_v33 = vsel %vm3488_vm7, %v6608_v13, %v3492_v57  ;;  %vm7161_vm7 = vcmask 1039360   ;;  %v3743_v29 = vrot.slane %v6308_v5, 4 }
 0x506   : > { %v5223_v0 = vcombine.low %v3495_v10, %v3507_v16  ;;  %v5224_v7 = vcombine.high %v3495_v10, %v3507_v16  ;;  %v3576_v35 = vrot.slane %v3570_v15, 4  ;;  %v3535_v55 = vrot.slane %v3529_v49, 4  ;;  %vm7162_vm12 = vmmov %vm7161_vm7 }
 0x507   : > { %v5221_v22 = vcombine.low %v3493_v33, %v3506_v12  ;;  %v5222_v31 = vcombine.high %v3493_v33, %v3506_v12  ;;  %v7171_v12 = vrot.slane %v6682_v19, 4 }
 0x508   : > { %v3583_v53 = vsel %vm381_vm0, %v7158_v56, %v3576_v35  ;;  %v3585_v23 = vsel %vm381_vm0, %v3576_v35, %v3577_v11  ;;  %v3541_v47 = vsel %vm381_vm0, %v7159_v40, %v3535_v55  ;;  %v3543_v13 = vsel %vm381_vm0, %v3535_v55, %v3536_v24  ;;  %4870 = vmatprep.subr.bf16.mxu1 %v5224_v7 }
 0x509   : > { %v3586_v27 = vsel %vm7160_vm5, %v3570_v15, %v3585_v23  ;;  %v3544_v54 = vsel %vm7161_vm7, %v3529_v49, %v3543_v13  ;;  %4829 = vmatprep.subr.bf16.mxu0 %v5222_v31  ;;  %v3653_v6 = vpop.permute.xlu1 %3652  ;;  %4871 = vmatpush1.bf16.msra.mxu1 %v5223_v0  ;;  %v3612_v58 = vpop.permute.xlu0 %3611  ;;  %v3542_v51 = vsel %vm7162_vm12, %v6625_v26, %v3541_v47  ;;  %v7165_v26 = vrot.slane %v6652_v48, 4 }
 0x50a   : > { %v5231_v43 = vcombine.low %v3544_v54, %v3586_v27  ;;  %v5232_v52 = vcombine.high %v3544_v54, %v3586_v27  ;;  %v3659_v1 = vrot.slane %v3653_v6, 4  ;;  %4830 = vmatpush1.bf16.msra.mxu0 %v5221_v22  ;;  %v3618_v25 = vrot.slane %v3612_v58, 4 }
 0x50b   : > { %v3584_v46 = vsel %vm7163_vm13, %v6632_v38, %v3583_v53  ;;  %v3827_v15 = vrot.slane %v6310_v2, 4  ;;  %v3785_v49 = vrot.slane %v6393_v61, 4  ;;  %v7170_v7 = vrot.slane %v6691_v17, 4 }
 0x50c   : > { %v3665_v50 = vsel %vm381_vm0, %v7164_v4, %v3659_v1  ;;  %v3667_v42 = vsel %vm381_vm0, %v3659_v1, %v3660_v63  ;;  %v3624_v28 = vsel %vm381_vm0, %v7165_v26, %v3618_v25  ;;  %v3626_v32 = vsel %vm381_vm0, %v3618_v25, %v3619_v59  ;;  %4872 = vmatprep.subr.bf16.mxu1 %v5232_v52 }
 0x50d   : > { %v3668_v5 = vsel %vm7166_vm14, %v3653_v6, %v3667_v42  ;;  %v3627_v8 = vsel %vm7167_vm15, %v3612_v58, %v3626_v32  ;;  %v5229_v20 = vcombine.low %v3542_v51, %v3584_v46  ;;  %v5230_v57 = vcombine.high %v3542_v51, %v3584_v46  ;;  %v3736_v38 = vpop.permute.xlu1 %3735  ;;  %4873 = vmatpush1.bf16.msra.mxu1 %v5231_v43  ;;  %v3694_v18 = vpop.permute.xlu0 %3693 }
 0x50e   : > { %v5239_v11 = vcombine.low %v3627_v8, %v3668_v5  ;;  %v5240_v24 = vcombine.high %v3627_v8, %v3668_v5  ;;  %v3742_v16 = vrot.slane %v3736_v38, 4  ;;  %v3700_v10 = vrot.slane %v3694_v18, 4 }
 0x50f   : > { %4831 = vmatprep.subr.bf16.mxu0 %v5230_v57  ;;  %v3625_v33 = vsel %vm7168_vm11, %v6652_v48, %v3624_v28  ;;  %v3666_v0 = vsel %vm7169_vm3, %v6661_v21, %v3665_v50  ;;  %v3910_v13 = vrot.slane %v6312_v60, 4  ;;  %v3869_v59 = vrot.slane %v6399_v39, 4 }
 0x510   : > { %v3749_v35 = vsel %vm381_vm0, %v7170_v7, %v3742_v16  ;;  %v3751_v55 = vsel %vm381_vm0, %v3742_v16, %v3743_v29  ;;  %4832 = vmatpush1.bf16.msra.mxu0 %v5229_v20  ;;  %v3707_v2 = vsel %vm381_vm0, %v7171_v12, %v3700_v10  ;;  %v3709_v61 = vsel %vm381_vm0, %v3700_v10, %v3701_v62 }
 0x511   : > { %v3752_v63 = vsel %vm3745_vm8, %v3736_v38, %v3751_v55  ;;  %v3710_v48 = vsel %vm3703_vm1, %v3694_v18, %v3709_v61  ;;  %v5237_v22 = vcombine.low %v3625_v33, %v3666_v0  ;;  %v5238_v31 = vcombine.high %v3625_v33, %v3666_v0  ;;  %4874 = vmatprep.subr.bf16.mxu1 %v5240_v24  ;;  %v3820_v21 = vpop.permute.xlu1 %3819  ;;  %v3778_v56 = vpop.permute.xlu0 %3777 }
 0x512   : > { %v5247_v53 = vcombine.low %v3710_v48, %v3752_v63  ;;  %v5248_v23 = vcombine.high %v3710_v48, %v3752_v63  ;;  %v3826_v40 = vrot.slane %v3820_v21, 4  ;;  %4875 = vmatpush1.bf16.msra.mxu1 %v5239_v11  ;;  %v3784_v47 = vrot.slane %v3778_v56, 4 }
 0x513   : > { %4833 = vmatprep.subr.bf16.mxu0 %v5238_v31  ;;  %v3708_v27 = vsel %vm3703_vm1, %v6682_v19, %v3707_v2  ;;  %v3750_v54 = vsel %vm3745_vm8, %v6691_v17, %v3749_v35  ;;  %v7172_v6 = vrot.slane %v6717_v30, 4  ;;  %v7173_v43 = vrot.slane %v6711_v9, 4  ;;  %vm7175_vm1 = vmmov %vm7174_vm9 }
 0x514   : > { %v3835_v51 = vsel %vm381_vm0, %v3826_v40, %v3827_v15  ;;  %4834 = vmatpush1.bf16.msra.mxu0 %v5237_v22  ;;  %v3793_v39 = vsel %vm381_vm0, %v3784_v47, %v3785_v49  ;;  %v5245_v1 = vcombine.low %v3708_v27, %v3750_v54  ;;  %v5246_v25 = vcombine.high %v3708_v27, %v3750_v54 }
 0x515   : > { %v3833_v58 = vsel %vm381_vm0, %v7172_v6, %v3826_v40  ;;  %v3791_v60 = vsel %vm381_vm0, %v7173_v43, %v3784_v47  ;;  %v3836_v52 = vsel %vm3829_vm4, %v3820_v21, %v3835_v51  ;;  %v3794_v19 = vsel %vm7174_vm9, %v3778_v56, %v3793_v39  ;;  %4876 = vmatprep.subr.bf16.mxu1 %v5248_v23  ;;  %v3903_v17 = vpop.permute.xlu1 %3902  ;;  %v3862_v29 = vpop.permute.xlu0 %3861 }
 0x516   : > { %v5255_v62 = vcombine.low %v3794_v19, %v3836_v52  ;;  %v5256_v46 = vcombine.high %v3794_v19, %v3836_v52  ;;  %v3909_v4 = vrot.slane %v3903_v17, 4  ;;  %4877 = vmatpush1.bf16.msra.mxu1 %v5247_v53  ;;  %v3868_v50 = vrot.slane %v3862_v29, 4  ;;  %4835 = vmatprep.subr.bf16.mxu0 %v5246_v25 }
 0x517   : > { %v3792_v42 = vsel %vm7175_vm1, %v6711_v9, %v3791_v60  ;;  %v3834_v26 = vsel %vm3829_vm4, %v6717_v30, %v3833_v58  ;;  %v7176_v28 = vrot.slane %v6735_v37, 4  ;;  %v7177_v8 = vrot.slane %v6730_v41, 4  ;;  %vm7180_vm4 = vmmov %vm7179_vm10 }
 0x518   : > { %v3917_v5 = vsel %vm381_vm0, %v3909_v4, %v3910_v13  ;;  %4836 = vmatpush1.bf16.msra.mxu0 %v5245_v1  ;;  %v3876_v57 = vsel %vm381_vm0, %v3868_v50, %v3869_v59  ;;  %vm7178_vm8 = vcmask 220160   ;;  %v5253_v18 = vcombine.low %v3792_v42, %v3834_v26  ;;  %4878 = vmatprep.subr.bf16.mxu1 %v5256_v46  ;;  %v4899_v1 = vld [vmem:[%s7020_s6] sm:$0xff] }
 0x519   : > { %v3915_v32 = vsel %vm381_vm0, %v7176_v28, %v3909_v4  ;;  %v3874_v20 = vsel %vm381_vm0, %v7177_v8, %v3868_v50  ;;  %v3918_v38 = vsel %vm7178_vm8, %v3903_v17, %v3917_v5  ;;  %v3877_v9 = vsel %vm7179_vm10, %v3862_v29, %v3876_v57  ;;  %v3986_v30 = vpop.permute.xlu1 %3985  ;;  %v3944_v24 = vpop.permute.xlu0 %3943  ;;  %vm7181_vm6 = vmmov %vm7178_vm8 }
 0x51a   : > { %v5254_v11 = vcombine.high %v3792_v42, %v3834_v26  ;;  %v5263_v16 = vcombine.low %v3877_v9, %v3918_v38  ;;  %v5264_v10 = vcombine.high %v3877_v9, %v3918_v38  ;;  %v3992_v15 = vrot.slane %v3986_v30, 4  ;;  %4879 = vmatpush1.bf16.msra.mxu1 %v5255_v62 }
 0x51b   : > { %v3950_v49 = vrot.slane %v3944_v24, 4  ;;  %v3875_v33 = vsel %vm7180_vm4, %v6730_v41, %v3874_v20  ;;  %v3916_v0 = vsel %vm7181_vm6, %v6735_v37, %v3915_v32  ;;  %v3951_v7 = vrot.slane %v6409_v36, 4 }
 0x51c   : > { %4837 = vmatprep.subr.bf16.mxu0 %v5254_v11  ;;  %v7182_v35 = vrot.slane %v6753_v45, 4  ;;  %v7183_v12 = vrot.slane %v6748_v44, 4  ;;  %v5261_v61 = vcombine.low %v3875_v33, %v3916_v0  ;;  %v5262_v63 = vcombine.high %v3875_v33, %v3916_v0  ;;  %4880 = vmatprep.subr.bf16.mxu1 %v5264_v10 }
 0x51d   : > { %4838 = vmatpush1.bf16.msra.mxu0 %v5253_v18  ;;  %v3988_v48 = vpop.permute.xlu1 %3987  ;;  %v4027_v22 = vpop.permute.xlu0 %4026  ;;  %vm7184_vm5 = vcmask 146432   ;;  %v3959_v37 = vsel %vm381_vm0, %v3950_v49, %v3951_v7  ;;  %v7185_v23 = vrot.slane %v6770_v34, 4  ;;  %vm7186_vm7 = vcmask 138240  }
 0x51e   : > { %v3998_v55 = vsel %vm381_vm0, %v7182_v35, %v3992_v15  ;;  %v3957_v2 = vsel %vm381_vm0, %v7183_v12, %v3950_v49  ;;  %v3993_v31 = vrot.slane %v3988_v48, 4  ;;  %4881 = vmatpush1.bf16.msra.mxu1 %v5263_v16  ;;  %v4033_v21 = vrot.slane %v4027_v22, 4  ;;  %4839 = vmatprep.subr.bf16.mxu0 %v5262_v63  ;;  %vm7187_vm12 = vmmov %vm7184_vm5 }
 0x51f   : > { %v3958_v41 = vsel %vm3953_vm2, %v6748_v44, %v3957_v2  ;;  %v3999_v36 = vsel %vm7184_vm5, %v6753_v45, %v3998_v55  ;;  %v3960_v44 = vsel %vm3953_vm2, %v3944_v24, %v3959_v37  ;;  %vm7188_vm13 = vmmov %vm7186_vm7  ;;  %v7189_v25 = vsub.s32 0, %v5484_v3 }
 0x520   : > { %v5270_v56 = vcombine.high %v3958_v41, %v3999_v36  ;;  %v4000_v53 = vsel %vm381_vm0, %v3992_v15, %v3993_v31  ;;  %v4039_v40 = vsel %vm381_vm0, %v7185_v23, %v4033_v21  ;;  %v5269_v47 = vcombine.low %v3958_v41, %v3999_v36 }
 0x521   : > { %4840 = vmatpush1.bf16.msra.mxu0 %v5261_v61  ;;  %v4029_v13 = vpop.permute.xlu1 %4028  ;;  %v4040_v45 = vsel %vm7186_vm7, %v6770_v34, %v4039_v40  ;;  %v4001_v59 = vsel %vm7187_vm12, %v3986_v30, %v4000_v53  ;;  %v4904_v17 = vrot.slane %v4899_v1, %v7189_v25  ;;  %v7190_v29 = vsub.s32 1, %v5484_v3 }
 0x522   : > { %4841 = vmatprep.subr.bf16.mxu0 %v5270_v56  ;;  %v4034_v27 = vrot.slane %v4029_v13, 4  ;;  %v5278_v54 = vcombine.high %v4040_v45, %v4040_v45  ;;  %v5271_v6 = vcombine.low %v3960_v44, %v4001_v59  ;;  %v5272_v58 = vcombine.high %v3960_v44, %v4001_v59 }
 0x523   : > { %v5277_v51 = vcombine.low %v4040_v45, %v4040_v45  ;;  %v4908_v62 = vrot.slane %v4899_v1, %v7190_v29  ;;  %v7191_v28 = vsub.s32 2, %v5484_v3  ;;  %v7193_v10 = vsub.s32 4, %v5484_v3 }
 0x524   : > { %v4041_v43 = vsel %vm381_vm0, %v4033_v21, %v4034_v27  ;;  %4882 = vmatprep.subr.bf16.mxu1 %v5272_v58  ;;  %v7194_v49 = vsub.s32 5, %v5484_v3  ;;  %v7195_v0 = vsub.s32 6, %v5484_v3  ;;  %v7196_v61 = vsub.s32 7, %v5484_v3 }
 0x525   : > { %4842 = vmatpush1.bf16.msra.mxu0 %v5269_v47  ;;  %v4042_v60 = vsel %vm7188_vm13, %v4027_v22, %v4041_v43  ;;  %v4724_v39 = vsel %vm381_vm0, %v5277_v51, 0  ;;  %4883 = vmatpush1.bf16.msra.mxu1 %v5271_v6  ;;  %v4912_v32 = vrot.slane %v4899_v1, %v7191_v28  ;;  %v4920_v15 = vrot.slane %v4899_v1, %v7193_v10 }
 0x526   : > { %5285 = vmatprep.subr.msk.bf16.mxu0 %vm381_vm0, %v5278_v54  ;;  %v5280_v52 = vcombine.high %v4042_v60, %v4042_v60  ;;  %v5279_v34 = vcombine.low %v4042_v60, %v4042_v60  ;;  %v4924_v33 = vrot.slane %v4899_v1, %v7194_v49  ;;  %v4928_v7 = vrot.slane %v4899_v1, %v7195_v0 }
 0x527   : > { %v4932_v63 = vrot.slane %v4899_v1, %v7196_v61 }
 0x528   : > { %5287 = vmatprep.subr.msk.bf16.mxu1 %vm381_vm0, %v5280_v52  ;;  %v4730_v19 = vsel %vm381_vm0, %v5279_v34, 0 }
 0x529   : > { %4844 = vmatpush1.bf16.msra.mxu0 %v4724_v39  ;;  %4885 = vmatpush1.bf16.msra.mxu1 %v4730_v19 }
 0x52c   : > { %4850 = vmatmul.mubr.bf16.vlgmr.msra.gmra.mrb[12].mxu0 %v6784_v14  ;;  %4891 = vmatmul.mubr.bf16.vlgmr.msra.gmra.mrb[12].mxu1 %v6784_v14  ;;  %v7192_v14 = vsub.s32 3, %v5484_v3 }
 0x52e   : > { %v4916_v8 = vrot.slane %v4899_v1, %v7192_v14 }
 0x5ab   : > { %v4769_v46 = vpop.f32.mrb[8].mxu0 }
 0x5ac   : > { %v4941_v4 = vmul.f32 %v4904_v17, %v4769_v46  ;;  %v4771_v50 = vpop.f32.mrb[9].mxu0 }
 0x5ad   : > { %v4942_v42 = vmul.f32 %v4908_v62, %v4771_v50  ;;  %v4773_v26 = vpop.f32.mrb[10].mxu0 }
 0x5ae   : > { %v4774_v5 = vpop.f32.mrb[11].mxu0 }
 0x5af   : > { %v4949_v20 = vadd.f32 %v4942_v42, %v4941_v4 }
 0x5b0   : > { %v4810_v57 = vpop.f32.mrb[8].mxu1 }
 0x5b1   : > { %v4943_v38 = vmul.f32 %v4912_v32, %v4810_v57  ;;  %v4812_v9 = vpop.f32.mrb[9].mxu1 }
 0x5b2   : > { %v4944_v18 = vmul.f32 %v4916_v8, %v4812_v9  ;;  %v4814_v11 = vpop.f32.mrb[10].mxu1 }
 0x5b3   : > { %v4950_v30 = vadd.f32 %v4949_v20, %v4943_v38  ;;  %v4815_v24 = vpop.f32.mrb[11].mxu1 }
 0x5b5   : > { %v4951_v16 = vadd.f32 %v4950_v30, %v4944_v18 }
 0x5ff   : > { %v4851_v35 = vpop.f32.mrb[12].mxu0  ;;  %v4892_v2 = vpop.f32.mrb[12].mxu1 }
 0x600   : > { %v4945_v55 = vmul.f32 %v4920_v15, %v4851_v35  ;;  %v4853_v12 = vpop.f32.mrb[13].mxu0  ;;  %v4894_v41 = vpop.f32.mrb[13].mxu1  ;;  %v4947_v31 = vmul.f32 %v4928_v7, %v4892_v2 }
 0x601   : > { %v4946_v48 = vmul.f32 %v4924_v33, %v4853_v12  ;;  %v4855_v22 = vpop.f32.mrb[14].mxu0  ;;  %v4896_v21 = vpop.f32.mrb[14].mxu1  ;;  %v4948_v23 = vmul.f32 %v4932_v63, %v4894_v41 }
 0x602   : > { %v4952_v36 = vadd.f32 %v4951_v16, %v4945_v55  ;;  %v4856_v37 = vpop.f32.mrb[15].mxu0  ;;  %v4897_v56 = vpop.f32.mrb[15].mxu1 }
 0x604   : > { %v4953_v53 = vadd.f32 %v4952_v36, %v4946_v48 }
 0x606   : > { %v4954_v40 = vadd.f32 %v4953_v53, %v4947_v31 }
 0x608   : > { %v4955_v47 = vadd.f32 %v4954_v40, %v4948_v23 }
 0x60a   : > { %4956 = vadd.xlane.f32.xlu0 %v4955_v47 }
 0x697   : > { %v4957_v44 = vpop.xlane.xlu0 %4956 }
 0x698   : > { %v4958_v13 = vmul.f32 0.001953125, %v4957_v44 }
 0x69a   : > { %v4959_v45 = vsub.f32 %v4769_v46, %v4958_v13  ;;  %v4960_v59 = vsub.f32 %v4771_v50, %v4958_v13  ;;  %v4961_v27 = vsub.f32 %v4810_v57, %v4958_v13  ;;  %v4962_v3 = vsub.f32 %v4812_v9, %v4958_v13 }
 0x69b   : > { %v4963_v54 = vsub.f32 %v4851_v35, %v4958_v13  ;;  %v4964_v43 = vsub.f32 %v4853_v12, %v4958_v13  ;;  %v4965_v34 = vsub.f32 %v4892_v2, %v4958_v13  ;;  %v4966_v29 = vsub.f32 %v4894_v41, %v4958_v13 }
 0x69c   : > { %v4967_v6 = vmul.f32 %v4959_v45, %v4904_v17  ;;  %v4968_v58 = vmul.f32 %v4960_v59, %v4908_v62  ;;  %v4969_v51 = vmul.f32 %v4961_v27, %v4912_v32  ;;  %v4970_v60 = vmul.f32 %v4962_v3, %v4916_v8 }
 0x69d   : > { %v4971_v19 = vmul.f32 %v4963_v54, %v4920_v15  ;;  %v4972_v4 = vmul.f32 %v4964_v43, %v4924_v33  ;;  %v4973_v46 = vmul.f32 %v4965_v34, %v4928_v7  ;;  %v4974_v5 = vmul.f32 %v4966_v29, %v4932_v63 }
 0x69e   : > { %v4975_v39 = vmul.f32 %v4967_v6, %v4967_v6  ;;  %v4976_v52 = vmul.f32 %v4968_v58, %v4968_v58  ;;  %v4977_v1 = vmul.f32 %v4969_v51, %v4969_v51  ;;  %v4978_v42 = vmul.f32 %v4970_v60, %v4970_v60 }
 0x69f   : > { %v4979_v50 = vmul.f32 %v4971_v19, %v4971_v19  ;;  %v4980_v17 = vmul.f32 %v4972_v4, %v4972_v4  ;;  %v4981_v32 = vmul.f32 %v4973_v46, %v4973_v46  ;;  %v4982_v8 = vmul.f32 %v4974_v5, %v4974_v5 }
 0x6a0   : > { %v4983_v25 = vadd.f32 %v4976_v52, %v4975_v39 }
 0x6a2   : > { %v4984_v26 = vadd.f32 %v4983_v25, %v4977_v1 }
 0x6a4   : > { %v4985_v28 = vadd.f32 %v4984_v26, %v4978_v42 }
 0x6a6   : > { %v4986_v62 = vadd.f32 %v4985_v28, %v4979_v50 }
 0x6a8   : > { %v4987_v14 = vadd.f32 %v4986_v62, %v4980_v17 }
 0x6aa   : > { %v4988_v20 = vadd.f32 %v4987_v14, %v4981_v32 }
 0x6ac   : > { %v4989_v57 = vadd.f32 %v4988_v20, %v4982_v8 }
 0x6ae   : > { %4990 = vadd.xlane.f32.xlu1 %v4989_v57 }
 0x73b   : > { %v4991_v38 = vpop.xlane.xlu1 %4990 }
 0x73c   : > { %v4992_v9 = vmul.f32 0.001953125, %v4991_v38 }
 0x73e   : > { %v4993_v18 = vadd.f32 1e-05, %v4992_v9 }
 0x740   : > { %5377 = vrsqrt.f32 %v4993_v18 }
 0x74a   : > { %v5378_v11 = vpop.eup %5377 }
 0x74b   : > { %v4995_v30 = vmul.f32 %v5378_v11, %v4967_v6  ;;  %v4996_v24 = vmul.f32 %v5378_v11, %v4968_v58  ;;  %v4997_v16 = vmul.f32 %v5378_v11, %v4969_v51  ;;  %v4998_v10 = vmul.f32 %v5378_v11, %v4970_v60 }
 0x74c   : > { %v4999_v15 = vmul.f32 %v5378_v11, %v4971_v19  ;;  %v5000_v49 = vmul.f32 %v5378_v11, %v4972_v4  ;;  %v5001_v33 = vmul.f32 %v5378_v11, %v4973_v46  ;;  %v5002_v0 = vmul.f32 %v5378_v11, %v4974_v5 }
 0x74d   : > { %v5003_v7 = vmax.f32 %v4995_v30, 0.0  ;;  %v5004_v35 = vmax.f32 %v4996_v24, 0.0  ;;  %v5005_v55 = vmax.f32 %v4997_v16, 0.0  ;;  %v5006_v12 = vmax.f32 %v4998_v10, 0.0 }
 0x74e   : > { %v5007_v2 = vmax.f32 %v4999_v15, 0.0  ;;  %v5008_v61 = vmax.f32 %v5000_v49, 0.0  ;;  %v5009_v63 = vmax.f32 %v5001_v33, 0.0  ;;  %v5010_v48 = vmax.f32 %v5002_v0, 0.0 }
 0x74f   : > { %5011 = vst [vmem:[%s278_s20] sm:$0xff] %v5003_v7  ;;  %5012 = vst [vmem:[%s278_s20 + $0x8] sm:$0xff] %v5004_v35 }
 0x750   : > { %5013 = vst [vmem:[%s278_s20 + $0x10] sm:$0xff] %v5005_v55  ;;  %5014 = vst [vmem:[%s278_s20 + $0x18] sm:$0xff] %v5006_v12 }
 0x751   : > { %5015 = vst [vmem:[%s278_s20 + $0x20] sm:$0xff] %v5007_v2  ;;  %5016 = vst [vmem:[%s278_s20 + $0x28] sm:$0xff] %v5008_v61 }
 0x752   : > { %5017 = vst [vmem:[%s278_s20 + $0x30] sm:$0xff] %v5009_v63  ;;  %5018 = vst [vmem:[%s278_s20 + $0x38] sm:$0xff] %v5010_v48 }
 0x753 PF: > { %s17_s24 = sadd.s32 1, %s5385_s24  }
 0x754   : > { %p14_p4 = scmp.ge.s32.totalorder %s17_s24, 4  }
 0x756   :  { %16 = sbr.rel (!%p14_p4) target bundleno = 1 (0x1), region = 78 }

</bundles_post_ra>
